<compile_context>
chip_gen: v7x
topology: tpu7x:2x2x1
jax: 0.10.0
libtpu: 0.0.40
codegen_flags: <defaults>
</compile_context>

<pallas_src>
import functools

import jax
import jax.numpy as jnp
from jax.experimental import pallas as pl
from jax.experimental.pallas import tpu as pltpu


def _round_up(v, m):
    return ((v + m - 1) // m) * m


def _basic_block_kernel(x_ref, w1_ref, w2_ref, s1_ref, b1_ref, s2_ref, b2_ref, mask_ref,
                        out_ref, ypad_ref, *, H, W, C, A, Lp, P_y):
    """One batch element: conv1+BN+ReLU -> conv2+BN -> +residual -> ReLU, fully fused.

    Flat-index convention: the padded volume is flattened over its spatial dims; outputs
    are computed for flat q in [0, Lp) with q = d*Hp*Wp + h*Wp + w (Hp=H+2, Wp=W+2).
    Lanes with h >= H, w >= W or q >= L are junk (masked to zero before conv2, sliced off
    in the wrapper), but keeping them makes every conv tap a static lane-offset Ref slice.
    """
    Hp, Wp = H + 2, W + 2
    HpWp = Hp * Wp
    base = HpWp + Wp + 1            # flat offset of the (+1,+1,+1) padding origin

    def conv27(w_ref, win):
        # 27 per-tap (C,C)@(C,Lp) MXU matmuls accumulated in f32; `win(off)` returns the
        # lane-shifted (C, Lp) bf16 window for flat tap offset `off` (a Ref slice).
        acc = jnp.zeros((C, Lp), jnp.float32)
        for kd in range(3):
            for kh in range(3):
                for kw in range(3):
                    k = kd * 9 + kh * 3 + kw
                    off = kd * HpWp + kh * Wp + kw
                    acc += jnp.dot(w_ref[:, k * C:(k + 1) * C], win(off),
                                   preferred_element_type=jnp.float32)
        return acc

    # ---- conv1 + BN (eval) + ReLU ----------------------------------------------------
    acc1 = conv27(w1_ref, lambda off: x_ref[0, :, off:off + Lp])
    y = jnp.maximum(acc1 * s1_ref[...] + b1_ref[...], 0.0)            # f32 epilogue

    # ---- stage y (bf16) into the zero-haloed VMEM slab for conv2 ----------------------
    # Junk lanes must act as conv2's zero padding -> multiplied by the precomputed mask.
    # Only the two halo stripes need explicit zeroing (lane-aligned, ~1 vreg of stores);
    # the interior [A, A+Lp) is fully overwritten every step.
    ypad_ref[:, 0:A] = jnp.zeros((C, A), ypad_ref.dtype)
    ypad_ref[:, A + Lp:P_y] = jnp.zeros((C, P_y - A - Lp), ypad_ref.dtype)
    ypad_ref[:, A:A + Lp] = (y * mask_ref[...]).astype(ypad_ref.dtype)

    # ---- conv2 + BN (eval) + residual + ReLU ------------------------------------------
    acc2 = conv27(w2_ref, lambda off: ypad_ref[:, A - base + off:A - base + off + Lp])
    out = acc2 * s2_ref[...] + b2_ref[...]
    out = out + x_ref[0, :, base:base + Lp].astype(jnp.float32)       # residual, f32
    out_ref[0] = jnp.maximum(out, 0.0).astype(out_ref.dtype)          # final ReLU


def basic_block_forward(x_ncdhw, params):
    """BasicBlock.forward for n_in == n_out, stride=1 (downsample is None).

    Layout stays PyTorch NCDHW end-to-end: channels ride the sublane axis, the flattened
    spatial grid rides the lane axis, so no NCDHW<->NDHWC transposes are needed.
    """
    N, C, D, H, W = x_ncdhw.shape
    Hp, Wp = H + 2, W + 2
    HpWp = Hp * Wp
    L = D * HpWp                          # flat output length (lane axis), pre-alignment
    Lp = _round_up(L, 128)                # lane-aligned accumulator / store length
    base = HpWp + Wp + 1
    A = _round_up(base, 128)              # lane-aligned offset of y inside the conv2 slab
    max_off = 2 * HpWp + 2 * Wp + 2       # largest conv tap offset
    P_in = _round_up(max_off + Lp, 128)   # padded flat input length (all tap slices in-bounds)
    P_y = _round_up(A + Lp + base, 128)   # conv2 slab length (all tap slices in-bounds)

    # glue: SAME zero-padding once, flatten spatial dims, zero-extend the flat tail so
    # every static tap slice stays in-bounds.  Activations go to HBM as bf16.
    xp = jnp.pad(x_ncdhw, ((0, 0), (0, 0), (1, 1), (1, 1), (1, 1)))
    xp = xp.astype(jnp.bfloat16).reshape(N, C, (D + 2) * HpWp)
    xp = jnp.pad(xp, ((0, 0), (0, 0), (0, P_in - (D + 2) * HpWp)))

    # weights as (Cout, 27*Cin): column block [k*C, (k+1)*C) is tap k's (Cout, Cin) matrix.
    w1m = params["w1"].reshape(27 * C, C).T.astype(jnp.bfloat16)
    w2m = params["w2"].reshape(27 * C, C).T.astype(jnp.bfloat16)
    # BN (eval) folded scale/bias, shaped (C, 1) so they broadcast along lanes.
    s1 = params["s1"].reshape(C, 1).astype(jnp.float32)
    b1 = params["b1"].reshape(C, 1).astype(jnp.float32)
    s2 = params["s2"].reshape(C, 1).astype(jnp.float32)
    b2 = params["b2"].reshape(C, 1).astype(jnp.float32)

    # junk-lane mask, precomputed once in the wrapper (q >= L, h >= H or w >= W -> 0).
    q = jnp.arange(Lp, dtype=jnp.int32)
    interior = (q < L) & ((q % Wp) < W) & (((q // Wp) % Hp) < H)
    mask = interior.astype(jnp.float32).reshape(1, Lp)

    kernel = functools.partial(_basic_block_kernel, H=H, W=W, C=C, A=A, Lp=Lp, P_y=P_y)

    out_flat = pl.pallas_call(
        kernel,
        out_shape=jax.ShapeDtypeStruct((N, C, Lp), jnp.float32),
        grid=(N,),
        in_specs=[
            pl.BlockSpec((1, C, P_in), lambda n: (n, 0, 0)),
            pl.BlockSpec((C, 27 * C), lambda n: (0, 0)),
            pl.BlockSpec((C, 27 * C), lambda n: (0, 0)),
            pl.BlockSpec((C, 1), lambda n: (0, 0)),
            pl.BlockSpec((C, 1), lambda n: (0, 0)),
            pl.BlockSpec((C, 1), lambda n: (0, 0)),
            pl.BlockSpec((C, 1), lambda n: (0, 0)),
            pl.BlockSpec((1, Lp), lambda n: (0, 0)),
        ],
        out_specs=pl.BlockSpec((1, C, Lp), lambda n: (n, 0, 0)),
        scratch_shapes=[
            pltpu.VMEM((C, P_y), jnp.bfloat16),   # zero-haloed intermediate activation slab
        ],
        compiler_params=pltpu.CompilerParams(
            dimension_semantics=("parallel",),     # batch axis; fine on every generation
            vmem_limit_bytes=32 * 1024 * 1024,
        ),
    )(xp, w1m, w2m, s1, b1, s2, b2, mask)

    # glue: drop the alignment tail and the H/W padding columns (kept in-kernel so all
    # stores stay lane-dense); a cheap XLA slice that fuses with downstream consumers.
    return out_flat[:, :, :L].reshape(N, C, D, Hp, Wp)[:, :, :, :H, :W]


def _reference_forward(x_ncdhw, params):
    """Pure-JAX reference (lax.conv) mirroring the kernel's mixed precision:
    bf16 conv operands (x, weights and the intermediate activation), f32 accumulation
    and f32 BN / residual / ReLU epilogue."""
    f32 = jnp.float32
    bf = lambda a: a.astype(jnp.bfloat16).astype(f32)

    x = jnp.transpose(bf(x_ncdhw), (0, 2, 3, 4, 1))    # NDHWC
    w1 = bf(params["w1"])
    w2 = bf(params["w2"])

    def conv(inp, w):
        return jax.lax.conv_general_dilated(
            inp, w, (1, 1, 1), "SAME",
            dimension_numbers=("NDHWC", "DHWIO", "NDHWC"),
            precision=jax.lax.Precision.HIGHEST)

    y = jnp.maximum(conv(x, w1) * params["s1"] + params["b1"], 0.0)
    z = conv(bf(y), w2) * params["s2"] + params["b2"] + x
    z = jnp.maximum(z, 0.0)
    return jnp.transpose(z, (0, 4, 1, 2, 3))


def _make_params(key, c):
    """Deterministic synthetic params. BN folded: scale=g/sqrt(var+eps), bias=b-mean*scale."""
    ks = jax.random.split(key, 10)
    eps = 0.001

    def bn_fold(kg, kb, km, kv):
        gamma = 1.0 + 0.1 * jax.random.normal(kg, (c,), jnp.float32)
        beta = 0.1 * jax.random.normal(kb, (c,), jnp.float32)
        mean = 0.05 * jax.random.normal(km, (c,), jnp.float32)
        var = 0.9 + 0.2 * jnp.abs(jax.random.normal(kv, (c,), jnp.float32))
        scale = gamma / jnp.sqrt(var + eps)
        bias = beta - mean * scale
        return scale, bias

    w1 = 0.1 * jax.random.normal(ks[0], (3, 3, 3, c, c), jnp.float32)  # DHWIO
    w2 = 0.1 * jax.random.normal(ks[1], (3, 3, 3, c, c), jnp.float32)
    s1, b1 = bn_fold(ks[2], ks[3], ks[4], ks[5])
    s2, b2 = bn_fold(ks[6], ks[7], ks[8], ks[9])
    return {"w1": w1, "s1": s1, "b1": b1, "w2": w2, "s2": s2, "b2": b2}


if __name__ == "__main__":
    key = jax.random.PRNGKey(0)
    kx, kp = jax.random.split(key)

    N, C, D, H, W = 2, 8, 8, 8, 8                     # PyTorch-style NCDHW input
    x = jax.random.normal(kx, (N, C, D, H, W), jnp.float32)
    params = _make_params(kp, C)

    out = jax.block_until_ready(jax.jit(basic_block_forward)(x, params))
    ref = jax.block_until_ready(jax.jit(_reference_forward)(x, params))

    assert out.shape == (N, C, D, H, W), out.shape
    max_err = float(jnp.max(jnp.abs(out - ref)))
    # bf16 conv operands (incl. the bf16-rounded intermediate activation) => allow ~1% of
    # the O(1) output magnitude; the residual gap vs the reference comes only from f32
    # accumulation order and occasional bf16 rounding-boundary flips of the intermediate.
    assert max_err < 2e-2, f"mismatch vs reference: {max_err}"
    print("KERNEL_OK")
</pallas_src>

<mosaic_0001>
module attributes {stable_mosaic.version = 11 : i64} {
  func.func @_basic_block_kernel(%arg0: i32, %arg1: memref<1x8x1152xbf16, #tpu.memory_space<vmem>>, %arg2: memref<8x216xbf16, #tpu.memory_space<vmem>>, %arg3: memref<8x216xbf16, #tpu.memory_space<vmem>>, %arg4: memref<8x1xf32, #tpu.memory_space<vmem>>, %arg5: memref<8x1xf32, #tpu.memory_space<vmem>>, %arg6: memref<8x1xf32, #tpu.memory_space<vmem>>, %arg7: memref<8x1xf32, #tpu.memory_space<vmem>>, %arg8: memref<1x896xf32, #tpu.memory_space<vmem>>, %arg9: memref<1x8x896xf32, #tpu.memory_space<vmem>>, %arg10: memref<8x1152xbf16, #tpu.memory_space<vmem>>) attributes {dimension_semantics = [#tpu.dimension_semantics<parallel>], iteration_bounds = array<i64: 2>, scalar_prefetch = 0 : i64, scratch_operands = 1 : i64, tpu.core_type = #tpu.core_type<tc>, window_params = [{transform_indices = @transform_0, window_bounds = array<i64: 1, 8, 1152>}, {pipeline_mode = #tpu.pipeline_mode<synchronous>, transform_indices = @transform_1, window_bounds = array<i64: 8, 216>}, {pipeline_mode = #tpu.pipeline_mode<synchronous>, transform_indices = @transform_2, window_bounds = array<i64: 8, 216>}, {pipeline_mode = #tpu.pipeline_mode<synchronous>, transform_indices = @transform_3, window_bounds = array<i64: 8, 1>}, {pipeline_mode = #tpu.pipeline_mode<synchronous>, transform_indices = @transform_4, window_bounds = array<i64: 8, 1>}, {pipeline_mode = #tpu.pipeline_mode<synchronous>, transform_indices = @transform_5, window_bounds = array<i64: 8, 1>}, {pipeline_mode = #tpu.pipeline_mode<synchronous>, transform_indices = @transform_6, window_bounds = array<i64: 8, 1>}, {pipeline_mode = #tpu.pipeline_mode<synchronous>, transform_indices = @transform_7, window_bounds = array<i64: 1, 896>}, {transform_indices = @transform_8, window_bounds = array<i64: 1, 8, 896>}]} {
    %cst = arith.constant 0.000000e+00 : f32
    %0 = vector.broadcast %cst : f32 to vector<8x896xf32>
    %c0 = arith.constant 0 : index
    %c0_0 = arith.constant 0 : index
    %1 = vector.load %arg2[%c0, %c0_0] : memref<8x216xbf16, #tpu.memory_space<vmem>>, vector<8x8xbf16>
    %c0_1 = arith.constant 0 : index
    %c0_2 = arith.constant 0 : index
    %c0_3 = arith.constant 0 : index
    %2 = vector.load %arg1[%c0_1, %c0_2, %c0_3] : memref<1x8x1152xbf16, #tpu.memory_space<vmem>>, vector<1x8x896xbf16>
    %3 = vector.shape_cast %2 : vector<1x8x896xbf16> to vector<8x896xbf16>
    %cst_4 = arith.constant dense<0.000000e+00> : vector<8x896xf32>
    %4 = tpu.matmul %1, %3, %cst_4 {dimension_numbers = #tpu.dot_dimension_numbers<[1], [0], [0], [1], [0, 0, 1, 1], [], []>} : vector<8x8xbf16>, vector<8x896xbf16>, vector<8x896xf32> -> vector<8x896xf32>
    %5 = arith.addf %0, %4 : vector<8x896xf32>
    %c0_5 = arith.constant 0 : index
    %c8 = arith.constant 8 : index
    %6 = vector.load %arg2[%c0_5, %c8] : memref<8x216xbf16, #tpu.memory_space<vmem>>, vector<8x8xbf16>
    %c0_6 = arith.constant 0 : index
    %c0_7 = arith.constant 0 : index
    %c1 = arith.constant 1 : index
    %7 = vector.load %arg1[%c0_6, %c0_7, %c1] : memref<1x8x1152xbf16, #tpu.memory_space<vmem>>, vector<1x8x896xbf16>
    %8 = vector.shape_cast %7 : vector<1x8x896xbf16> to vector<8x896xbf16>
    %cst_8 = arith.constant dense<0.000000e+00> : vector<8x896xf32>
    %9 = tpu.matmul %6, %8, %cst_8 {dimension_numbers = #tpu.dot_dimension_numbers<[1], [0], [0], [1], [0, 0, 1, 1], [], []>} : vector<8x8xbf16>, vector<8x896xbf16>, vector<8x896xf32> -> vector<8x896xf32>
    %10 = arith.addf %5, %9 : vector<8x896xf32>
    %c0_9 = arith.constant 0 : index
    %c16 = arith.constant 16 : index
    %11 = vector.load %arg2[%c0_9, %c16] : memref<8x216xbf16, #tpu.memory_space<vmem>>, vector<8x8xbf16>
    %c0_10 = arith.constant 0 : index
    %c0_11 = arith.constant 0 : index
    %c2 = arith.constant 2 : index
    %12 = vector.load %arg1[%c0_10, %c0_11, %c2] : memref<1x8x1152xbf16, #tpu.memory_space<vmem>>, vector<1x8x896xbf16>
    %13 = vector.shape_cast %12 : vector<1x8x896xbf16> to vector<8x896xbf16>
    %cst_12 = arith.constant dense<0.000000e+00> : vector<8x896xf32>
    %14 = tpu.matmul %11, %13, %cst_12 {dimension_numbers = #tpu.dot_dimension_numbers<[1], [0], [0], [1], [0, 0, 1, 1], [], []>} : vector<8x8xbf16>, vector<8x896xbf16>, vector<8x896xf32> -> vector<8x896xf32>
    %15 = arith.addf %10, %14 : vector<8x896xf32>
    %c0_13 = arith.constant 0 : index
    %c24 = arith.constant 24 : index
    %16 = vector.load %arg2[%c0_13, %c24] : memref<8x216xbf16, #tpu.memory_space<vmem>>, vector<8x8xbf16>
    %c0_14 = arith.constant 0 : index
    %c0_15 = arith.constant 0 : index
    %c10 = arith.constant 10 : index
    %17 = vector.load %arg1[%c0_14, %c0_15, %c10] : memref<1x8x1152xbf16, #tpu.memory_space<vmem>>, vector<1x8x896xbf16>
    %18 = vector.shape_cast %17 : vector<1x8x896xbf16> to vector<8x896xbf16>
    %cst_16 = arith.constant dense<0.000000e+00> : vector<8x896xf32>
    %19 = tpu.matmul %16, %18, %cst_16 {dimension_numbers = #tpu.dot_dimension_numbers<[1], [0], [0], [1], [0, 0, 1, 1], [], []>} : vector<8x8xbf16>, vector<8x896xbf16>, vector<8x896xf32> -> vector<8x896xf32>
    %20 = arith.addf %15, %19 : vector<8x896xf32>
    %c0_17 = arith.constant 0 : index
    %c32 = arith.constant 32 : index
    %21 = vector.load %arg2[%c0_17, %c32] : memref<8x216xbf16, #tpu.memory_space<vmem>>, vector<8x8xbf16>
    %c0_18 = arith.constant 0 : index
    %c0_19 = arith.constant 0 : index
    %c11 = arith.constant 11 : index
    %22 = vector.load %arg1[%c0_18, %c0_19, %c11] : memref<1x8x1152xbf16, #tpu.memory_space<vmem>>, vector<1x8x896xbf16>
    %23 = vector.shape_cast %22 : vector<1x8x896xbf16> to vector<8x896xbf16>
    %cst_20 = arith.constant dense<0.000000e+00> : vector<8x896xf32>
    %24 = tpu.matmul %21, %23, %cst_20 {dimension_numbers = #tpu.dot_dimension_numbers<[1], [0], [0], [1], [0, 0, 1, 1], [], []>} : vector<8x8xbf16>, vector<8x896xbf16>, vector<8x896xf32> -> vector<8x896xf32>
    %25 = arith.addf %20, %24 : vector<8x896xf32>
    %c0_21 = arith.constant 0 : index
    %c40 = arith.constant 40 : index
    %26 = vector.load %arg2[%c0_21, %c40] : memref<8x216xbf16, #tpu.memory_space<vmem>>, vector<8x8xbf16>
    %c0_22 = arith.constant 0 : index
    %c0_23 = arith.constant 0 : index
    %c12 = arith.constant 12 : index
    %27 = vector.load %arg1[%c0_22, %c0_23, %c12] : memref<1x8x1152xbf16, #tpu.memory_space<vmem>>, vector<1x8x896xbf16>
    %28 = vector.shape_cast %27 : vector<1x8x896xbf16> to vector<8x896xbf16>
    %cst_24 = arith.constant dense<0.000000e+00> : vector<8x896xf32>
    %29 = tpu.matmul %26, %28, %cst_24 {dimension_numbers = #tpu.dot_dimension_numbers<[1], [0], [0], [1], [0, 0, 1, 1], [], []>} : vector<8x8xbf16>, vector<8x896xbf16>, vector<8x896xf32> -> vector<8x896xf32>
    %30 = arith.addf %25, %29 : vector<8x896xf32>
    %c0_25 = arith.constant 0 : index
    %c48 = arith.constant 48 : index
    %31 = vector.load %arg2[%c0_25, %c48] : memref<8x216xbf16, #tpu.memory_space<vmem>>, vector<8x8xbf16>
    %c0_26 = arith.constant 0 : index
    %c0_27 = arith.constant 0 : index
    %c20 = arith.constant 20 : index
    %32 = vector.load %arg1[%c0_26, %c0_27, %c20] : memref<1x8x1152xbf16, #tpu.memory_space<vmem>>, vector<1x8x896xbf16>
    %33 = vector.shape_cast %32 : vector<1x8x896xbf16> to vector<8x896xbf16>
    %cst_28 = arith.constant dense<0.000000e+00> : vector<8x896xf32>
    %34 = tpu.matmul %31, %33, %cst_28 {dimension_numbers = #tpu.dot_dimension_numbers<[1], [0], [0], [1], [0, 0, 1, 1], [], []>} : vector<8x8xbf16>, vector<8x896xbf16>, vector<8x896xf32> -> vector<8x896xf32>
    %35 = arith.addf %30, %34 : vector<8x896xf32>
    %c0_29 = arith.constant 0 : index
    %c56 = arith.constant 56 : index
    %36 = vector.load %arg2[%c0_29, %c56] : memref<8x216xbf16, #tpu.memory_space<vmem>>, vector<8x8xbf16>
    %c0_30 = arith.constant 0 : index
    %c0_31 = arith.constant 0 : index
    %c21 = arith.constant 21 : index
    %37 = vector.load %arg1[%c0_30, %c0_31, %c21] : memref<1x8x1152xbf16, #tpu.memory_space<vmem>>, vector<1x8x896xbf16>
    %38 = vector.shape_cast %37 : vector<1x8x896xbf16> to vector<8x896xbf16>
    %cst_32 = arith.constant dense<0.000000e+00> : vector<8x896xf32>
    %39 = tpu.matmul %36, %38, %cst_32 {dimension_numbers = #tpu.dot_dimension_numbers<[1], [0], [0], [1], [0, 0, 1, 1], [], []>} : vector<8x8xbf16>, vector<8x896xbf16>, vector<8x896xf32> -> vector<8x896xf32>
    %40 = arith.addf %35, %39 : vector<8x896xf32>
    %c0_33 = arith.constant 0 : index
    %c64 = arith.constant 64 : index
    %41 = vector.load %arg2[%c0_33, %c64] : memref<8x216xbf16, #tpu.memory_space<vmem>>, vector<8x8xbf16>
    %c0_34 = arith.constant 0 : index
    %c0_35 = arith.constant 0 : index
    %c22 = arith.constant 22 : index
    %42 = vector.load %arg1[%c0_34, %c0_35, %c22] : memref<1x8x1152xbf16, #tpu.memory_space<vmem>>, vector<1x8x896xbf16>
    %43 = vector.shape_cast %42 : vector<1x8x896xbf16> to vector<8x896xbf16>
    %cst_36 = arith.constant dense<0.000000e+00> : vector<8x896xf32>
    %44 = tpu.matmul %41, %43, %cst_36 {dimension_numbers = #tpu.dot_dimension_numbers<[1], [0], [0], [1], [0, 0, 1, 1], [], []>} : vector<8x8xbf16>, vector<8x896xbf16>, vector<8x896xf32> -> vector<8x896xf32>
    %45 = arith.addf %40, %44 : vector<8x896xf32>
    %c0_37 = arith.constant 0 : index
    %c72 = arith.constant 72 : index
    %46 = vector.load %arg2[%c0_37, %c72] : memref<8x216xbf16, #tpu.memory_space<vmem>>, vector<8x8xbf16>
    %c0_38 = arith.constant 0 : index
    %c0_39 = arith.constant 0 : index
    %c100 = arith.constant 100 : index
    %47 = vector.load %arg1[%c0_38, %c0_39, %c100] : memref<1x8x1152xbf16, #tpu.memory_space<vmem>>, vector<1x8x896xbf16>
    %48 = vector.shape_cast %47 : vector<1x8x896xbf16> to vector<8x896xbf16>
    %cst_40 = arith.constant dense<0.000000e+00> : vector<8x896xf32>
    %49 = tpu.matmul %46, %48, %cst_40 {dimension_numbers = #tpu.dot_dimension_numbers<[1], [0], [0], [1], [0, 0, 1, 1], [], []>} : vector<8x8xbf16>, vector<8x896xbf16>, vector<8x896xf32> -> vector<8x896xf32>
    %50 = arith.addf %45, %49 : vector<8x896xf32>
    %c0_41 = arith.constant 0 : index
    %c80 = arith.constant 80 : index
    %51 = vector.load %arg2[%c0_41, %c80] : memref<8x216xbf16, #tpu.memory_space<vmem>>, vector<8x8xbf16>
    %c0_42 = arith.constant 0 : index
    %c0_43 = arith.constant 0 : index
    %c101 = arith.constant 101 : index
    %52 = vector.load %arg1[%c0_42, %c0_43, %c101] : memref<1x8x1152xbf16, #tpu.memory_space<vmem>>, vector<1x8x896xbf16>
    %53 = vector.shape_cast %52 : vector<1x8x896xbf16> to vector<8x896xbf16>
    %cst_44 = arith.constant dense<0.000000e+00> : vector<8x896xf32>
    %54 = tpu.matmul %51, %53, %cst_44 {dimension_numbers = #tpu.dot_dimension_numbers<[1], [0], [0], [1], [0, 0, 1, 1], [], []>} : vector<8x8xbf16>, vector<8x896xbf16>, vector<8x896xf32> -> vector<8x896xf32>
    %55 = arith.addf %50, %54 : vector<8x896xf32>
    %c0_45 = arith.constant 0 : index
    %c88 = arith.constant 88 : index
    %56 = vector.load %arg2[%c0_45, %c88] : memref<8x216xbf16, #tpu.memory_space<vmem>>, vector<8x8xbf16>
    %c0_46 = arith.constant 0 : index
    %c0_47 = arith.constant 0 : index
    %c102 = arith.constant 102 : index
    %57 = vector.load %arg1[%c0_46, %c0_47, %c102] : memref<1x8x1152xbf16, #tpu.memory_space<vmem>>, vector<1x8x896xbf16>
    %58 = vector.shape_cast %57 : vector<1x8x896xbf16> to vector<8x896xbf16>
    %cst_48 = arith.constant dense<0.000000e+00> : vector<8x896xf32>
    %59 = tpu.matmul %56, %58, %cst_48 {dimension_numbers = #tpu.dot_dimension_numbers<[1], [0], [0], [1], [0, 0, 1, 1], [], []>} : vector<8x8xbf16>, vector<8x896xbf16>, vector<8x896xf32> -> vector<8x896xf32>
    %60 = arith.addf %55, %59 : vector<8x896xf32>
    %c0_49 = arith.constant 0 : index
    %c96 = arith.constant 96 : index
    %61 = vector.load %arg2[%c0_49, %c96] : memref<8x216xbf16, #tpu.memory_space<vmem>>, vector<8x8xbf16>
    %c0_50 = arith.constant 0 : index
    %c0_51 = arith.constant 0 : index
    %c110 = arith.constant 110 : index
    %62 = vector.load %arg1[%c0_50, %c0_51, %c110] : memref<1x8x1152xbf16, #tpu.memory_space<vmem>>, vector<1x8x896xbf16>
    %63 = vector.shape_cast %62 : vector<1x8x896xbf16> to vector<8x896xbf16>
    %cst_52 = arith.constant dense<0.000000e+00> : vector<8x896xf32>
    %64 = tpu.matmul %61, %63, %cst_52 {dimension_numbers = #tpu.dot_dimension_numbers<[1], [0], [0], [1], [0, 0, 1, 1], [], []>} : vector<8x8xbf16>, vector<8x896xbf16>, vector<8x896xf32> -> vector<8x896xf32>
    %65 = arith.addf %60, %64 : vector<8x896xf32>
    %c0_53 = arith.constant 0 : index
    %c104 = arith.constant 104 : index
    %66 = vector.load %arg2[%c0_53, %c104] : memref<8x216xbf16, #tpu.memory_space<vmem>>, vector<8x8xbf16>
    %c0_54 = arith.constant 0 : index
    %c0_55 = arith.constant 0 : index
    %c111 = arith.constant 111 : index
    %67 = vector.load %arg1[%c0_54, %c0_55, %c111] : memref<1x8x1152xbf16, #tpu.memory_space<vmem>>, vector<1x8x896xbf16>
    %68 = vector.shape_cast %67 : vector<1x8x896xbf16> to vector<8x896xbf16>
    %cst_56 = arith.constant dense<0.000000e+00> : vector<8x896xf32>
    %69 = tpu.matmul %66, %68, %cst_56 {dimension_numbers = #tpu.dot_dimension_numbers<[1], [0], [0], [1], [0, 0, 1, 1], [], []>} : vector<8x8xbf16>, vector<8x896xbf16>, vector<8x896xf32> -> vector<8x896xf32>
    %70 = arith.addf %65, %69 : vector<8x896xf32>
    %c0_57 = arith.constant 0 : index
    %c112 = arith.constant 112 : index
    %71 = vector.load %arg2[%c0_57, %c112] : memref<8x216xbf16, #tpu.memory_space<vmem>>, vector<8x8xbf16>
    %c0_58 = arith.constant 0 : index
    %c0_59 = arith.constant 0 : index
    %c112_60 = arith.constant 112 : index
    %72 = vector.load %arg1[%c0_58, %c0_59, %c112_60] : memref<1x8x1152xbf16, #tpu.memory_space<vmem>>, vector<1x8x896xbf16>
    %73 = vector.shape_cast %72 : vector<1x8x896xbf16> to vector<8x896xbf16>
    %cst_61 = arith.constant dense<0.000000e+00> : vector<8x896xf32>
    %74 = tpu.matmul %71, %73, %cst_61 {dimension_numbers = #tpu.dot_dimension_numbers<[1], [0], [0], [1], [0, 0, 1, 1], [], []>} : vector<8x8xbf16>, vector<8x896xbf16>, vector<8x896xf32> -> vector<8x896xf32>
    %75 = arith.addf %70, %74 : vector<8x896xf32>
    %c0_62 = arith.constant 0 : index
    %c120 = arith.constant 120 : index
    %76 = vector.load %arg2[%c0_62, %c120] : memref<8x216xbf16, #tpu.memory_space<vmem>>, vector<8x8xbf16>
    %c0_63 = arith.constant 0 : index
    %c0_64 = arith.constant 0 : index
    %c120_65 = arith.constant 120 : index
    %77 = vector.load %arg1[%c0_63, %c0_64, %c120_65] : memref<1x8x1152xbf16, #tpu.memory_space<vmem>>, vector<1x8x896xbf16>
    %78 = vector.shape_cast %77 : vector<1x8x896xbf16> to vector<8x896xbf16>
    %cst_66 = arith.constant dense<0.000000e+00> : vector<8x896xf32>
    %79 = tpu.matmul %76, %78, %cst_66 {dimension_numbers = #tpu.dot_dimension_numbers<[1], [0], [0], [1], [0, 0, 1, 1], [], []>} : vector<8x8xbf16>, vector<8x896xbf16>, vector<8x896xf32> -> vector<8x896xf32>
    %80 = arith.addf %75, %79 : vector<8x896xf32>
    %c0_67 = arith.constant 0 : index
    %c128 = arith.constant 128 : index
    %81 = vector.load %arg2[%c0_67, %c128] : memref<8x216xbf16, #tpu.memory_space<vmem>>, vector<8x8xbf16>
    %c0_68 = arith.constant 0 : index
    %c0_69 = arith.constant 0 : index
    %c121 = arith.constant 121 : index
    %82 = vector.load %arg1[%c0_68, %c0_69, %c121] : memref<1x8x1152xbf16, #tpu.memory_space<vmem>>, vector<1x8x896xbf16>
    %83 = vector.shape_cast %82 : vector<1x8x896xbf16> to vector<8x896xbf16>
    %cst_70 = arith.constant dense<0.000000e+00> : vector<8x896xf32>
    %84 = tpu.matmul %81, %83, %cst_70 {dimension_numbers = #tpu.dot_dimension_numbers<[1], [0], [0], [1], [0, 0, 1, 1], [], []>} : vector<8x8xbf16>, vector<8x896xbf16>, vector<8x896xf32> -> vector<8x896xf32>
    %85 = arith.addf %80, %84 : vector<8x896xf32>
    %c0_71 = arith.constant 0 : index
    %c136 = arith.constant 136 : index
    %86 = vector.load %arg2[%c0_71, %c136] : memref<8x216xbf16, #tpu.memory_space<vmem>>, vector<8x8xbf16>
    %c0_72 = arith.constant 0 : index
    %c0_73 = arith.constant 0 : index
    %c122 = arith.constant 122 : index
    %87 = vector.load %arg1[%c0_72, %c0_73, %c122] : memref<1x8x1152xbf16, #tpu.memory_space<vmem>>, vector<1x8x896xbf16>
    %88 = vector.shape_cast %87 : vector<1x8x896xbf16> to vector<8x896xbf16>
    %cst_74 = arith.constant dense<0.000000e+00> : vector<8x896xf32>
    %89 = tpu.matmul %86, %88, %cst_74 {dimension_numbers = #tpu.dot_dimension_numbers<[1], [0], [0], [1], [0, 0, 1, 1], [], []>} : vector<8x8xbf16>, vector<8x896xbf16>, vector<8x896xf32> -> vector<8x896xf32>
    %90 = arith.addf %85, %89 : vector<8x896xf32>
    %c0_75 = arith.constant 0 : index
    %c144 = arith.constant 144 : index
    %91 = vector.load %arg2[%c0_75, %c144] : memref<8x216xbf16, #tpu.memory_space<vmem>>, vector<8x8xbf16>
    %c0_76 = arith.constant 0 : index
    %c0_77 = arith.constant 0 : index
    %c200 = arith.constant 200 : index
    %92 = vector.load %arg1[%c0_76, %c0_77, %c200] : memref<1x8x1152xbf16, #tpu.memory_space<vmem>>, vector<1x8x896xbf16>
    %93 = vector.shape_cast %92 : vector<1x8x896xbf16> to vector<8x896xbf16>
    %cst_78 = arith.constant dense<0.000000e+00> : vector<8x896xf32>
    %94 = tpu.matmul %91, %93, %cst_78 {dimension_numbers = #tpu.dot_dimension_numbers<[1], [0], [0], [1], [0, 0, 1, 1], [], []>} : vector<8x8xbf16>, vector<8x896xbf16>, vector<8x896xf32> -> vector<8x896xf32>
    %95 = arith.addf %90, %94 : vector<8x896xf32>
    %c0_79 = arith.constant 0 : index
    %c152 = arith.constant 152 : index
    %96 = vector.load %arg2[%c0_79, %c152] : memref<8x216xbf16, #tpu.memory_space<vmem>>, vector<8x8xbf16>
    %c0_80 = arith.constant 0 : index
    %c0_81 = arith.constant 0 : index
    %c201 = arith.constant 201 : index
    %97 = vector.load %arg1[%c0_80, %c0_81, %c201] : memref<1x8x1152xbf16, #tpu.memory_space<vmem>>, vector<1x8x896xbf16>
    %98 = vector.shape_cast %97 : vector<1x8x896xbf16> to vector<8x896xbf16>
    %cst_82 = arith.constant dense<0.000000e+00> : vector<8x896xf32>
    %99 = tpu.matmul %96, %98, %cst_82 {dimension_numbers = #tpu.dot_dimension_numbers<[1], [0], [0], [1], [0, 0, 1, 1], [], []>} : vector<8x8xbf16>, vector<8x896xbf16>, vector<8x896xf32> -> vector<8x896xf32>
    %100 = arith.addf %95, %99 : vector<8x896xf32>
    %c0_83 = arith.constant 0 : index
    %c160 = arith.constant 160 : index
    %101 = vector.load %arg2[%c0_83, %c160] : memref<8x216xbf16, #tpu.memory_space<vmem>>, vector<8x8xbf16>
    %c0_84 = arith.constant 0 : index
    %c0_85 = arith.constant 0 : index
    %c202 = arith.constant 202 : index
    %102 = vector.load %arg1[%c0_84, %c0_85, %c202] : memref<1x8x1152xbf16, #tpu.memory_space<vmem>>, vector<1x8x896xbf16>
    %103 = vector.shape_cast %102 : vector<1x8x896xbf16> to vector<8x896xbf16>
    %cst_86 = arith.constant dense<0.000000e+00> : vector<8x896xf32>
    %104 = tpu.matmul %101, %103, %cst_86 {dimension_numbers = #tpu.dot_dimension_numbers<[1], [0], [0], [1], [0, 0, 1, 1], [], []>} : vector<8x8xbf16>, vector<8x896xbf16>, vector<8x896xf32> -> vector<8x896xf32>
    %105 = arith.addf %100, %104 : vector<8x896xf32>
    %c0_87 = arith.constant 0 : index
    %c168 = arith.constant 168 : index
    %106 = vector.load %arg2[%c0_87, %c168] : memref<8x216xbf16, #tpu.memory_space<vmem>>, vector<8x8xbf16>
    %c0_88 = arith.constant 0 : index
    %c0_89 = arith.constant 0 : index
    %c210 = arith.constant 210 : index
    %107 = vector.load %arg1[%c0_88, %c0_89, %c210] : memref<1x8x1152xbf16, #tpu.memory_space<vmem>>, vector<1x8x896xbf16>
    %108 = vector.shape_cast %107 : vector<1x8x896xbf16> to vector<8x896xbf16>
    %cst_90 = arith.constant dense<0.000000e+00> : vector<8x896xf32>
    %109 = tpu.matmul %106, %108, %cst_90 {dimension_numbers = #tpu.dot_dimension_numbers<[1], [0], [0], [1], [0, 0, 1, 1], [], []>} : vector<8x8xbf16>, vector<8x896xbf16>, vector<8x896xf32> -> vector<8x896xf32>
    %110 = arith.addf %105, %109 : vector<8x896xf32>
    %c0_91 = arith.constant 0 : index
    %c176 = arith.constant 176 : index
    %111 = vector.load %arg2[%c0_91, %c176] : memref<8x216xbf16, #tpu.memory_space<vmem>>, vector<8x8xbf16>
    %c0_92 = arith.constant 0 : index
    %c0_93 = arith.constant 0 : index
    %c211 = arith.constant 211 : index
    %112 = vector.load %arg1[%c0_92, %c0_93, %c211] : memref<1x8x1152xbf16, #tpu.memory_space<vmem>>, vector<1x8x896xbf16>
    %113 = vector.shape_cast %112 : vector<1x8x896xbf16> to vector<8x896xbf16>
    %cst_94 = arith.constant dense<0.000000e+00> : vector<8x896xf32>
    %114 = tpu.matmul %111, %113, %cst_94 {dimension_numbers = #tpu.dot_dimension_numbers<[1], [0], [0], [1], [0, 0, 1, 1], [], []>} : vector<8x8xbf16>, vector<8x896xbf16>, vector<8x896xf32> -> vector<8x896xf32>
    %115 = arith.addf %110, %114 : vector<8x896xf32>
    %c0_95 = arith.constant 0 : index
    %c184 = arith.constant 184 : index
    %116 = vector.load %arg2[%c0_95, %c184] : memref<8x216xbf16, #tpu.memory_space<vmem>>, vector<8x8xbf16>
    %c0_96 = arith.constant 0 : index
    %c0_97 = arith.constant 0 : index
    %c212 = arith.constant 212 : index
    %117 = vector.load %arg1[%c0_96, %c0_97, %c212] : memref<1x8x1152xbf16, #tpu.memory_space<vmem>>, vector<1x8x896xbf16>
    %118 = vector.shape_cast %117 : vector<1x8x896xbf16> to vector<8x896xbf16>
    %cst_98 = arith.constant dense<0.000000e+00> : vector<8x896xf32>
    %119 = tpu.matmul %116, %118, %cst_98 {dimension_numbers = #tpu.dot_dimension_numbers<[1], [0], [0], [1], [0, 0, 1, 1], [], []>} : vector<8x8xbf16>, vector<8x896xbf16>, vector<8x896xf32> -> vector<8x896xf32>
    %120 = arith.addf %115, %119 : vector<8x896xf32>
    %c0_99 = arith.constant 0 : index
    %c192 = arith.constant 192 : index
    %121 = vector.load %arg2[%c0_99, %c192] : memref<8x216xbf16, #tpu.memory_space<vmem>>, vector<8x8xbf16>
    %c0_100 = arith.constant 0 : index
    %c0_101 = arith.constant 0 : index
    %c220 = arith.constant 220 : index
    %122 = vector.load %arg1[%c0_100, %c0_101, %c220] : memref<1x8x1152xbf16, #tpu.memory_space<vmem>>, vector<1x8x896xbf16>
    %123 = vector.shape_cast %122 : vector<1x8x896xbf16> to vector<8x896xbf16>
    %cst_102 = arith.constant dense<0.000000e+00> : vector<8x896xf32>
    %124 = tpu.matmul %121, %123, %cst_102 {dimension_numbers = #tpu.dot_dimension_numbers<[1], [0], [0], [1], [0, 0, 1, 1], [], []>} : vector<8x8xbf16>, vector<8x896xbf16>, vector<8x896xf32> -> vector<8x896xf32>
    %125 = arith.addf %120, %124 : vector<8x896xf32>
    %c0_103 = arith.constant 0 : index
    %c200_104 = arith.constant 200 : index
    %126 = vector.load %arg2[%c0_103, %c200_104] : memref<8x216xbf16, #tpu.memory_space<vmem>>, vector<8x8xbf16>
    %c0_105 = arith.constant 0 : index
    %c0_106 = arith.constant 0 : index
    %c221 = arith.constant 221 : index
    %127 = vector.load %arg1[%c0_105, %c0_106, %c221] : memref<1x8x1152xbf16, #tpu.memory_space<vmem>>, vector<1x8x896xbf16>
    %128 = vector.shape_cast %127 : vector<1x8x896xbf16> to vector<8x896xbf16>
    %cst_107 = arith.constant dense<0.000000e+00> : vector<8x896xf32>
    %129 = tpu.matmul %126, %128, %cst_107 {dimension_numbers = #tpu.dot_dimension_numbers<[1], [0], [0], [1], [0, 0, 1, 1], [], []>} : vector<8x8xbf16>, vector<8x896xbf16>, vector<8x896xf32> -> vector<8x896xf32>
    %130 = arith.addf %125, %129 : vector<8x896xf32>
    %c0_108 = arith.constant 0 : index
    %c208 = arith.constant 208 : index
    %131 = vector.load %arg2[%c0_108, %c208] : memref<8x216xbf16, #tpu.memory_space<vmem>>, vector<8x8xbf16>
    %c0_109 = arith.constant 0 : index
    %c0_110 = arith.constant 0 : index
    %c222 = arith.constant 222 : index
    %132 = vector.load %arg1[%c0_109, %c0_110, %c222] : memref<1x8x1152xbf16, #tpu.memory_space<vmem>>, vector<1x8x896xbf16>
    %133 = vector.shape_cast %132 : vector<1x8x896xbf16> to vector<8x896xbf16>
    %cst_111 = arith.constant dense<0.000000e+00> : vector<8x896xf32>
    %134 = tpu.matmul %131, %133, %cst_111 {dimension_numbers = #tpu.dot_dimension_numbers<[1], [0], [0], [1], [0, 0, 1, 1], [], []>} : vector<8x8xbf16>, vector<8x896xbf16>, vector<8x896xf32> -> vector<8x896xf32>
    %135 = arith.addf %130, %134 : vector<8x896xf32>
    %c0_112 = arith.constant 0 : index
    %c0_113 = arith.constant 0 : index
    %136 = vector.load %arg4[%c0_112, %c0_113] : memref<8x1xf32, #tpu.memory_space<vmem>>, vector<8x1xf32>
    %137 = vector.broadcast %136 : vector<8x1xf32> to vector<8x896xf32>
    %138 = arith.mulf %135, %137 : vector<8x896xf32>
    %c0_114 = arith.constant 0 : index
    %c0_115 = arith.constant 0 : index
    %139 = vector.load %arg5[%c0_114, %c0_115] : memref<8x1xf32, #tpu.memory_space<vmem>>, vector<8x1xf32>
    %140 = vector.broadcast %139 : vector<8x1xf32> to vector<8x896xf32>
    %141 = arith.addf %138, %140 : vector<8x896xf32>
    %cst_116 = arith.constant 0.000000e+00 : f32
    %142 = vector.broadcast %cst_116 : f32 to vector<8x896xf32>
    %143 = arith.maximumf %141, %142 : vector<8x896xf32>
    %cst_117 = arith.constant 0.000000e+00 : bf16
    %144 = vector.broadcast %cst_117 : bf16 to vector<8x128xbf16>
    %c0_118 = arith.constant 0 : index
    %c0_119 = arith.constant 0 : index
    %145 = vector.load %arg10[%c0_118, %c0_119] : memref<8x1152xbf16, #tpu.memory_space<vmem>>, vector<8x128xbf16>
    tpu.vector_store %arg10[%c0_118, %c0_119], %144 {strides = array<i32>} : memref<8x1152xbf16, #tpu.memory_space<vmem>>, vector<8x128xbf16>,
    %cst_120 = arith.constant 0.000000e+00 : bf16
    %146 = vector.broadcast %cst_120 : bf16 to vector<8x128xbf16>
    %c0_121 = arith.constant 0 : index
    %c1024 = arith.constant 1024 : index
    %147 = vector.load %arg10[%c0_121, %c1024] : memref<8x1152xbf16, #tpu.memory_space<vmem>>, vector<8x128xbf16>
    tpu.vector_store %arg10[%c0_121, %c1024], %146 {strides = array<i32>} : memref<8x1152xbf16, #tpu.memory_space<vmem>>, vector<8x128xbf16>,
    %c0_122 = arith.constant 0 : index
    %c0_123 = arith.constant 0 : index
    %148 = vector.load %arg8[%c0_122, %c0_123] : memref<1x896xf32, #tpu.memory_space<vmem>>, vector<1x896xf32>
    %149 = vector.broadcast %148 : vector<1x896xf32> to vector<8x896xf32>
    %150 = arith.mulf %143, %149 : vector<8x896xf32>
    %151 = arith.truncf %150 : vector<8x896xf32> to vector<8x896xbf16>
    %c0_124 = arith.constant 0 : index
    %c128_125 = arith.constant 128 : index
    %152 = vector.load %arg10[%c0_124, %c128_125] : memref<8x1152xbf16, #tpu.memory_space<vmem>>, vector<8x896xbf16>
    tpu.vector_store %arg10[%c0_124, %c128_125], %151 {strides = array<i32>} : memref<8x1152xbf16, #tpu.memory_space<vmem>>, vector<8x896xbf16>,
    %cst_126 = arith.constant 0.000000e+00 : f32
    %153 = vector.broadcast %cst_126 : f32 to vector<8x896xf32>
    %c0_127 = arith.constant 0 : index
    %c0_128 = arith.constant 0 : index
    %154 = vector.load %arg3[%c0_127, %c0_128] : memref<8x216xbf16, #tpu.memory_space<vmem>>, vector<8x8xbf16>
    %c0_129 = arith.constant 0 : index
    %c17 = arith.constant 17 : index
    %155 = vector.load %arg10[%c0_129, %c17] : memref<8x1152xbf16, #tpu.memory_space<vmem>>, vector<8x896xbf16>
    %cst_130 = arith.constant dense<0.000000e+00> : vector<8x896xf32>
    %156 = tpu.matmul %154, %155, %cst_130 {dimension_numbers = #tpu.dot_dimension_numbers<[1], [0], [0], [1], [0, 0, 1, 1], [], []>} : vector<8x8xbf16>, vector<8x896xbf16>, vector<8x896xf32> -> vector<8x896xf32>
    %157 = arith.addf %153, %156 : vector<8x896xf32>
    %c0_131 = arith.constant 0 : index
    %c8_132 = arith.constant 8 : index
    %158 = vector.load %arg3[%c0_131, %c8_132] : memref<8x216xbf16, #tpu.memory_space<vmem>>, vector<8x8xbf16>
    %c0_133 = arith.constant 0 : index
    %c18 = arith.constant 18 : index
    %159 = vector.load %arg10[%c0_133, %c18] : memref<8x1152xbf16, #tpu.memory_space<vmem>>, vector<8x896xbf16>
    %cst_134 = arith.constant dense<0.000000e+00> : vector<8x896xf32>
    %160 = tpu.matmul %158, %159, %cst_134 {dimension_numbers = #tpu.dot_dimension_numbers<[1], [0], [0], [1], [0, 0, 1, 1], [], []>} : vector<8x8xbf16>, vector<8x896xbf16>, vector<8x896xf32> -> vector<8x896xf32>
    %161 = arith.addf %157, %160 : vector<8x896xf32>
    %c0_135 = arith.constant 0 : index
    %c16_136 = arith.constant 16 : index
    %162 = vector.load %arg3[%c0_135, %c16_136] : memref<8x216xbf16, #tpu.memory_space<vmem>>, vector<8x8xbf16>
    %c0_137 = arith.constant 0 : index
    %c19 = arith.constant 19 : index
    %163 = vector.load %arg10[%c0_137, %c19] : memref<8x1152xbf16, #tpu.memory_space<vmem>>, vector<8x896xbf16>
    %cst_138 = arith.constant dense<0.000000e+00> : vector<8x896xf32>
    %164 = tpu.matmul %162, %163, %cst_138 {dimension_numbers = #tpu.dot_dimension_numbers<[1], [0], [0], [1], [0, 0, 1, 1], [], []>} : vector<8x8xbf16>, vector<8x896xbf16>, vector<8x896xf32> -> vector<8x896xf32>
    %165 = arith.addf %161, %164 : vector<8x896xf32>
    %c0_139 = arith.constant 0 : index
    %c24_140 = arith.constant 24 : index
    %166 = vector.load %arg3[%c0_139, %c24_140] : memref<8x216xbf16, #tpu.memory_space<vmem>>, vector<8x8xbf16>
    %c0_141 = arith.constant 0 : index
    %c27 = arith.constant 27 : index
    %167 = vector.load %arg10[%c0_141, %c27] : memref<8x1152xbf16, #tpu.memory_space<vmem>>, vector<8x896xbf16>
    %cst_142 = arith.constant dense<0.000000e+00> : vector<8x896xf32>
    %168 = tpu.matmul %166, %167, %cst_142 {dimension_numbers = #tpu.dot_dimension_numbers<[1], [0], [0], [1], [0, 0, 1, 1], [], []>} : vector<8x8xbf16>, vector<8x896xbf16>, vector<8x896xf32> -> vector<8x896xf32>
    %169 = arith.addf %165, %168 : vector<8x896xf32>
    %c0_143 = arith.constant 0 : index
    %c32_144 = arith.constant 32 : index
    %170 = vector.load %arg3[%c0_143, %c32_144] : memref<8x216xbf16, #tpu.memory_space<vmem>>, vector<8x8xbf16>
    %c0_145 = arith.constant 0 : index
    %c28 = arith.constant 28 : index
    %171 = vector.load %arg10[%c0_145, %c28] : memref<8x1152xbf16, #tpu.memory_space<vmem>>, vector<8x896xbf16>
    %cst_146 = arith.constant dense<0.000000e+00> : vector<8x896xf32>
    %172 = tpu.matmul %170, %171, %cst_146 {dimension_numbers = #tpu.dot_dimension_numbers<[1], [0], [0], [1], [0, 0, 1, 1], [], []>} : vector<8x8xbf16>, vector<8x896xbf16>, vector<8x896xf32> -> vector<8x896xf32>
    %173 = arith.addf %169, %172 : vector<8x896xf32>
    %c0_147 = arith.constant 0 : index
    %c40_148 = arith.constant 40 : index
    %174 = vector.load %arg3[%c0_147, %c40_148] : memref<8x216xbf16, #tpu.memory_space<vmem>>, vector<8x8xbf16>
    %c0_149 = arith.constant 0 : index
    %c29 = arith.constant 29 : index
    %175 = vector.load %arg10[%c0_149, %c29] : memref<8x1152xbf16, #tpu.memory_space<vmem>>, vector<8x896xbf16>
    %cst_150 = arith.constant dense<0.000000e+00> : vector<8x896xf32>
    %176 = tpu.matmul %174, %175, %cst_150 {dimension_numbers = #tpu.dot_dimension_numbers<[1], [0], [0], [1], [0, 0, 1, 1], [], []>} : vector<8x8xbf16>, vector<8x896xbf16>, vector<8x896xf32> -> vector<8x896xf32>
    %177 = arith.addf %173, %176 : vector<8x896xf32>
    %c0_151 = arith.constant 0 : index
    %c48_152 = arith.constant 48 : index
    %178 = vector.load %arg3[%c0_151, %c48_152] : memref<8x216xbf16, #tpu.memory_space<vmem>>, vector<8x8xbf16>
    %c0_153 = arith.constant 0 : index
    %c37 = arith.constant 37 : index
    %179 = vector.load %arg10[%c0_153, %c37] : memref<8x1152xbf16, #tpu.memory_space<vmem>>, vector<8x896xbf16>
    %cst_154 = arith.constant dense<0.000000e+00> : vector<8x896xf32>
    %180 = tpu.matmul %178, %179, %cst_154 {dimension_numbers = #tpu.dot_dimension_numbers<[1], [0], [0], [1], [0, 0, 1, 1], [], []>} : vector<8x8xbf16>, vector<8x896xbf16>, vector<8x896xf32> -> vector<8x896xf32>
    %181 = arith.addf %177, %180 : vector<8x896xf32>
    %c0_155 = arith.constant 0 : index
    %c56_156 = arith.constant 56 : index
    %182 = vector.load %arg3[%c0_155, %c56_156] : memref<8x216xbf16, #tpu.memory_space<vmem>>, vector<8x8xbf16>
    %c0_157 = arith.constant 0 : index
    %c38 = arith.constant 38 : index
    %183 = vector.load %arg10[%c0_157, %c38] : memref<8x1152xbf16, #tpu.memory_space<vmem>>, vector<8x896xbf16>
    %cst_158 = arith.constant dense<0.000000e+00> : vector<8x896xf32>
    %184 = tpu.matmul %182, %183, %cst_158 {dimension_numbers = #tpu.dot_dimension_numbers<[1], [0], [0], [1], [0, 0, 1, 1], [], []>} : vector<8x8xbf16>, vector<8x896xbf16>, vector<8x896xf32> -> vector<8x896xf32>
    %185 = arith.addf %181, %184 : vector<8x896xf32>
    %c0_159 = arith.constant 0 : index
    %c64_160 = arith.constant 64 : index
    %186 = vector.load %arg3[%c0_159, %c64_160] : memref<8x216xbf16, #tpu.memory_space<vmem>>, vector<8x8xbf16>
    %c0_161 = arith.constant 0 : index
    %c39 = arith.constant 39 : index
    %187 = vector.load %arg10[%c0_161, %c39] : memref<8x1152xbf16, #tpu.memory_space<vmem>>, vector<8x896xbf16>
    %cst_162 = arith.constant dense<0.000000e+00> : vector<8x896xf32>
    %188 = tpu.matmul %186, %187, %cst_162 {dimension_numbers = #tpu.dot_dimension_numbers<[1], [0], [0], [1], [0, 0, 1, 1], [], []>} : vector<8x8xbf16>, vector<8x896xbf16>, vector<8x896xf32> -> vector<8x896xf32>
    %189 = arith.addf %185, %188 : vector<8x896xf32>
    %c0_163 = arith.constant 0 : index
    %c72_164 = arith.constant 72 : index
    %190 = vector.load %arg3[%c0_163, %c72_164] : memref<8x216xbf16, #tpu.memory_space<vmem>>, vector<8x8xbf16>
    %c0_165 = arith.constant 0 : index
    %c117 = arith.constant 117 : index
    %191 = vector.load %arg10[%c0_165, %c117] : memref<8x1152xbf16, #tpu.memory_space<vmem>>, vector<8x896xbf16>
    %cst_166 = arith.constant dense<0.000000e+00> : vector<8x896xf32>
    %192 = tpu.matmul %190, %191, %cst_166 {dimension_numbers = #tpu.dot_dimension_numbers<[1], [0], [0], [1], [0, 0, 1, 1], [], []>} : vector<8x8xbf16>, vector<8x896xbf16>, vector<8x896xf32> -> vector<8x896xf32>
    %193 = arith.addf %189, %192 : vector<8x896xf32>
    %c0_167 = arith.constant 0 : index
    %c80_168 = arith.constant 80 : index
    %194 = vector.load %arg3[%c0_167, %c80_168] : memref<8x216xbf16, #tpu.memory_space<vmem>>, vector<8x8xbf16>
    %c0_169 = arith.constant 0 : index
    %c118 = arith.constant 118 : index
    %195 = vector.load %arg10[%c0_169, %c118] : memref<8x1152xbf16, #tpu.memory_space<vmem>>, vector<8x896xbf16>
    %cst_170 = arith.constant dense<0.000000e+00> : vector<8x896xf32>
    %196 = tpu.matmul %194, %195, %cst_170 {dimension_numbers = #tpu.dot_dimension_numbers<[1], [0], [0], [1], [0, 0, 1, 1], [], []>} : vector<8x8xbf16>, vector<8x896xbf16>, vector<8x896xf32> -> vector<8x896xf32>
    %197 = arith.addf %193, %196 : vector<8x896xf32>
    %c0_171 = arith.constant 0 : index
    %c88_172 = arith.constant 88 : index
    %198 = vector.load %arg3[%c0_171, %c88_172] : memref<8x216xbf16, #tpu.memory_space<vmem>>, vector<8x8xbf16>
    %c0_173 = arith.constant 0 : index
    %c119 = arith.constant 119 : index
    %199 = vector.load %arg10[%c0_173, %c119] : memref<8x1152xbf16, #tpu.memory_space<vmem>>, vector<8x896xbf16>
    %cst_174 = arith.constant dense<0.000000e+00> : vector<8x896xf32>
    %200 = tpu.matmul %198, %199, %cst_174 {dimension_numbers = #tpu.dot_dimension_numbers<[1], [0], [0], [1], [0, 0, 1, 1], [], []>} : vector<8x8xbf16>, vector<8x896xbf16>, vector<8x896xf32> -> vector<8x896xf32>
    %201 = arith.addf %197, %200 : vector<8x896xf32>
    %c0_175 = arith.constant 0 : index
    %c96_176 = arith.constant 96 : index
    %202 = vector.load %arg3[%c0_175, %c96_176] : memref<8x216xbf16, #tpu.memory_space<vmem>>, vector<8x8xbf16>
    %c0_177 = arith.constant 0 : index
    %c127 = arith.constant 127 : index
    %203 = vector.load %arg10[%c0_177, %c127] : memref<8x1152xbf16, #tpu.memory_space<vmem>>, vector<8x896xbf16>
    %cst_178 = arith.constant dense<0.000000e+00> : vector<8x896xf32>
    %204 = tpu.matmul %202, %203, %cst_178 {dimension_numbers = #tpu.dot_dimension_numbers<[1], [0], [0], [1], [0, 0, 1, 1], [], []>} : vector<8x8xbf16>, vector<8x896xbf16>, vector<8x896xf32> -> vector<8x896xf32>
    %205 = arith.addf %201, %204 : vector<8x896xf32>
    %c0_179 = arith.constant 0 : index
    %c104_180 = arith.constant 104 : index
    %206 = vector.load %arg3[%c0_179, %c104_180] : memref<8x216xbf16, #tpu.memory_space<vmem>>, vector<8x8xbf16>
    %c0_181 = arith.constant 0 : index
    %c128_182 = arith.constant 128 : index
    %207 = vector.load %arg10[%c0_181, %c128_182] : memref<8x1152xbf16, #tpu.memory_space<vmem>>, vector<8x896xbf16>
    %cst_183 = arith.constant dense<0.000000e+00> : vector<8x896xf32>
    %208 = tpu.matmul %206, %207, %cst_183 {dimension_numbers = #tpu.dot_dimension_numbers<[1], [0], [0], [1], [0, 0, 1, 1], [], []>} : vector<8x8xbf16>, vector<8x896xbf16>, vector<8x896xf32> -> vector<8x896xf32>
    %209 = arith.addf %205, %208 : vector<8x896xf32>
    %c0_184 = arith.constant 0 : index
    %c112_185 = arith.constant 112 : index
    %210 = vector.load %arg3[%c0_184, %c112_185] : memref<8x216xbf16, #tpu.memory_space<vmem>>, vector<8x8xbf16>
    %c0_186 = arith.constant 0 : index
    %c129 = arith.constant 129 : index
    %211 = vector.load %arg10[%c0_186, %c129] : memref<8x1152xbf16, #tpu.memory_space<vmem>>, vector<8x896xbf16>
    %cst_187 = arith.constant dense<0.000000e+00> : vector<8x896xf32>
    %212 = tpu.matmul %210, %211, %cst_187 {dimension_numbers = #tpu.dot_dimension_numbers<[1], [0], [0], [1], [0, 0, 1, 1], [], []>} : vector<8x8xbf16>, vector<8x896xbf16>, vector<8x896xf32> -> vector<8x896xf32>
    %213 = arith.addf %209, %212 : vector<8x896xf32>
    %c0_188 = arith.constant 0 : index
    %c120_189 = arith.constant 120 : index
    %214 = vector.load %arg3[%c0_188, %c120_189] : memref<8x216xbf16, #tpu.memory_space<vmem>>, vector<8x8xbf16>
    %c0_190 = arith.constant 0 : index
    %c137 = arith.constant 137 : index
    %215 = vector.load %arg10[%c0_190, %c137] : memref<8x1152xbf16, #tpu.memory_space<vmem>>, vector<8x896xbf16>
    %cst_191 = arith.constant dense<0.000000e+00> : vector<8x896xf32>
    %216 = tpu.matmul %214, %215, %cst_191 {dimension_numbers = #tpu.dot_dimension_numbers<[1], [0], [0], [1], [0, 0, 1, 1], [], []>} : vector<8x8xbf16>, vector<8x896xbf16>, vector<8x896xf32> -> vector<8x896xf32>
    %217 = arith.addf %213, %216 : vector<8x896xf32>
    %c0_192 = arith.constant 0 : index
    %c128_193 = arith.constant 128 : index
    %218 = vector.load %arg3[%c0_192, %c128_193] : memref<8x216xbf16, #tpu.memory_space<vmem>>, vector<8x8xbf16>
    %c0_194 = arith.constant 0 : index
    %c138 = arith.constant 138 : index
    %219 = vector.load %arg10[%c0_194, %c138] : memref<8x1152xbf16, #tpu.memory_space<vmem>>, vector<8x896xbf16>
    %cst_195 = arith.constant dense<0.000000e+00> : vector<8x896xf32>
    %220 = tpu.matmul %218, %219, %cst_195 {dimension_numbers = #tpu.dot_dimension_numbers<[1], [0], [0], [1], [0, 0, 1, 1], [], []>} : vector<8x8xbf16>, vector<8x896xbf16>, vector<8x896xf32> -> vector<8x896xf32>
    %221 = arith.addf %217, %220 : vector<8x896xf32>
    %c0_196 = arith.constant 0 : index
    %c136_197 = arith.constant 136 : index
    %222 = vector.load %arg3[%c0_196, %c136_197] : memref<8x216xbf16, #tpu.memory_space<vmem>>, vector<8x8xbf16>
    %c0_198 = arith.constant 0 : index
    %c139 = arith.constant 139 : index
    %223 = vector.load %arg10[%c0_198, %c139] : memref<8x1152xbf16, #tpu.memory_space<vmem>>, vector<8x896xbf16>
    %cst_199 = arith.constant dense<0.000000e+00> : vector<8x896xf32>
    %224 = tpu.matmul %222, %223, %cst_199 {dimension_numbers = #tpu.dot_dimension_numbers<[1], [0], [0], [1], [0, 0, 1, 1], [], []>} : vector<8x8xbf16>, vector<8x896xbf16>, vector<8x896xf32> -> vector<8x896xf32>
    %225 = arith.addf %221, %224 : vector<8x896xf32>
    %c0_200 = arith.constant 0 : index
    %c144_201 = arith.constant 144 : index
    %226 = vector.load %arg3[%c0_200, %c144_201] : memref<8x216xbf16, #tpu.memory_space<vmem>>, vector<8x8xbf16>
    %c0_202 = arith.constant 0 : index
    %c217 = arith.constant 217 : index
    %227 = vector.load %arg10[%c0_202, %c217] : memref<8x1152xbf16, #tpu.memory_space<vmem>>, vector<8x896xbf16>
    %cst_203 = arith.constant dense<0.000000e+00> : vector<8x896xf32>
    %228 = tpu.matmul %226, %227, %cst_203 {dimension_numbers = #tpu.dot_dimension_numbers<[1], [0], [0], [1], [0, 0, 1, 1], [], []>} : vector<8x8xbf16>, vector<8x896xbf16>, vector<8x896xf32> -> vector<8x896xf32>
    %229 = arith.addf %225, %228 : vector<8x896xf32>
    %c0_204 = arith.constant 0 : index
    %c152_205 = arith.constant 152 : index
    %230 = vector.load %arg3[%c0_204, %c152_205] : memref<8x216xbf16, #tpu.memory_space<vmem>>, vector<8x8xbf16>
    %c0_206 = arith.constant 0 : index
    %c218 = arith.constant 218 : index
    %231 = vector.load %arg10[%c0_206, %c218] : memref<8x1152xbf16, #tpu.memory_space<vmem>>, vector<8x896xbf16>
    %cst_207 = arith.constant dense<0.000000e+00> : vector<8x896xf32>
    %232 = tpu.matmul %230, %231, %cst_207 {dimension_numbers = #tpu.dot_dimension_numbers<[1], [0], [0], [1], [0, 0, 1, 1], [], []>} : vector<8x8xbf16>, vector<8x896xbf16>, vector<8x896xf32> -> vector<8x896xf32>
    %233 = arith.addf %229, %232 : vector<8x896xf32>
    %c0_208 = arith.constant 0 : index
    %c160_209 = arith.constant 160 : index
    %234 = vector.load %arg3[%c0_208, %c160_209] : memref<8x216xbf16, #tpu.memory_space<vmem>>, vector<8x8xbf16>
    %c0_210 = arith.constant 0 : index
    %c219 = arith.constant 219 : index
    %235 = vector.load %arg10[%c0_210, %c219] : memref<8x1152xbf16, #tpu.memory_space<vmem>>, vector<8x896xbf16>
    %cst_211 = arith.constant dense<0.000000e+00> : vector<8x896xf32>
    %236 = tpu.matmul %234, %235, %cst_211 {dimension_numbers = #tpu.dot_dimension_numbers<[1], [0], [0], [1], [0, 0, 1, 1], [], []>} : vector<8x8xbf16>, vector<8x896xbf16>, vector<8x896xf32> -> vector<8x896xf32>
    %237 = arith.addf %233, %236 : vector<8x896xf32>
    %c0_212 = arith.constant 0 : index
    %c168_213 = arith.constant 168 : index
    %238 = vector.load %arg3[%c0_212, %c168_213] : memref<8x216xbf16, #tpu.memory_space<vmem>>, vector<8x8xbf16>
    %c0_214 = arith.constant 0 : index
    %c227 = arith.constant 227 : index
    %239 = vector.load %arg10[%c0_214, %c227] : memref<8x1152xbf16, #tpu.memory_space<vmem>>, vector<8x896xbf16>
    %cst_215 = arith.constant dense<0.000000e+00> : vector<8x896xf32>
    %240 = tpu.matmul %238, %239, %cst_215 {dimension_numbers = #tpu.dot_dimension_numbers<[1], [0], [0], [1], [0, 0, 1, 1], [], []>} : vector<8x8xbf16>, vector<8x896xbf16>, vector<8x896xf32> -> vector<8x896xf32>
    %241 = arith.addf %237, %240 : vector<8x896xf32>
    %c0_216 = arith.constant 0 : index
    %c176_217 = arith.constant 176 : index
    %242 = vector.load %arg3[%c0_216, %c176_217] : memref<8x216xbf16, #tpu.memory_space<vmem>>, vector<8x8xbf16>
    %c0_218 = arith.constant 0 : index
    %c228 = arith.constant 228 : index
    %243 = vector.load %arg10[%c0_218, %c228] : memref<8x1152xbf16, #tpu.memory_space<vmem>>, vector<8x896xbf16>
    %cst_219 = arith.constant dense<0.000000e+00> : vector<8x896xf32>
    %244 = tpu.matmul %242, %243, %cst_219 {dimension_numbers = #tpu.dot_dimension_numbers<[1], [0], [0], [1], [0, 0, 1, 1], [], []>} : vector<8x8xbf16>, vector<8x896xbf16>, vector<8x896xf32> -> vector<8x896xf32>
    %245 = arith.addf %241, %244 : vector<8x896xf32>
    %c0_220 = arith.constant 0 : index
    %c184_221 = arith.constant 184 : index
    %246 = vector.load %arg3[%c0_220, %c184_221] : memref<8x216xbf16, #tpu.memory_space<vmem>>, vector<8x8xbf16>
    %c0_222 = arith.constant 0 : index
    %c229 = arith.constant 229 : index
    %247 = vector.load %arg10[%c0_222, %c229] : memref<8x1152xbf16, #tpu.memory_space<vmem>>, vector<8x896xbf16>
    %cst_223 = arith.constant dense<0.000000e+00> : vector<8x896xf32>
    %248 = tpu.matmul %246, %247, %cst_223 {dimension_numbers = #tpu.dot_dimension_numbers<[1], [0], [0], [1], [0, 0, 1, 1], [], []>} : vector<8x8xbf16>, vector<8x896xbf16>, vector<8x896xf32> -> vector<8x896xf32>
    %249 = arith.addf %245, %248 : vector<8x896xf32>
    %c0_224 = arith.constant 0 : index
    %c192_225 = arith.constant 192 : index
    %250 = vector.load %arg3[%c0_224, %c192_225] : memref<8x216xbf16, #tpu.memory_space<vmem>>, vector<8x8xbf16>
    %c0_226 = arith.constant 0 : index
    %c237 = arith.constant 237 : index
    %251 = vector.load %arg10[%c0_226, %c237] : memref<8x1152xbf16, #tpu.memory_space<vmem>>, vector<8x896xbf16>
    %cst_227 = arith.constant dense<0.000000e+00> : vector<8x896xf32>
    %252 = tpu.matmul %250, %251, %cst_227 {dimension_numbers = #tpu.dot_dimension_numbers<[1], [0], [0], [1], [0, 0, 1, 1], [], []>} : vector<8x8xbf16>, vector<8x896xbf16>, vector<8x896xf32> -> vector<8x896xf32>
    %253 = arith.addf %249, %252 : vector<8x896xf32>
    %c0_228 = arith.constant 0 : index
    %c200_229 = arith.constant 200 : index
    %254 = vector.load %arg3[%c0_228, %c200_229] : memref<8x216xbf16, #tpu.memory_space<vmem>>, vector<8x8xbf16>
    %c0_230 = arith.constant 0 : index
    %c238 = arith.constant 238 : index
    %255 = vector.load %arg10[%c0_230, %c238] : memref<8x1152xbf16, #tpu.memory_space<vmem>>, vector<8x896xbf16>
    %cst_231 = arith.constant dense<0.000000e+00> : vector<8x896xf32>
    %256 = tpu.matmul %254, %255, %cst_231 {dimension_numbers = #tpu.dot_dimension_numbers<[1], [0], [0], [1], [0, 0, 1, 1], [], []>} : vector<8x8xbf16>, vector<8x896xbf16>, vector<8x896xf32> -> vector<8x896xf32>
    %257 = arith.addf %253, %256 : vector<8x896xf32>
    %c0_232 = arith.constant 0 : index
    %c208_233 = arith.constant 208 : index
    %258 = vector.load %arg3[%c0_232, %c208_233] : memref<8x216xbf16, #tpu.memory_space<vmem>>, vector<8x8xbf16>
    %c0_234 = arith.constant 0 : index
    %c239 = arith.constant 239 : index
    %259 = vector.load %arg10[%c0_234, %c239] : memref<8x1152xbf16, #tpu.memory_space<vmem>>, vector<8x896xbf16>
    %cst_235 = arith.constant dense<0.000000e+00> : vector<8x896xf32>
    %260 = tpu.matmul %258, %259, %cst_235 {dimension_numbers = #tpu.dot_dimension_numbers<[1], [0], [0], [1], [0, 0, 1, 1], [], []>} : vector<8x8xbf16>, vector<8x896xbf16>, vector<8x896xf32> -> vector<8x896xf32>
    %261 = arith.addf %257, %260 : vector<8x896xf32>
    %c0_236 = arith.constant 0 : index
    %c0_237 = arith.constant 0 : index
    %262 = vector.load %arg6[%c0_236, %c0_237] : memref<8x1xf32, #tpu.memory_space<vmem>>, vector<8x1xf32>
    %263 = vector.broadcast %262 : vector<8x1xf32> to vector<8x896xf32>
    %264 = arith.mulf %261, %263 : vector<8x896xf32>
    %c0_238 = arith.constant 0 : index
    %c0_239 = arith.constant 0 : index
    %265 = vector.load %arg7[%c0_238, %c0_239] : memref<8x1xf32, #tpu.memory_space<vmem>>, vector<8x1xf32>
    %266 = vector.broadcast %265 : vector<8x1xf32> to vector<8x896xf32>
    %267 = arith.addf %264, %266 : vector<8x896xf32>
    %c0_240 = arith.constant 0 : index
    %c0_241 = arith.constant 0 : index
    %c111_242 = arith.constant 111 : index
    %268 = vector.load %arg1[%c0_240, %c0_241, %c111_242] : memref<1x8x1152xbf16, #tpu.memory_space<vmem>>, vector<1x8x896xbf16>
    %269 = vector.shape_cast %268 : vector<1x8x896xbf16> to vector<8x896xbf16>
    %270 = arith.extf %269 : vector<8x896xbf16> to vector<8x896xf32>
    %271 = arith.addf %267, %270 : vector<8x896xf32>
    %cst_243 = arith.constant 0.000000e+00 : f32
    %272 = vector.broadcast %cst_243 : f32 to vector<8x896xf32>
    %273 = arith.maximumf %271, %272 : vector<8x896xf32>
    %c0_244 = arith.constant 0 : index
    %c0_245 = arith.constant 0 : index
    %c0_246 = arith.constant 0 : index
    %274 = vector.load %arg9[%c0_244, %c0_245, %c0_246] : memref<1x8x896xf32, #tpu.memory_space<vmem>>, vector<1x8x896xf32>
    %275 = vector.shape_cast %274 : vector<1x8x896xf32> to vector<8x896xf32>
    %276 = vector.shape_cast %273 : vector<8x896xf32> to vector<1x8x896xf32>
    tpu.vector_store %arg9[%c0_244, %c0_245, %c0_246], %276 {strides = array<i32>} : memref<1x8x896xf32, #tpu.memory_space<vmem>>, vector<1x8x896xf32>,
    return
  }
  func.func @transform_0(%arg0: i32) -> (i32, i32, i32) {
    %c0_i32 = arith.constant 0 : i32
    %c0_i32_0 = arith.constant 0 : i32
    %c0_i32_1 = arith.constant 0 : i32
    return %arg0, %c0_i32, %c0_i32_0 : i32, i32, i32
  }
  func.func @transform_1(%arg0: i32) -> (i32, i32) {
    %c0_i32 = arith.constant 0 : i32
    %c0_i32_0 = arith.constant 0 : i32
    %c0_i32_1 = arith.constant 0 : i32
    return %c0_i32, %c0_i32_0 : i32, i32
  }
  func.func @transform_2(%arg0: i32) -> (i32, i32) {
    %c0_i32 = arith.constant 0 : i32
    %c0_i32_0 = arith.constant 0 : i32
    %c0_i32_1 = arith.constant 0 : i32
    return %c0_i32, %c0_i32_0 : i32, i32
  }
  func.func @transform_3(%arg0: i32) -> (i32, i32) {
    %c0_i32 = arith.constant 0 : i32
    %c0_i32_0 = arith.constant 0 : i32
    %c0_i32_1 = arith.constant 0 : i32
    return %c0_i32, %c0_i32_0 : i32, i32
  }
  func.func @transform_4(%arg0: i32) -> (i32, i32) {
    %c0_i32 = arith.constant 0 : i32
    %c0_i32_0 = arith.constant 0 : i32
    %c0_i32_1 = arith.constant 0 : i32
    return %c0_i32, %c0_i32_0 : i32, i32
  }
  func.func @transform_5(%arg0: i32) -> (i32, i32) {
    %c0_i32 = arith.constant 0 : i32
    %c0_i32_0 = arith.constant 0 : i32
    %c0_i32_1 = arith.constant 0 : i32
    return %c0_i32, %c0_i32_0 : i32, i32
  }
  func.func @transform_6(%arg0: i32) -> (i32, i32) {
    %c0_i32 = arith.constant 0 : i32
    %c0_i32_0 = arith.constant 0 : i32
    %c0_i32_1 = arith.constant 0 : i32
    return %c0_i32, %c0_i32_0 : i32, i32
  }
  func.func @transform_7(%arg0: i32) -> (i32, i32) {
    %c0_i32 = arith.constant 0 : i32
    %c0_i32_0 = arith.constant 0 : i32
    %c0_i32_1 = arith.constant 0 : i32
    return %c0_i32, %c0_i32_0 : i32, i32
  }
  func.func @transform_8(%arg0: i32) -> (i32, i32, i32) {
    %c0_i32 = arith.constant 0 : i32
    %c0_i32_0 = arith.constant 0 : i32
    %c0_i32_1 = arith.constant 0 : i32
    return %arg0, %c0_i32, %c0_i32_0 : i32, i32, i32
  }
}

</mosaic_0001>

<bundles_post_ra>
// kernel: basic_block_forward.1
= control target key start
LH: loop header
LB: loop body
LE: loop exit
PB: predicated region body
PF: predicated region fallthrough
CT: control target
= control target key end

     0   :  { %s14453_s27 = smov 0   ;;  %s17247_s0 = inlined_call_operand.vmem [shape: bf16[2,8,1152], index: 0, kind: input, shape index: {}]   ;;  %s17248_s1 = inlined_call_operand.vmem [shape: bf16[8,216], index: 1, kind: input, shape index: {}]   ;;  %s17249_s2 = inlined_call_operand.vmem [shape: bf16[8,216], index: 2, kind: input, shape index: {}]   ;;  %s17250_s3 = inlined_call_operand.vmem [shape: f32[8,1], index: 3, kind: input, shape index: {}]   ;;  %s17251_s4 = inlined_call_operand.vmem [shape: f32[8,1], index: 4, kind: input, shape index: {}]   ;;  %s17252_s5 = inlined_call_operand.vmem [shape: f32[8,1], index: 5, kind: input, shape index: {}]   ;;  %s17253_s6 = inlined_call_operand.vmem [shape: f32[8,1], index: 6, kind: input, shape index: {}]   ;;  %s17254_s7 = inlined_call_operand.vmem [shape: f32[1,896], index: 7, kind: input, shape index: {}]   ;;  %s17255_s8 = inlined_call_operand.vmem [shape: f32[2,8,896], index: 8, kind: output, shape index: {}]  }
   0x1 LB: > { %s12501_s28 = sadd.s32 4294967295, %s14346_s27   ;;  %p12505_p0 = scmp.ge.s32.totalorder %s14346_s27, 1  ;;  %s14346_s27 = sphi %s14453_s27, %s18_s27  }
   0x2   : > { %p262_p1 = scmp.lt.s32.totalorder %s14346_s27, 3 }
   0x4   : > { %p263_p2 = pnand %p12505_p0, %p262_p1 }
   0x5   : > { %v14464_v0 = vld [vmem:[%s17248_s1] sm:$0xf] (!%p263_p2)  ;;  %p296_p3 = scmp.lt.s32.totalorder (!%p263_p2), %s12501_s28, 1  ;;  %s14348_s9 = smov (!%p263_p2), 120   ;;  %v14349_v2 = vmov (!%p263_p2), 0   ;;  %vm354_vm0 = vcmask (!%p263_p2), 1039360  }
   0x6   : > { %266 = sbr.rel (%p263_p2) target bundleno = 1627 (0x65b), region = 52  ;;  %v14468_v1 = vcombine.low (!%p263_p2), %v14464_v0, %v14464_v0  ;;  %420 = vmatprep.mubr.bf16.mxu0 (!%p263_p2), %v14349_v2  ;;  %6300 = vst [vmem:[#allocation2] sm:$0xf] (!%p263_p2), %v14349_v2  ;;  %6301 = vst [vmem:[#allocation2 + $0x20] sm:$0xf] (!%p263_p2), %v14349_v2  ;;  %461 = vmatprep.mubr.bf16.mxu1 (!%p263_p2), %v14349_v2  ;;  %s14350_s14 = smov (!%p263_p2), 127  }
   0x7   : > { %14274 = vset.pattern.permute.xlu1 (!%p263_p2), %v14349_v2  ;;  %14275 = vset.pattern.permute.xlu0 (!%p263_p2), %v14349_v2  ;;  %s14351_s15 = smov (!%p263_p2), 126   ;;  %s17270_s16 = smov (!%p263_p2), 112   ;;  %vm366_vm1 = vcmask (!%p263_p2), 1043456   ;;  %vm362_vm2 = vcmask (!%p263_p2), 64512   ;;  %v14364_v32 = vmov (!%p263_p2), 0.0   ;;  %vm14365_vm3 = vmmov (!%p263_p2), 0  }
   0x8   : > { %316 = vrot.lane.b32.xlu1 (!%p263_p2), %v14468_v1, %s14348_s9  ;;  %s17266_s17 = smov (!%p263_p2), 118   ;;  %s17269_s18 = smov (!%p263_p2), 104   ;;  %vm759_vm4 = vcmask (!%p263_p2), 1031168   ;;  %vm979_vm5 = vcmask (!%p263_p2), 965632   ;;  %vm1199_vm6 = vcmask (!%p263_p2), 957440   ;;  %vm1419_vm7 = vcmask (!%p263_p2), 949248  }
   0x9   : > { %s17264_s19 = smov (!%p263_p2), 117   ;;  %s14356_s20 = smov (!%p263_p2), 96   ;;  %vm1639_vm8 = vcmask (!%p263_p2), 883712   ;;  %vm1859_vm9 = vcmask (!%p263_p2), 875520   ;;  %vm2079_vm10 = vcmask (!%p263_p2), 867328   ;;  %vm2299_vm11 = vcmask (!%p263_p2), 228352  }
   0xa   : > { %s14357_s21 = smov (!%p263_p2), 116   ;;  %s14358_s22 = smov (!%p263_p2), 88   ;;  %vm2519_vm12 = vcmask (!%p263_p2), 220160   ;;  %vm2739_vm13 = vcmask (!%p263_p2), 211968   ;;  %vm2959_vm14 = vcmask (!%p263_p2), 146432   ;;  %vm3179_vm15 = vcmask (!%p263_p2), 138240  }
   0xb   : > { %s14359_s23 = smov (!%p263_p2), 108   ;;  %s14360_s24 = smov (!%p263_p2), 80  }
   0xc   : > { %s14361_s25 = smov (!%p263_p2), 107   ;;  %s14362_s26 = smov (!%p263_p2), 72  }
   0xd   : > { %s17281_s28 = smov (!%p296_p3, %s12501_s28), 1  ;;  %s14363_s29 = smov 106  }
   0xe   : > { %s14204_s10 = smul.u32 36, %s17281_s28  ;;  %s14366_s30 = smov 64  }
   0xf   : > { %s14368_s11 = smov 56   ;;  %s17256_s12 = smov 27  }
  0x10   : > { %s14482_s13 = scalar_lea.vmem %s17247_s0, %s14204_s10  ;;  %s17262_s10 = smov 28  }
  0x11   : > { %v309_v3 = vld [vmem:[%s14482_s13 + $0x8] sm:$0xff]  ;;  %v308_v4 = vld [vmem:[%s14482_s13] sm:$0xff]  ;;  %v310_v5 = vld [vmem:[%s14482_s13 + $0x10] sm:$0xff] }
  0x12   : > { %v14489_v6 = vcombine.low %v309_v3, %v309_v3  ;;  %v14491_v7 = vcombine.low %v308_v4, %v308_v4  ;;  %v14497_v8 = vcombine.low %v310_v5, %v310_v5  ;;  %v14499_v9 = vcombine.high %v308_v4, %v308_v4  ;;  %v312_v10 = vld [vmem:[%s14482_s13 + $0x18] sm:$0xff] }
  0x13   : > { %v14506_v11 = vcombine.low %v312_v10, %v312_v10  ;;  %v14508_v12 = vcombine.high %v309_v3, %v309_v3  ;;  %v14514_v13 = vcombine.high %v310_v5, %v310_v5  ;;  %v14519_v14 = vcombine.high %v312_v10, %v312_v10  ;;  %v14305_v45 = vld [vmem:[%s14482_s13 + $0x18] ss:$0 sps:$4 sm:$0xff]  }
  0x14   : > { %342 = vrot.lane.b32.xlu1 %v14489_v6, %s14350_s14  ;;  %338 = vrot.lane.b32.xlu0 %v14491_v7, %s14350_s14  ;;  %v558_v37 = vsel %vm366_vm1, %v14491_v7, 0  ;;  %v564_v41 = vsel %vm366_vm1, %v14489_v6, 0  ;;  %v570_v44 = vsel %vm366_vm1, %v14497_v8, 0  ;;  %v576_v49 = vsel %vm366_vm1, %v14305_v45, 0 }
  0x18   : > { %346 = vrot.lane.b32.xlu1 %v14497_v8, %s14350_s14  ;;  %340 = vrot.lane.b32.xlu0 %v14499_v9, %s14350_s14 }
  0x1c   : > { %350 = vrot.lane.b32.xlu1 %v14506_v11, %s14350_s14  ;;  %344 = vrot.lane.b32.xlu0 %v14508_v12, %s14350_s14 }
  0x20   : > { %743 = vrot.lane.b32.xlu1 %v14491_v7, %s14351_s15  ;;  %348 = vrot.lane.b32.xlu0 %v14514_v13, %s14350_s14 }
  0x24   : > { %747 = vrot.lane.b32.xlu1 %v14489_v6, %s14351_s15  ;;  %352 = vrot.lane.b32.xlu0 %v14519_v14, %s14350_s14 }
  0x28   : > { %749 = vrot.lane.b32.xlu1 %v14508_v12, %s14351_s15  ;;  %745 = vrot.lane.b32.xlu0 %v14499_v9, %s14351_s15 }
  0x2c   : > { %753 = vrot.lane.b32.xlu1 %v14514_v13, %s14351_s15  ;;  %741 = vrot.lane.b32.xlu0 %v14468_v1, %s17270_s16 }
  0x30   : > { %757 = vrot.lane.b32.xlu1 %v14519_v14, %s14351_s15  ;;  %751 = vrot.lane.b32.xlu0 %v14497_v8, %s14351_s15 }
  0x34   : > { %965 = vrot.lane.b32.xlu1 %v14499_v9, %s17266_s17  ;;  %755 = vrot.lane.b32.xlu0 %v14506_v11, %s14351_s15  ;;  %s14370_s15 = smov 48  }
  0x38   : > { %961 = vrot.lane.b32.xlu1 %v14468_v1, %s17269_s18  ;;  %963 = vrot.lane.b32.xlu0 %v14491_v7, %s17266_s17 }
  0x3c   : > { %971 = vrot.lane.b32.xlu1 %v14497_v8, %s17266_s17  ;;  %967 = vrot.lane.b32.xlu0 %v14489_v6, %s17266_s17 }
  0x40   : > { %975 = vrot.lane.b32.xlu1 %v14506_v11, %s17266_s17  ;;  %969 = vrot.lane.b32.xlu0 %v14508_v12, %s17266_s17 }
  0x44   : > { %1183 = vrot.lane.b32.xlu1 %v14491_v7, %s17264_s19  ;;  %973 = vrot.lane.b32.xlu0 %v14514_v13, %s17266_s17 }
  0x48   : > { %1187 = vrot.lane.b32.xlu1 %v14489_v6, %s17264_s19  ;;  %977 = vrot.lane.b32.xlu0 %v14519_v14, %s17266_s17  ;;  %s14381_s17 = smov 55  }
  0x4c   : > { %1189 = vrot.lane.b32.xlu1 %v14508_v12, %s17264_s19  ;;  %1185 = vrot.lane.b32.xlu0 %v14499_v9, %s17264_s19 }
  0x50   : > { %1193 = vrot.lane.b32.xlu1 %v14514_v13, %s17264_s19  ;;  %1181 = vrot.lane.b32.xlu0 %v14468_v1, %s14356_s20 }
  0x54   : > { %1197 = vrot.lane.b32.xlu1 %v14519_v14, %s17264_s19  ;;  %1191 = vrot.lane.b32.xlu0 %v14497_v8, %s17264_s19 }
  0x58   : > { %1405 = vrot.lane.b32.xlu1 %v14499_v9, %s14357_s21  ;;  %1195 = vrot.lane.b32.xlu0 %v14506_v11, %s17264_s19  ;;  %s14380_s19 = smov 6  }
  0x5c   : > { %1401 = vrot.lane.b32.xlu1 %v14468_v1, %s14358_s22  ;;  %1403 = vrot.lane.b32.xlu0 %v14491_v7, %s14357_s21 }
  0x60   : > { %1411 = vrot.lane.b32.xlu1 %v14497_v8, %s14357_s21  ;;  %1407 = vrot.lane.b32.xlu0 %v14489_v6, %s14357_s21 }
  0x64   : > { %1415 = vrot.lane.b32.xlu1 %v14506_v11, %s14357_s21  ;;  %1409 = vrot.lane.b32.xlu0 %v14508_v12, %s14357_s21 }
  0x68   : > { %1623 = vrot.lane.b32.xlu1 %v14491_v7, %s14359_s23  ;;  %1413 = vrot.lane.b32.xlu0 %v14514_v13, %s14357_s21 }
  0x6c   : > { %1627 = vrot.lane.b32.xlu1 %v14489_v6, %s14359_s23  ;;  %1417 = vrot.lane.b32.xlu0 %v14519_v14, %s14357_s21  ;;  %s14371_s21 = smov 26  }
  0x70   : > { %1629 = vrot.lane.b32.xlu1 %v14508_v12, %s14359_s23  ;;  %1625 = vrot.lane.b32.xlu0 %v14499_v9, %s14359_s23 }
  0x74   : > { %1633 = vrot.lane.b32.xlu1 %v14514_v13, %s14359_s23  ;;  %1621 = vrot.lane.b32.xlu0 %v14468_v1, %s14360_s24 }
  0x78   : > { %1637 = vrot.lane.b32.xlu1 %v14519_v14, %s14359_s23  ;;  %1631 = vrot.lane.b32.xlu0 %v14497_v8, %s14359_s23 }
  0x7a   : > { %v14594_v15 = vpop.permute.xlu1 %316 }
  0x7c   : > { %1845 = vrot.lane.b32.xlu1 %v14499_v9, %s14361_s25  ;;  %1635 = vrot.lane.b32.xlu0 %v14506_v11, %s14359_s23  ;;  %s14372_s23 = smov 40  }
  0x80   : > { %1841 = vrot.lane.b32.xlu1 %v14468_v1, %s14362_s26  ;;  %1843 = vrot.lane.b32.xlu0 %v14491_v7, %s14361_s25 }
  0x84   : > { %1851 = vrot.lane.b32.xlu1 %v14497_v8, %s14361_s25  ;;  %1847 = vrot.lane.b32.xlu0 %v14489_v6, %s14361_s25 }
  0x86   : > { %v343_v16 = vpop.permute.xlu1 %342  ;;  %v339_v17 = vpop.permute.xlu0 %338 }
  0x88   : > { %1855 = vrot.lane.b32.xlu1 %v14506_v11, %s14361_s25  ;;  %1849 = vrot.lane.b32.xlu0 %v14508_v12, %s14361_s25 }
  0x8a   : > { %v347_v18 = vpop.permute.xlu1 %346  ;;  %v341_v19 = vpop.permute.xlu0 %340 }
  0x8b   : > { %v356_v20 = vsel %vm354_vm0, %v341_v19, %v343_v16  ;;  %v355_v21 = vsel %vm354_vm0, %v339_v17, %v341_v19 }
  0x8c   : > { %2063 = vrot.lane.b32.xlu1 %v14491_v7, %s14363_s29  ;;  %1853 = vrot.lane.b32.xlu0 %v14514_v13, %s14361_s25  ;;  %v368_v22 = vsel %vm366_vm1, %v355_v21, 0 }
  0x8d   : > { %12517 = vmatprep.subr.msk.bf16.mxu0 %vm366_vm1, %v356_v20 }
  0x8e   : > { %389 = vmatpush1.bf16.msra.mxu0 %v368_v22  ;;  %v351_v23 = vpop.permute.xlu1 %350  ;;  %v345_v24 = vpop.permute.xlu0 %344 }
  0x8f   : > { %v358_v25 = vsel %vm354_vm0, %v345_v24, %v347_v18  ;;  %v357_v26 = vsel %vm354_vm0, %v343_v16, %v345_v24 }
  0x90   : > { %2067 = vrot.lane.b32.xlu1 %v14489_v6, %s14363_s29  ;;  %1857 = vrot.lane.b32.xlu0 %v14519_v14, %s14361_s25  ;;  %v374_v27 = vsel %vm366_vm1, %v357_v26, 0  ;;  %s17258_s25 = smov 18  }
  0x91   : > { %12518 = vmatmul.mubr.msk.bf16.vlgmr.msra.gmra.mrb[0].mxu0 %vm362_vm2, %v14594_v15  ;;  %12519 = vmatprep.subr.msk.bf16.mxu1 %vm366_vm1, %v358_v25 }
  0x92   : > { %430 = vmatpush1.bf16.msra.mxu1 %v374_v27  ;;  %v744_v28 = vpop.permute.xlu1 %743  ;;  %v349_v29 = vpop.permute.xlu0 %348  ;;  %502 = vmatprep.mubr.bf16.mxu0 %v14349_v2 }
  0x93   : > { %v359_v30 = vsel %vm354_vm0, %v347_v18, %v349_v29  ;;  %v360_v31 = vsel %vm354_vm0, %v349_v29, %v351_v23  ;;  %13048 = vmatprep.subr.bf16.mxu1 %v14364_v32 }
  0x94   : > { %2069 = vrot.lane.b32.xlu1 %v14508_v12, %s14363_s29  ;;  %2065 = vrot.lane.b32.xlu0 %v14499_v9, %s14363_s29  ;;  %v380_v33 = vsel %vm366_vm1, %v359_v30, 0 }
  0x95   : > { %12520 = vmatmul.mubr.msk.bf16.vlgmr.msra.gmra.mrb[0].mxu1 %vm362_vm2, %v14594_v15  ;;  %12521 = vmatprep.subr.msk.bf16.mxu0 %vm366_vm1, %v360_v31 }
  0x96   : > { %471 = vmatpush1.bf16.msra.mxu0 %v380_v33  ;;  %v748_v34 = vpop.permute.xlu1 %747  ;;  %v353_v35 = vpop.permute.xlu0 %352  ;;  %13050 = vmatprep.mubr.msk.bf16.mxu1 %vm14365_vm3, %v14364_v32 }
  0x97   : > { %v361_v36 = vsel %vm354_vm0, %v351_v23, %v353_v35  ;;  %12525 = vmatprep.subr.msk.bf16.mxu0 %vm366_vm1, %v14499_v9 }
  0x98   : > { %v386_v38 = vsel %vm366_vm1, %v361_v36, 0  ;;  %2073 = vrot.lane.b32.xlu1 %v14514_v13, %s14363_s29  ;;  %2061 = vrot.lane.b32.xlu0 %v14468_v1, %s14366_s30 }
  0x99   : > { %12522 = vmatmul.mubr.msk.bf16.vlgmr.msra.gmra.mrb[4].mxu0 %vm362_vm2, %v14594_v15  ;;  %13049 = vmatpush3.bf16.msra.mxu1 %v386_v38 }
  0x9a   : > { %v750_v39 = vpop.permute.xlu1 %749  ;;  %v746_v40 = vpop.permute.xlu0 %745  ;;  %579 = vmatpush1.bf16.msra.mxu0 %v558_v37  ;;  %610 = vmatprep.mubr.bf16.mxu0 %v14349_v2 }
  0x9b   : > { %12527 = vmatprep.subr.msk.bf16.mxu1 %vm366_vm1, %v14508_v12  ;;  %12529 = vmatprep.subr.msk.bf16.mxu0 %vm366_vm1, %v14514_v13  ;;  %v761_v46 = vsel %vm759_vm4, %v746_v40, %v748_v34  ;;  %v760_v51 = vsel %vm759_vm4, %v744_v28, %v746_v40  ;;  %v762_v56 = vsel %vm759_vm4, %v748_v34, %v750_v39 }
  0x9c   : > { %2077 = vrot.lane.b32.xlu1 %v14519_v14, %s14363_s29  ;;  %2071 = vrot.lane.b32.xlu0 %v14497_v8, %s14363_s29  ;;  %v771_v55 = vsel %vm366_vm1, %v760_v51, 0  ;;  %v777_v59 = vsel %vm366_vm1, %v762_v56, 0 }
  0x9d   : > { %13051 = vmatmul.mubr.msk.bf16.vlgmr.msra.gmra.mrb[4].mxu1 %vm362_vm2, %v14594_v15 }
  0x9e   : > { %v754_v42 = vpop.permute.xlu1 %753  ;;  %v14661_v43 = vpop.permute.xlu0 %741  ;;  %620 = vmatpush1.bf16.msra.mxu1 %v564_v41  ;;  %651 = vmatprep.mubr.bf16.mxu1 %v14349_v2 }
  0x9f   : > { %13054 = vmatprep.subr.bf16.mxu1 %v14364_v32 }
  0xa0   : > { %2285 = vrot.lane.b32.xlu1 %v14499_v9, %s17262_s10  ;;  %2075 = vrot.lane.b32.xlu0 %v14506_v11, %s14363_s29  ;;  %s14374_s29 = smov 32  }
  0xa1   : > { %12526 = vmatmul.mubr.msk.bf16.vlgmr.msra.gmra.mrb[0].mxu0 %vm362_vm2, %v14464_v0 }
  0xa2   : > { %661 = vmatpush1.bf16.msra.mxu0 %v570_v44  ;;  %v758_v47 = vpop.permute.xlu1 %757  ;;  %v752_v48 = vpop.permute.xlu0 %751  ;;  %692 = vmatprep.mubr.bf16.mxu0 %v14349_v2 }
  0xa3   : > { %12532 = vmatprep.subr.msk.bf16.mxu0 %vm366_vm1, %v761_v46  ;;  %v763_v50 = vsel %vm759_vm4, %v750_v39, %v752_v48  ;;  %v764_v60 = vsel %vm759_vm4, %v752_v48, %v754_v42 }
  0xa4   : > { %2281 = vrot.lane.b32.xlu1 %v14468_v1, %s14368_s11  ;;  %2283 = vrot.lane.b32.xlu0 %v14491_v7, %s17262_s10 }
  0xa5   : > { %12528 = vmatmul.mubr.msk.bf16.vlgmr.msra.gmra.mrb[0].mxu1 %vm362_vm2, %v14464_v0 }
  0xa6   : > { %13055 = vmatpush3.bf16.msra.mxu1 %v576_v49  ;;  %v966_v52 = vpop.permute.xlu1 %965  ;;  %v756_v53 = vpop.permute.xlu0 %755  ;;  %13056 = vmatprep.mubr.msk.bf16.mxu1 %vm14365_vm3, %v14364_v32 }
  0xa7   : > { %12534 = vmatprep.subr.msk.bf16.mxu1 %vm366_vm1, %v763_v50  ;;  %v765_v54 = vsel %vm759_vm4, %v754_v42, %v756_v53  ;;  %v766_v3 = vsel %vm759_vm4, %v756_v53, %v758_v47  ;;  %vm3399_vm4 = vcmask 130048  }
  0xa8   : > { %2291 = vrot.lane.b32.xlu1 %v14497_v8, %s17262_s10  ;;  %2287 = vrot.lane.b32.xlu0 %v14489_v6, %s17262_s10  ;;  %v789_v15 = vsel %vm366_vm1, %v766_v3, 0 }
  0xa9   : > { %12530 = vmatmul.mubr.msk.bf16.vlgmr.msra.gmra.mrb[4].mxu0 %vm362_vm2, %v14464_v0 }
  0xaa   : > { %792 = vmatpush1.bf16.msra.mxu0 %v771_v55  ;;  %v14698_v57 = vpop.permute.xlu1 %961  ;;  %v964_v58 = vpop.permute.xlu0 %963  ;;  %823 = vmatprep.mubr.bf16.mxu0 %v14349_v2 }
  0xab   : > { %12536 = vmatprep.subr.msk.bf16.mxu0 %vm366_vm1, %v765_v54  ;;  %v980_v16 = vsel %vm979_vm5, %v964_v58, %v966_v52 }
  0xac   : > { %2295 = vrot.lane.b32.xlu1 %v14506_v11, %s17262_s10  ;;  %2289 = vrot.lane.b32.xlu0 %v14508_v12, %s17262_s10  ;;  %v991_v20 = vsel %vm366_vm1, %v980_v16, 0 }
  0xad   : > { %13057 = vmatmul.mubr.msk.bf16.vlgmr.msra.gmra.mrb[4].mxu1 %vm362_vm2, %v14464_v0  ;;  %v783_v0 = vsel %vm366_vm1, %v764_v60, 0 }
  0xae   : > { %833 = vmatpush1.bf16.msra.mxu1 %v777_v59  ;;  %v972_v61 = vpop.permute.xlu1 %971  ;;  %v968_v62 = vpop.permute.xlu0 %967  ;;  %864 = vmatprep.mubr.bf16.mxu1 %v14349_v2 }
  0xaf   : > { %13060 = vmatprep.subr.bf16.mxu1 %v14364_v32  ;;  %v981_v63 = vsel %vm979_vm5, %v966_v52, %v968_v62 }
  0xb0   : > { %2503 = vrot.lane.b32.xlu1 %v14491_v7, %s17256_s12  ;;  %2293 = vrot.lane.b32.xlu0 %v14514_v13, %s17262_s10 }
  0xb1   : > { %12533 = vmatmul.mubr.msk.bf16.vlgmr.msra.gmra.mrb[0].mxu0 %vm362_vm2, %v14661_v43 }
  0xb2   : > { %874 = vmatpush1.bf16.msra.mxu0 %v783_v0  ;;  %v976_v4 = vpop.permute.xlu1 %975  ;;  %v970_v5 = vpop.permute.xlu0 %969  ;;  %905 = vmatprep.mubr.bf16.mxu0 %v14349_v2 }
  0xb3   : > { %12539 = vmatprep.subr.msk.bf16.mxu0 %vm366_vm1, %v981_v63  ;;  %v983_v10 = vsel %vm979_vm5, %v970_v5, %v972_v61  ;;  %v982_v21 = vsel %vm979_vm5, %v968_v62, %v970_v5 }
  0xb4   : > { %2507 = vrot.lane.b32.xlu1 %v14489_v6, %s17256_s12  ;;  %2297 = vrot.lane.b32.xlu0 %v14519_v14, %s17262_s10  ;;  %v997_v24 = vsel %vm366_vm1, %v982_v21, 0  ;;  %s14379_s10 = smov 7  }
  0xb5   : > { %12535 = vmatmul.mubr.msk.bf16.vlgmr.msra.gmra.mrb[0].mxu1 %vm362_vm2, %v14661_v43 }
  0xb6   : > { %13061 = vmatpush3.bf16.msra.mxu1 %v789_v15  ;;  %v1184_v17 = vpop.permute.xlu1 %1183  ;;  %v974_v18 = vpop.permute.xlu0 %973  ;;  %13062 = vmatprep.mubr.msk.bf16.mxu1 %vm14365_vm3, %v14364_v32 }
  0xb7   : > { %12541 = vmatprep.subr.msk.bf16.mxu1 %vm366_vm1, %v983_v10  ;;  %v985_v19 = vsel %vm979_vm5, %v974_v18, %v976_v4  ;;  %v984_v25 = vsel %vm979_vm5, %v972_v61, %v974_v18 }
  0xb8   : > { %2509 = vrot.lane.b32.xlu1 %v14508_v12, %s17256_s12  ;;  %2505 = vrot.lane.b32.xlu0 %v14499_v9, %s17256_s12  ;;  %v1003_v29 = vsel %vm366_vm1, %v984_v25, 0 }
  0xb9   : > { %12537 = vmatmul.mubr.msk.bf16.vlgmr.msra.gmra.mrb[4].mxu0 %vm362_vm2, %v14661_v43 }
  0xba   : > { %1012 = vmatpush1.bf16.msra.mxu0 %v991_v20  ;;  %v1188_v22 = vpop.permute.xlu1 %1187  ;;  %v978_v23 = vpop.permute.xlu0 %977  ;;  %1043 = vmatprep.mubr.bf16.mxu0 %v14349_v2 }
  0xbb   : > { %12543 = vmatprep.subr.msk.bf16.mxu0 %vm366_vm1, %v985_v19  ;;  %v986_v30 = vsel %vm979_vm5, %v976_v4, %v978_v23 }
  0xbc   : > { %2513 = vrot.lane.b32.xlu1 %v14514_v13, %s17256_s12  ;;  %2501 = vrot.lane.b32.xlu0 %v14468_v1, %s14370_s15  ;;  %v1009_v34 = vsel %vm366_vm1, %v986_v30, 0 }
  0xbd   : > { %13063 = vmatmul.mubr.msk.bf16.vlgmr.msra.gmra.mrb[4].mxu1 %vm362_vm2, %v14661_v43 }
  0xbe   : > { %1053 = vmatpush1.bf16.msra.mxu1 %v997_v24  ;;  %v1190_v26 = vpop.permute.xlu1 %1189  ;;  %v1186_v27 = vpop.permute.xlu0 %1185  ;;  %1084 = vmatprep.mubr.bf16.mxu1 %v14349_v2 }
  0xbf   : > { %13066 = vmatprep.subr.bf16.mxu1 %v14364_v32  ;;  %v1201_v28 = vsel %vm1199_vm6, %v1186_v27, %v1188_v22  ;;  %v1200_v35 = vsel %vm1199_vm6, %v1184_v17, %v1186_v27  ;;  %v1202_v40 = vsel %vm1199_vm6, %v1188_v22, %v1190_v26 }
  0xc0   : > { %2517 = vrot.lane.b32.xlu1 %v14519_v14, %s17256_s12  ;;  %2511 = vrot.lane.b32.xlu0 %v14497_v8, %s17256_s12  ;;  %v1211_v39 = vsel %vm366_vm1, %v1200_v35, 0  ;;  %v1217_v44 = vsel %vm366_vm1, %v1202_v40, 0 }
  0xc1   : > { %12540 = vmatmul.mubr.msk.bf16.vlgmr.msra.gmra.mrb[0].mxu0 %vm362_vm2, %v14698_v57 }
  0xc2   : > { %1094 = vmatpush1.bf16.msra.mxu0 %v1003_v29  ;;  %v1194_v31 = vpop.permute.xlu1 %1193  ;;  %v14765_v33 = vpop.permute.xlu0 %1181  ;;  %1125 = vmatprep.mubr.bf16.mxu0 %v14349_v2 }
  0xc3   : > { %12546 = vmatprep.subr.msk.bf16.mxu0 %vm366_vm1, %v1201_v28 }
  0xc4   : > { %2725 = vrot.lane.b32.xlu1 %v14499_v9, %s14371_s21  ;;  %2515 = vrot.lane.b32.xlu0 %v14506_v11, %s17256_s12  ;;  %s14376_s12 = smov 24  }
  0xc5   : > { %12542 = vmatmul.mubr.msk.bf16.vlgmr.msra.gmra.mrb[0].mxu1 %vm362_vm2, %v14698_v57 }
  0xc6   : > { %13067 = vmatpush3.bf16.msra.mxu1 %v1009_v34  ;;  %v1198_v36 = vpop.permute.xlu1 %1197  ;;  %v1192_v37 = vpop.permute.xlu0 %1191  ;;  %13068 = vmatprep.mubr.msk.bf16.mxu1 %vm14365_vm3, %v14364_v32 }
  0xc7   : > { %v1203_v38 = vsel %vm1199_vm6, %v1190_v26, %v1192_v37  ;;  %v1204_v45 = vsel %vm1199_vm6, %v1192_v37, %v1194_v31 }
  0xc8   : > { %2721 = vrot.lane.b32.xlu1 %v14468_v1, %s14372_s23  ;;  %2723 = vrot.lane.b32.xlu0 %v14491_v7, %s14371_s21  ;;  %v1223_v48 = vsel %vm366_vm1, %v1204_v45, 0 }
  0xc9   : > { %12544 = vmatmul.mubr.msk.bf16.vlgmr.msra.gmra.mrb[4].mxu0 %vm362_vm2, %v14698_v57  ;;  %12548 = vmatprep.subr.msk.bf16.mxu1 %vm366_vm1, %v1203_v38 }
  0xca   : > { %1232 = vmatpush1.bf16.msra.mxu0 %v1211_v39  ;;  %v1406_v41 = vpop.permute.xlu1 %1405  ;;  %v1196_v42 = vpop.permute.xlu0 %1195  ;;  %1263 = vmatprep.mubr.bf16.mxu0 %v14349_v2 }
  0xcb   : > { %v1205_v43 = vsel %vm1199_vm6, %v1194_v31, %v1196_v42  ;;  %v1206_v49 = vsel %vm1199_vm6, %v1196_v42, %v1198_v36 }
  0xcc   : > { %2731 = vrot.lane.b32.xlu1 %v14497_v8, %s14371_s21  ;;  %2727 = vrot.lane.b32.xlu0 %v14489_v6, %s14371_s21  ;;  %v1229_v53 = vsel %vm366_vm1, %v1206_v49, 0 }
  0xcd   : > { %13069 = vmatmul.mubr.msk.bf16.vlgmr.msra.gmra.mrb[4].mxu1 %vm362_vm2, %v14698_v57  ;;  %12550 = vmatprep.subr.msk.bf16.mxu0 %vm366_vm1, %v1205_v43 }
  0xce   : > { %1273 = vmatpush1.bf16.msra.mxu1 %v1217_v44  ;;  %v14800_v46 = vpop.permute.xlu1 %1401  ;;  %v1404_v47 = vpop.permute.xlu0 %1403  ;;  %1304 = vmatprep.mubr.bf16.mxu1 %v14349_v2 }
  0xcf   : > { %13072 = vmatprep.subr.bf16.mxu1 %v14364_v32  ;;  %v1420_v54 = vsel %vm1419_vm7, %v1404_v47, %v1406_v41 }
  0xd0   : > { %2735 = vrot.lane.b32.xlu1 %v14506_v11, %s14371_s21  ;;  %2729 = vrot.lane.b32.xlu0 %v14508_v12, %s14371_s21  ;;  %v1431_v58 = vsel %vm366_vm1, %v1420_v54, 0 }
  0xd1   : > { %12547 = vmatmul.mubr.msk.bf16.vlgmr.msra.gmra.mrb[0].mxu0 %vm362_vm2, %v14765_v33 }
  0xd2   : > { %1314 = vmatpush1.bf16.msra.mxu0 %v1223_v48  ;;  %v1412_v50 = vpop.permute.xlu1 %1411  ;;  %v1408_v51 = vpop.permute.xlu0 %1407  ;;  %1345 = vmatprep.mubr.bf16.mxu0 %v14349_v2 }
  0xd3   : > { %v1421_v52 = vsel %vm1419_vm7, %v1406_v41, %v1408_v51 }
  0xd4   : > { %2943 = vrot.lane.b32.xlu1 %v14491_v7, %s17258_s25  ;;  %2733 = vrot.lane.b32.xlu0 %v14514_v13, %s14371_s21 }
  0xd5   : > { %12549 = vmatmul.mubr.msk.bf16.vlgmr.msra.gmra.mrb[0].mxu1 %vm362_vm2, %v14765_v33  ;;  %12553 = vmatprep.subr.msk.bf16.mxu0 %vm366_vm1, %v1421_v52 }
  0xd6   : > { %13073 = vmatpush3.bf16.msra.mxu1 %v1229_v53  ;;  %v1416_v55 = vpop.permute.xlu1 %1415  ;;  %v1410_v56 = vpop.permute.xlu0 %1409  ;;  %13074 = vmatprep.mubr.msk.bf16.mxu1 %vm14365_vm3, %v14364_v32 }
  0xd7   : > { %v1423_v57 = vsel %vm1419_vm7, %v1410_v56, %v1412_v50  ;;  %v1422_v59 = vsel %vm1419_vm7, %v1408_v51, %v1410_v56 }
  0xd8   : > { %2947 = vrot.lane.b32.xlu1 %v14489_v6, %s17258_s25  ;;  %2737 = vrot.lane.b32.xlu0 %v14519_v14, %s14371_s21  ;;  %v1437_v63 = vsel %vm366_vm1, %v1422_v59, 0  ;;  %s17260_s21 = smov 17  }
  0xd9   : > { %12551 = vmatmul.mubr.msk.bf16.vlgmr.msra.gmra.mrb[4].mxu0 %vm362_vm2, %v14765_v33  ;;  %12555 = vmatprep.subr.msk.bf16.mxu1 %vm366_vm1, %v1423_v57 }
  0xda   : > { %1452 = vmatpush1.bf16.msra.mxu0 %v1431_v58  ;;  %v1624_v60 = vpop.permute.xlu1 %1623  ;;  %v1414_v61 = vpop.permute.xlu0 %1413  ;;  %1483 = vmatprep.mubr.bf16.mxu0 %v14349_v2 }
  0xdb   : > { %v1425_v62 = vsel %vm1419_vm7, %v1414_v61, %v1416_v55  ;;  %v1424_v0 = vsel %vm1419_vm7, %v1412_v50, %v1414_v61 }
  0xdc   : > { %2949 = vrot.lane.b32.xlu1 %v14508_v12, %s17258_s25  ;;  %2945 = vrot.lane.b32.xlu0 %v14499_v9, %s17258_s25  ;;  %v1443_v5 = vsel %vm366_vm1, %v1424_v0, 0 }
  0xdd   : > { %13075 = vmatmul.mubr.msk.bf16.vlgmr.msra.gmra.mrb[4].mxu1 %vm362_vm2, %v14765_v33  ;;  %12557 = vmatprep.subr.msk.bf16.mxu0 %vm366_vm1, %v1425_v62 }
  0xde   : > { %1493 = vmatpush1.bf16.msra.mxu1 %v1437_v63  ;;  %v1628_v3 = vpop.permute.xlu1 %1627  ;;  %v1418_v4 = vpop.permute.xlu0 %1417  ;;  %1524 = vmatprep.mubr.bf16.mxu1 %v14349_v2 }
  0xdf   : > { %13078 = vmatprep.subr.bf16.mxu1 %v14364_v32  ;;  %v1426_v10 = vsel %vm1419_vm7, %v1416_v55, %v1418_v4  ;;  %vm3838_vm7 = vcmask 56320  }
  0xe0   : > { %2953 = vrot.lane.b32.xlu1 %v14514_v13, %s17258_s25  ;;  %2941 = vrot.lane.b32.xlu0 %v14468_v1, %s14374_s29  ;;  %v1449_v18 = vsel %vm366_vm1, %v1426_v10, 0 }
  0xe1   : > { %12554 = vmatmul.mubr.msk.bf16.vlgmr.msra.gmra.mrb[0].mxu0 %vm362_vm2, %v14800_v46 }
  0xe2   : > { %1534 = vmatpush1.bf16.msra.mxu0 %v1443_v5  ;;  %v1630_v15 = vpop.permute.xlu1 %1629  ;;  %v1626_v16 = vpop.permute.xlu0 %1625  ;;  %1565 = vmatprep.mubr.bf16.mxu0 %v14349_v2 }
  0xe3   : > { %v1641_v17 = vsel %vm1639_vm8, %v1626_v16, %v1628_v3  ;;  %v1640_v19 = vsel %vm1639_vm8, %v1624_v60, %v1626_v16  ;;  %v1642_v23 = vsel %vm1639_vm8, %v1628_v3, %v1630_v15 }
  0xe4   : > { %2957 = vrot.lane.b32.xlu1 %v14519_v14, %s17258_s25  ;;  %2951 = vrot.lane.b32.xlu0 %v14497_v8, %s17258_s25  ;;  %v1651_v22 = vsel %vm366_vm1, %v1640_v19, 0  ;;  %v1657_v27 = vsel %vm366_vm1, %v1642_v23, 0 }
  0xe5   : > { %12556 = vmatmul.mubr.msk.bf16.vlgmr.msra.gmra.mrb[0].mxu1 %vm362_vm2, %v14800_v46  ;;  %12560 = vmatprep.subr.msk.bf16.mxu0 %vm366_vm1, %v1641_v17 }
  0xe6   : > { %13079 = vmatpush3.bf16.msra.mxu1 %v1449_v18  ;;  %v1634_v20 = vpop.permute.xlu1 %1633  ;;  %v1622_v21 = vpop.permute.xlu0 %1621  ;;  %13080 = vmatprep.mubr.msk.bf16.mxu1 %vm14365_vm3, %v14364_v32 }
  0xe8   : > { %3165 = vrot.lane.b32.xlu1 %v14499_v9, %s17260_s21  ;;  %2955 = vrot.lane.b32.xlu0 %v14506_v11, %s17258_s25  ;;  %s14377_s25 = smov 16  }
  0xe9   : > { %12558 = vmatmul.mubr.msk.bf16.vlgmr.msra.gmra.mrb[4].mxu0 %vm362_vm2, %v14800_v46 }
  0xea   : > { %1672 = vmatpush1.bf16.msra.mxu0 %v1651_v22  ;;  %v1638_v24 = vpop.permute.xlu1 %1637  ;;  %v1632_v25 = vpop.permute.xlu0 %1631  ;;  %1703 = vmatprep.mubr.bf16.mxu0 %v14349_v2 }
  0xeb   : > { %v1643_v26 = vsel %vm1639_vm8, %v1630_v15, %v1632_v25  ;;  %v1644_v28 = vsel %vm1639_vm8, %v1632_v25, %v1634_v20 }
  0xec   : > { %3161 = vrot.lane.b32.xlu1 %v14468_v1, %s14376_s12  ;;  %3163 = vrot.lane.b32.xlu0 %v14491_v7, %s17260_s21  ;;  %v1663_v33 = vsel %vm366_vm1, %v1644_v28, 0 }
  0xed   : > { %13081 = vmatmul.mubr.msk.bf16.vlgmr.msra.gmra.mrb[4].mxu1 %vm362_vm2, %v14800_v46  ;;  %12562 = vmatprep.subr.msk.bf16.mxu1 %vm366_vm1, %v1643_v26 }
  0xee   : > { %1713 = vmatpush1.bf16.msra.mxu1 %v1657_v27  ;;  %v1846_v29 = vpop.permute.xlu1 %1845  ;;  %v1636_v30 = vpop.permute.xlu0 %1635  ;;  %1744 = vmatprep.mubr.bf16.mxu1 %v14349_v2 }
  0xef   : > { %v1645_v31 = vsel %vm1639_vm8, %v1634_v20, %v1636_v30  ;;  %13084 = vmatprep.subr.bf16.mxu1 %v14364_v32  ;;  %v1646_v34 = vsel %vm1639_vm8, %v1636_v30, %v1638_v24  ;;  %vm4061_vm8 = vcmask 48128  }
  0xf0   : > { %3171 = vrot.lane.b32.xlu1 %v14497_v8, %s17260_s21  ;;  %3167 = vrot.lane.b32.xlu0 %v14489_v6, %s17260_s21  ;;  %v1669_v37 = vsel %vm366_vm1, %v1646_v34, 0 }
  0xf1   : > { %12561 = vmatmul.mubr.msk.bf16.vlgmr.msra.gmra.mrb[0].mxu0 %vm362_vm2, %v1622_v21  ;;  %12564 = vmatprep.subr.msk.bf16.mxu0 %vm366_vm1, %v1645_v31 }
  0xf2   : > { %1754 = vmatpush1.bf16.msra.mxu0 %v1663_v33  ;;  %v14899_v35 = vpop.permute.xlu1 %1841  ;;  %v1844_v36 = vpop.permute.xlu0 %1843  ;;  %1785 = vmatprep.mubr.bf16.mxu0 %v14349_v2 }
  0xf3   : > { %v1860_v38 = vsel %vm1859_vm9, %v1844_v36, %v1846_v29 }
  0xf4   : > { %3175 = vrot.lane.b32.xlu1 %v14506_v11, %s17260_s21  ;;  %3169 = vrot.lane.b32.xlu0 %v14508_v12, %s17260_s21  ;;  %v1871_v42 = vsel %vm366_vm1, %v1860_v38, 0 }
  0xf5   : > { %12563 = vmatmul.mubr.msk.bf16.vlgmr.msra.gmra.mrb[0].mxu1 %vm362_vm2, %v1622_v21 }
  0xf6   : > { %13085 = vmatpush3.bf16.msra.mxu1 %v1669_v37  ;;  %v1852_v39 = vpop.permute.xlu1 %1851  ;;  %v1848_v40 = vpop.permute.xlu0 %1847  ;;  %13086 = vmatprep.mubr.msk.bf16.mxu1 %vm14365_vm3, %v14364_v32 }
  0xf7   : > { %v1861_v41 = vsel %vm1859_vm9, %v1846_v29, %v1848_v40 }
  0xf8   : > { %3383 = vrot.lane.b32.xlu1 %v14491_v7, %s14377_s25  ;;  %3173 = vrot.lane.b32.xlu0 %v14514_v13, %s17260_s21 }
  0xf9   : > { %12565 = vmatmul.mubr.msk.bf16.vlgmr.msra.gmra.mrb[4].mxu0 %vm362_vm2, %v1622_v21  ;;  %12567 = vmatprep.subr.msk.bf16.mxu0 %vm366_vm1, %v1861_v41 }
  0xfa   : > { %1892 = vmatpush1.bf16.msra.mxu0 %v1871_v42  ;;  %v1856_v43 = vpop.permute.xlu1 %1855  ;;  %v1850_v44 = vpop.permute.xlu0 %1849  ;;  %1923 = vmatprep.mubr.bf16.mxu0 %v14349_v2 }
  0xfb   : > { %v1862_v45 = vsel %vm1859_vm9, %v1848_v40, %v1850_v44  ;;  %v1863_v46 = vsel %vm1859_vm9, %v1850_v44, %v1852_v39 }
  0xfc   : > { %3387 = vrot.lane.b32.xlu1 %v14489_v6, %s14377_s25  ;;  %3177 = vrot.lane.b32.xlu0 %v14519_v14, %s17260_s21  ;;  %v1877_v47 = vsel %vm366_vm1, %v1862_v45, 0  ;;  %s17268_s21 = smov 8  }
  0xfd   : > { %13087 = vmatmul.mubr.msk.bf16.vlgmr.msra.gmra.mrb[4].mxu1 %vm362_vm2, %v1622_v21  ;;  %12569 = vmatprep.subr.msk.bf16.mxu1 %vm366_vm1, %v1863_v46 }
  0xfe   : > { %1933 = vmatpush1.bf16.msra.mxu1 %v1877_v47  ;;  %v2064_v48 = vpop.permute.xlu1 %2063  ;;  %v1854_v49 = vpop.permute.xlu0 %1853  ;;  %1964 = vmatprep.mubr.bf16.mxu1 %v14349_v2 }
  0xff   : > { %v1864_v50 = vsel %vm1859_vm9, %v1852_v39, %v1854_v49  ;;  %v1865_v51 = vsel %vm1859_vm9, %v1854_v49, %v1856_v43  ;;  %13090 = vmatprep.subr.bf16.mxu1 %v14364_v32 }
 0x100   : > { %3389 = vrot.lane.b32.xlu1 %v14508_v12, %s14377_s25  ;;  %3385 = vrot.lane.b32.xlu0 %v14499_v9, %s14377_s25  ;;  %v1883_v52 = vsel %vm366_vm1, %v1864_v50, 0 }
 0x101   : > { %12568 = vmatmul.mubr.msk.bf16.vlgmr.msra.gmra.mrb[0].mxu0 %vm362_vm2, %v14899_v35  ;;  %12571 = vmatprep.subr.msk.bf16.mxu0 %vm366_vm1, %v1865_v51 }
 0x102   : > { %1974 = vmatpush1.bf16.msra.mxu0 %v1883_v52  ;;  %v2068_v53 = vpop.permute.xlu1 %2067  ;;  %v1858_v54 = vpop.permute.xlu0 %1857  ;;  %2005 = vmatprep.mubr.bf16.mxu0 %v14349_v2 }
 0x103   : > { %v1866_v55 = vsel %vm1859_vm9, %v1856_v43, %v1858_v54  ;;  %vm4305_vm9 = vcmask 457728  }
 0x104   : > { %v1889_v56 = vsel %vm366_vm1, %v1866_v55, 0  ;;  %3393 = vrot.lane.b32.xlu1 %v14514_v13, %s14377_s25  ;;  %3381 = vrot.lane.b32.xlu0 %v14468_v1, %s14377_s25 }
 0x105   : > { %12570 = vmatmul.mubr.msk.bf16.vlgmr.msra.gmra.mrb[0].mxu1 %vm362_vm2, %v14899_v35 }
 0x106   : > { %13091 = vmatpush3.bf16.msra.mxu1 %v1889_v56  ;;  %v2070_v57 = vpop.permute.xlu1 %2069  ;;  %v2066_v58 = vpop.permute.xlu0 %2065  ;;  %13092 = vmatprep.mubr.msk.bf16.mxu1 %vm14365_vm3, %v14364_v32 }
 0x107   : > { %v2080_v59 = vsel %vm2079_vm10, %v2064_v48, %v2066_v58  ;;  %v2081_v60 = vsel %vm2079_vm10, %v2066_v58, %v2068_v53  ;;  %v2082_v0 = vsel %vm2079_vm10, %v2068_v53, %v2070_v57 }
 0x108   : > { %3397 = vrot.lane.b32.xlu1 %v14519_v14, %s14377_s25  ;;  %3391 = vrot.lane.b32.xlu0 %v14497_v8, %s14377_s25  ;;  %v2091_v61 = vsel %vm366_vm1, %v2080_v59, 0  ;;  %v2097_v10 = vsel %vm366_vm1, %v2082_v0, 0 }
 0x109   : > { %12572 = vmatmul.mubr.msk.bf16.vlgmr.msra.gmra.mrb[4].mxu0 %vm362_vm2, %v14899_v35  ;;  %12574 = vmatprep.subr.msk.bf16.mxu0 %vm366_vm1, %v2081_v60  ;;  %v4263_v60 = vld [vmem:[%s14482_s13 + $0x4] sm:$0xff] }
 0x10a   : > { %2112 = vmatpush1.bf16.msra.mxu0 %v2091_v61  ;;  %v2074_v62 = vpop.permute.xlu1 %2073  ;;  %v2062_v63 = vpop.permute.xlu0 %2061  ;;  %2143 = vmatprep.mubr.bf16.mxu0 %v14349_v2 }
 0x10c   : > { %3605 = vrot.lane.b32.xlu1 %v14499_v9, %s17268_s21  ;;  %3395 = vrot.lane.b32.xlu0 %v14506_v11, %s14377_s25 }
 0x10d   : > { %13093 = vmatmul.mubr.msk.bf16.vlgmr.msra.gmra.mrb[4].mxu1 %vm362_vm2, %v14899_v35 }
 0x10e   : > { %v2078_v3 = vpop.permute.xlu1 %2077  ;;  %v2072_v4 = vpop.permute.xlu0 %2071  ;;  %2184 = vmatprep.mubr.bf16.mxu1 %v14349_v2 }
 0x10f   : > { %v2083_v5 = vsel %vm2079_vm10, %v2070_v57, %v2072_v4  ;;  %v2084_v15 = vsel %vm2079_vm10, %v2072_v4, %v2074_v62 }
 0x110   : > { %3601 = vrot.lane.b32.xlu1 %v14468_v1, %s17268_s21  ;;  %3603 = vrot.lane.b32.xlu0 %v14491_v7, %s17268_s21  ;;  %v2103_v20 = vsel %vm366_vm1, %v2084_v15, 0 }
 0x111   : > { %12575 = vmatmul.mubr.msk.bf16.vlgmr.msra.gmra.mrb[0].mxu0 %vm362_vm2, %v2062_v63  ;;  %12576 = vmatprep.subr.msk.bf16.mxu1 %vm366_vm1, %v2083_v5  ;;  %v4265_v5 = vld [vmem:[%s14482_s13 + $0x14] sm:$0xff] }
 0x112   : > { %2153 = vmatpush1.bf16.msra.mxu1 %v2097_v10  ;;  %v2286_v16 = vpop.permute.xlu1 %2285  ;;  %v2076_v17 = vpop.permute.xlu0 %2075  ;;  %2225 = vmatprep.mubr.bf16.mxu0 %v14349_v2  ;;  %v4264_v10 = vld [vmem:[%s14482_s13 + $0xc] sm:$0xff] }
 0x113   : > { %v2086_v18 = vsel %vm2079_vm10, %v2076_v17, %v2078_v3  ;;  %v2085_v1 = vsel %vm2079_vm10, %v2074_v62, %v2076_v17  ;;  %13096 = vmatprep.subr.bf16.mxu1 %v14364_v32  ;;  %vm4525_vm10 = vcmask 449536  }
 0x114   : > { %3611 = vrot.lane.b32.xlu1 %v14497_v8, %s17268_s21  ;;  %3607 = vrot.lane.b32.xlu0 %v14489_v6, %s17268_s21  ;;  %v2109_v19 = vsel %vm366_vm1, %v2086_v18, 0 }
 0x115   : > { %12577 = vmatmul.mubr.msk.bf16.vlgmr.msra.gmra.mrb[0].mxu1 %vm362_vm2, %v2062_v63  ;;  %12578 = vmatprep.subr.msk.bf16.mxu0 %vm366_vm1, %v2085_v1  ;;  %v15119_v1 = vcombine.low %v4265_v5, %v4265_v5 }
 0x116   : > { %2194 = vmatpush1.bf16.msra.mxu0 %v2103_v20  ;;  %13097 = vmatpush3.bf16.msra.mxu1 %v2109_v19  ;;  %v2282_v21 = vpop.permute.xlu1 %2281  ;;  %v2284_v22 = vpop.permute.xlu0 %2283  ;;  %v15121_v19 = vcombine.low %v4264_v10, %v4264_v10  ;;  %v4266_v20 = vld [vmem:[%s14482_s13 + $0x1c] sm:$0xff] }
 0x117   : > { %13098 = vmatprep.mubr.msk.bf16.mxu1 %vm14365_vm3, %v14364_v32  ;;  %v2300_v23 = vsel %vm2299_vm11, %v2284_v22, %v2286_v16 }
 0x118   : > { %3615 = vrot.lane.b32.xlu1 %v14506_v11, %s17268_s21  ;;  %3609 = vrot.lane.b32.xlu0 %v14508_v12, %s17268_s21  ;;  %v2311_v27 = vsel %vm366_vm1, %v2300_v23, 0 }
 0x119   : > { %12579 = vmatmul.mubr.msk.bf16.vlgmr.msra.gmra.mrb[4].mxu0 %vm362_vm2, %v2062_v63 }
 0x11a   : > { %v2292_v24 = vpop.permute.xlu1 %2291  ;;  %v2288_v25 = vpop.permute.xlu0 %2287  ;;  %2363 = vmatprep.mubr.bf16.mxu0 %v14349_v2 }
 0x11b   : > { %v2301_v26 = vsel %vm2299_vm11, %v2286_v16, %v2288_v25 }
 0x11c   : > { %3822 = vrot.lane.b32.xlu1 %v14491_v7, %s14379_s10  ;;  %3613 = vrot.lane.b32.xlu0 %v14514_v13, %s17268_s21 }
 0x11d   : > { %13099 = vmatmul.mubr.msk.bf16.vlgmr.msra.gmra.mrb[4].mxu1 %vm362_vm2, %v2062_v63  ;;  %12581 = vmatprep.subr.msk.bf16.mxu0 %vm366_vm1, %v2301_v26  ;;  %v15136_v26 = vcombine.low %v4266_v20, %v4266_v20 }
 0x11e   : > { %2332 = vmatpush1.bf16.msra.mxu0 %v2311_v27  ;;  %v2296_v28 = vpop.permute.xlu1 %2295  ;;  %v2290_v29 = vpop.permute.xlu0 %2289  ;;  %2404 = vmatprep.mubr.bf16.mxu1 %v14349_v2  ;;  %v15138_v27 = vcombine.high %v4264_v10, %v4264_v10 }
 0x11f   : > { %v2302_v30 = vsel %vm2299_vm11, %v2288_v25, %v2290_v29  ;;  %v2303_v31 = vsel %vm2299_vm11, %v2290_v29, %v2292_v24 }
 0x120   : > { %3826 = vrot.lane.b32.xlu1 %v14489_v6, %s14379_s10  ;;  %3617 = vrot.lane.b32.xlu0 %v14519_v14, %s17268_s21  ;;  %v2317_v33 = vsel %vm366_vm1, %v2302_v30, 0  ;;  %s14384_s21 = smov 45  }
 0x121   : > { %12582 = vmatmul.mubr.msk.bf16.vlgmr.msra.gmra.mrb[0].mxu0 %vm362_vm2, %v2282_v21  ;;  %12583 = vmatprep.subr.msk.bf16.mxu1 %vm366_vm1, %v2303_v31 }
 0x122   : > { %2373 = vmatpush1.bf16.msra.mxu1 %v2317_v33  ;;  %v2504_v34 = vpop.permute.xlu1 %2503  ;;  %v2294_v35 = vpop.permute.xlu0 %2293  ;;  %2445 = vmatprep.mubr.bf16.mxu0 %v14349_v2  ;;  %v15151_v33 = vcombine.high %v4265_v5, %v4265_v5 }
 0x123   : > { %v2304_v36 = vsel %vm2299_vm11, %v2292_v24, %v2294_v35  ;;  %v2305_v37 = vsel %vm2299_vm11, %v2294_v35, %v2296_v28  ;;  %13102 = vmatprep.subr.bf16.mxu1 %v14364_v32 }
 0x124   : > { %3830 = vrot.lane.b32.xlu1 %v14497_v8, %s14379_s10  ;;  %3824 = vrot.lane.b32.xlu0 %v14499_v9, %s14379_s10  ;;  %v2323_v38 = vsel %vm366_vm1, %v2304_v36, 0 }
 0x125   : > { %12584 = vmatmul.mubr.msk.bf16.vlgmr.msra.gmra.mrb[0].mxu1 %vm362_vm2, %v2282_v21  ;;  %12585 = vmatprep.subr.msk.bf16.mxu0 %vm366_vm1, %v2305_v37 }
 0x126   : > { %2414 = vmatpush1.bf16.msra.mxu0 %v2323_v38  ;;  %v2508_v39 = vpop.permute.xlu1 %2507  ;;  %v2298_v40 = vpop.permute.xlu0 %2297  ;;  %13104 = vmatprep.mubr.msk.bf16.mxu1 %vm14365_vm3, %v14364_v32 }
 0x127   : > { %v2306_v41 = vsel %vm2299_vm11, %v2296_v28, %v2298_v40 }
 0x128   : > { %v2329_v42 = vsel %vm366_vm1, %v2306_v41, 0  ;;  %3834 = vrot.lane.b32.xlu1 %v14506_v11, %s14379_s10  ;;  %3828 = vrot.lane.b32.xlu0 %v14508_v12, %s14379_s10 }
 0x129   : > { %12586 = vmatmul.mubr.msk.bf16.vlgmr.msra.gmra.mrb[4].mxu0 %vm362_vm2, %v2282_v21  ;;  %13103 = vmatpush3.bf16.msra.mxu1 %v2329_v42 }
 0x12a   : > { %v2510_v43 = vpop.permute.xlu1 %2509  ;;  %v2506_v44 = vpop.permute.xlu0 %2505  ;;  %2583 = vmatprep.mubr.bf16.mxu0 %v14349_v2 }
 0x12b   : > { %v2520_v45 = vsel %vm2519_vm12, %v2504_v34, %v2506_v44  ;;  %v2521_v46 = vsel %vm2519_vm12, %v2506_v44, %v2508_v39  ;;  %v2522_v50 = vsel %vm2519_vm12, %v2508_v39, %v2510_v43  ;;  %v15163_v39 = vcombine.high %v4266_v20, %v4266_v20 }
 0x12c   : > { %4045 = vrot.lane.b32.xlu1 %v14491_v7, %s14380_s19  ;;  %3832 = vrot.lane.b32.xlu0 %v14514_v13, %s14379_s10  ;;  %v2531_v47 = vsel %vm366_vm1, %v2520_v45, 0  ;;  %v15058_v7 = vld [vmem:[%s17248_s1 + $0x4] sm:$0xf]  ;;  %v2537_v54 = vsel %vm366_vm1, %v2522_v50, 0 }
 0x12d   : > { %13105 = vmatmul.mubr.msk.bf16.vlgmr.msra.gmra.mrb[4].mxu1 %vm362_vm2, %v2282_v21  ;;  %12588 = vmatprep.subr.msk.bf16.mxu0 %vm366_vm1, %v2521_v46 }
 0x12e   : > { %2552 = vmatpush1.bf16.msra.mxu0 %v2531_v47  ;;  %v2514_v48 = vpop.permute.xlu1 %2513  ;;  %v2502_v49 = vpop.permute.xlu0 %2501  ;;  %2624 = vmatprep.mubr.bf16.mxu1 %v14349_v2 }
 0x130   : > { %4049 = vrot.lane.b32.xlu1 %v14489_v6, %s14380_s19  ;;  %3836 = vrot.lane.b32.xlu0 %v14519_v14, %s14379_s10  ;;  %v15069_v6 = vcombine.low %v15058_v7, %v15058_v7  ;;  %s14383_s10 = smov 46  }
 0x131   : > { %12589 = vmatmul.mubr.msk.bf16.vlgmr.msra.gmra.mrb[0].mxu0 %vm362_vm2, %v2502_v49 }
 0x132   : > { %v2518_v51 = vpop.permute.xlu1 %2517  ;;  %v2512_v52 = vpop.permute.xlu0 %2511  ;;  %2665 = vmatprep.mubr.bf16.mxu0 %v14349_v2 }
 0x133   : > { %v2523_v53 = vsel %vm2519_vm12, %v2510_v43, %v2512_v52  ;;  %v2524_v55 = vsel %vm2519_vm12, %v2512_v52, %v2514_v48 }
 0x134   : > { %4051 = vrot.lane.b32.xlu1 %v14508_v12, %s14380_s19  ;;  %4047 = vrot.lane.b32.xlu0 %v14499_v9, %s14380_s19  ;;  %v2543_v59 = vsel %vm366_vm1, %v2524_v55, 0 }
 0x135   : > { %12590 = vmatprep.subr.msk.bf16.mxu1 %vm366_vm1, %v2523_v53 }
 0x136   : > { %2593 = vmatpush1.bf16.msra.mxu1 %v2537_v54  ;;  %v2726_v56 = vpop.permute.xlu1 %2725  ;;  %v2516_v57 = vpop.permute.xlu0 %2515 }
 0x137   : > { %v2526_v58 = vsel %vm2519_vm12, %v2516_v57, %v2518_v51  ;;  %v2525_v12 = vsel %vm2519_vm12, %v2514_v48, %v2516_v57  ;;  %13108 = vmatprep.subr.bf16.mxu1 %v14364_v32 }
 0x138   : > { %4055 = vrot.lane.b32.xlu1 %v14514_v13, %s14380_s19  ;;  %4043 = vrot.lane.b32.xlu0 %v15069_v6, %s14348_s9  ;;  %v2549_v9 = vsel %vm366_vm1, %v2526_v58, 0  ;;  %v15094_v13 = vcombine.high %v4263_v60, %v4263_v60 }
 0x139   : > { %12591 = vmatmul.mubr.msk.bf16.vlgmr.msra.gmra.mrb[0].mxu1 %vm362_vm2, %v2502_v49  ;;  %12592 = vmatprep.subr.msk.bf16.mxu0 %vm366_vm1, %v2525_v12 }
 0x13a   : > { %2634 = vmatpush1.bf16.msra.mxu0 %v2543_v59  ;;  %13109 = vmatpush3.bf16.msra.mxu1 %v2549_v9  ;;  %v15086_v61 = vpop.permute.xlu1 %2721  ;;  %v2724_v62 = vpop.permute.xlu0 %2723 }
 0x13b   : > { %13110 = vmatprep.mubr.msk.bf16.mxu1 %vm14365_vm3, %v14364_v32  ;;  %v2740_v63 = vsel %vm2739_vm13, %v2724_v62, %v2726_v56 }
 0x13c   : > { %4059 = vrot.lane.b32.xlu1 %v14519_v14, %s14380_s19  ;;  %4053 = vrot.lane.b32.xlu0 %v14497_v8, %s14380_s19  ;;  %v15104_v14 = vcombine.low %v4263_v60, %v4263_v60  ;;  %v2751_v8 = vsel %vm366_vm1, %v2740_v63, 0 }
 0x13d   : > { %12593 = vmatmul.mubr.msk.bf16.vlgmr.msra.gmra.mrb[4].mxu0 %vm362_vm2, %v2502_v49 }
 0x13e   : > { %v2732_v0 = vpop.permute.xlu1 %2731  ;;  %v2728_v3 = vpop.permute.xlu0 %2727  ;;  %2803 = vmatprep.mubr.bf16.mxu0 %v14349_v2 }
 0x13f   : > { %v2741_v4 = vsel %vm2739_vm13, %v2726_v56, %v2728_v3 }
 0x140   : > { %4291 = vrot.lane.b32.xlu1 %v15094_v13, %s14368_s11  ;;  %4057 = vrot.lane.b32.xlu0 %v14506_v11, %s14380_s19  ;;  %s14382_s19 = smov 54  }
 0x141   : > { %13111 = vmatmul.mubr.msk.bf16.vlgmr.msra.gmra.mrb[4].mxu1 %vm362_vm2, %v2502_v49  ;;  %12595 = vmatprep.subr.msk.bf16.mxu0 %vm366_vm1, %v2741_v4 }
 0x142   : > { %2772 = vmatpush1.bf16.msra.mxu0 %v2751_v8  ;;  %v2736_v15 = vpop.permute.xlu1 %2735  ;;  %v2730_v16 = vpop.permute.xlu0 %2729  ;;  %2844 = vmatprep.mubr.bf16.mxu1 %v14349_v2 }
 0x143   : > { %v2742_v17 = vsel %vm2739_vm13, %v2728_v3, %v2730_v16  ;;  %v2743_v11 = vsel %vm2739_vm13, %v2730_v16, %v2732_v0 }
 0x144   : > { %4267 = vrot.lane.b32.xlu1 %v15069_v6, %s17270_s16  ;;  %4289 = vrot.lane.b32.xlu0 %v15104_v14, %s14368_s11  ;;  %v2757_v18 = vsel %vm366_vm1, %v2742_v17, 0 }
 0x145   : > { %12596 = vmatmul.mubr.msk.bf16.vlgmr.msra.gmra.mrb[0].mxu0 %vm362_vm2, %v15086_v61  ;;  %12597 = vmatprep.subr.msk.bf16.mxu1 %vm366_vm1, %v2743_v11 }
 0x146   : > { %2813 = vmatpush1.bf16.msra.mxu1 %v2757_v18  ;;  %v2944_v21 = vpop.permute.xlu1 %2943  ;;  %v2734_v22 = vpop.permute.xlu0 %2733  ;;  %2885 = vmatprep.mubr.bf16.mxu0 %v14349_v2 }
 0x147   : > { %v2744_v23 = vsel %vm2739_vm13, %v2732_v0, %v2734_v22  ;;  %v2745_v24 = vsel %vm2739_vm13, %v2734_v22, %v2736_v15  ;;  %13114 = vmatprep.subr.bf16.mxu1 %v14364_v32 }
 0x148   : > { %4297 = vrot.lane.b32.xlu1 %v15119_v1, %s14368_s11  ;;  %4293 = vrot.lane.b32.xlu0 %v15121_v19, %s14368_s11  ;;  %v2763_v25 = vsel %vm366_vm1, %v2744_v23, 0 }
 0x149   : > { %12598 = vmatmul.mubr.msk.bf16.vlgmr.msra.gmra.mrb[0].mxu1 %vm362_vm2, %v15086_v61  ;;  %12599 = vmatprep.subr.msk.bf16.mxu0 %vm366_vm1, %v2745_v24 }
 0x14a   : > { %2854 = vmatpush1.bf16.msra.mxu0 %v2763_v25  ;;  %v2948_v28 = vpop.permute.xlu1 %2947  ;;  %v2738_v29 = vpop.permute.xlu0 %2737  ;;  %13116 = vmatprep.mubr.msk.bf16.mxu1 %vm14365_vm3, %v14364_v32 }
 0x14b   : > { %v2746_v30 = vsel %vm2739_vm13, %v2736_v15, %v2738_v29  ;;  %vm4745_vm13 = vcmask 441344  }
 0x14c   : > { %v2769_v31 = vsel %vm366_vm1, %v2746_v30, 0  ;;  %4301 = vrot.lane.b32.xlu1 %v15136_v26, %s14368_s11  ;;  %4295 = vrot.lane.b32.xlu0 %v15138_v27, %s14368_s11 }
 0x14d   : > { %12600 = vmatmul.mubr.msk.bf16.vlgmr.msra.gmra.mrb[4].mxu0 %vm362_vm2, %v15086_v61  ;;  %13115 = vmatpush3.bf16.msra.mxu1 %v2769_v31 }
 0x14e   : > { %v2950_v34 = vpop.permute.xlu1 %2949  ;;  %v2946_v35 = vpop.permute.xlu0 %2945  ;;  %3023 = vmatprep.mubr.bf16.mxu0 %v14349_v2 }
 0x14f   : > { %v2960_v36 = vsel %vm2959_vm14, %v2944_v21, %v2946_v35  ;;  %v2961_v37 = vsel %vm2959_vm14, %v2946_v35, %v2948_v28  ;;  %v2962_v42 = vsel %vm2959_vm14, %v2948_v28, %v2950_v34 }
 0x150   : > { %4509 = vrot.lane.b32.xlu1 %v15104_v14, %s14381_s17  ;;  %4299 = vrot.lane.b32.xlu0 %v15151_v33, %s14368_s11  ;;  %v2971_v38 = vsel %vm366_vm1, %v2960_v36, 0  ;;  %v2977_v46 = vsel %vm366_vm1, %v2962_v42, 0 }
 0x151   : > { %13117 = vmatmul.mubr.msk.bf16.vlgmr.msra.gmra.mrb[4].mxu1 %vm362_vm2, %v15086_v61  ;;  %12602 = vmatprep.subr.msk.bf16.mxu0 %vm366_vm1, %v2961_v37 }
 0x152   : > { %2992 = vmatpush1.bf16.msra.mxu0 %v2971_v38  ;;  %v2954_v40 = vpop.permute.xlu1 %2953  ;;  %v2942_v41 = vpop.permute.xlu0 %2941  ;;  %3064 = vmatprep.mubr.bf16.mxu1 %v14349_v2 }
 0x154   : > { %4513 = vrot.lane.b32.xlu1 %v15121_v19, %s14381_s17  ;;  %4303 = vrot.lane.b32.xlu0 %v15163_v39, %s14368_s11 }
 0x155   : > { %12603 = vmatmul.mubr.msk.bf16.vlgmr.msra.gmra.mrb[0].mxu0 %vm362_vm2, %v2942_v41 }
 0x156   : > { %v2958_v43 = vpop.permute.xlu1 %2957  ;;  %v2952_v44 = vpop.permute.xlu0 %2951  ;;  %3105 = vmatprep.mubr.bf16.mxu0 %v14349_v2 }
 0x157   : > { %v2963_v45 = vsel %vm2959_vm14, %v2950_v34, %v2952_v44  ;;  %v2964_v47 = vsel %vm2959_vm14, %v2952_v44, %v2954_v40 }
 0x158   : > { %4515 = vrot.lane.b32.xlu1 %v15138_v27, %s14381_s17  ;;  %4511 = vrot.lane.b32.xlu0 %v15094_v13, %s14381_s17  ;;  %v2983_v53 = vsel %vm366_vm1, %v2964_v47, 0 }
 0x159   : > { %12604 = vmatprep.subr.msk.bf16.mxu1 %vm366_vm1, %v2963_v45 }
 0x15a   : > { %3033 = vmatpush1.bf16.msra.mxu1 %v2977_v46  ;;  %v3166_v48 = vpop.permute.xlu1 %3165  ;;  %v2956_v49 = vpop.permute.xlu0 %2955 }
 0x15b   : > { %v2966_v50 = vsel %vm2959_vm14, %v2956_v49, %v2958_v43  ;;  %v2965_v51 = vsel %vm2959_vm14, %v2954_v40, %v2956_v49  ;;  %13120 = vmatprep.subr.bf16.mxu1 %v14364_v32 }
 0x15c   : > { %4519 = vrot.lane.b32.xlu1 %v15151_v33, %s14381_s17  ;;  %4507 = vrot.lane.b32.xlu0 %v15069_v6, %s17269_s18  ;;  %v2989_v52 = vsel %vm366_vm1, %v2966_v50, 0 }
 0x15d   : > { %12605 = vmatmul.mubr.msk.bf16.vlgmr.msra.gmra.mrb[0].mxu1 %vm362_vm2, %v2942_v41  ;;  %12606 = vmatprep.subr.msk.bf16.mxu0 %vm366_vm1, %v2965_v51 }
 0x15e   : > { %3074 = vmatpush1.bf16.msra.mxu0 %v2983_v53  ;;  %13121 = vmatpush3.bf16.msra.mxu1 %v2989_v52  ;;  %v3162_v54 = vpop.permute.xlu1 %3161  ;;  %v3164_v55 = vpop.permute.xlu0 %3163 }
 0x15f   : > { %13122 = vmatprep.mubr.msk.bf16.mxu1 %vm14365_vm3, %v14364_v32  ;;  %v3180_v56 = vsel %vm3179_vm15, %v3164_v55, %v3166_v48 }
 0x160   : > { %4523 = vrot.lane.b32.xlu1 %v15163_v39, %s14381_s17  ;;  %4517 = vrot.lane.b32.xlu0 %v15119_v1, %s14381_s17  ;;  %v3191_v9 = vsel %vm366_vm1, %v3180_v56, 0 }
 0x161   : > { %12607 = vmatmul.mubr.msk.bf16.vlgmr.msra.gmra.mrb[4].mxu0 %vm362_vm2, %v2942_v41 }
 0x162   : > { %v3172_v57 = vpop.permute.xlu1 %3171  ;;  %v3168_v58 = vpop.permute.xlu0 %3167  ;;  %3243 = vmatprep.mubr.bf16.mxu0 %v14349_v2 }
 0x163   : > { %v3181_v12 = vsel %vm3179_vm15, %v3166_v48, %v3168_v58 }
 0x164   : > { %4731 = vrot.lane.b32.xlu1 %v15094_v13, %s14382_s19  ;;  %4521 = vrot.lane.b32.xlu0 %v15136_v26, %s14381_s17  ;;  %s14385_s17 = smov 44  }
 0x165   : > { %13123 = vmatmul.mubr.msk.bf16.vlgmr.msra.gmra.mrb[4].mxu1 %vm362_vm2, %v2942_v41  ;;  %12609 = vmatprep.subr.msk.bf16.mxu0 %vm366_vm1, %v3181_v12 }
 0x166   : > { %3212 = vmatpush1.bf16.msra.mxu0 %v3191_v9  ;;  %v3176_v59 = vpop.permute.xlu1 %3175  ;;  %v3170_v60 = vpop.permute.xlu0 %3169  ;;  %3284 = vmatprep.mubr.bf16.mxu1 %v14349_v2 }
 0x167   : > { %v3182_v61 = vsel %vm3179_vm15, %v3168_v58, %v3170_v60  ;;  %v3183_v62 = vsel %vm3179_vm15, %v3170_v60, %v3172_v57 }
 0x168   : > { %4727 = vrot.lane.b32.xlu1 %v15069_v6, %s14356_s20  ;;  %4729 = vrot.lane.b32.xlu0 %v15104_v14, %s14382_s19  ;;  %v3197_v63 = vsel %vm366_vm1, %v3182_v61, 0 }
 0x169   : > { %12610 = vmatmul.mubr.msk.bf16.vlgmr.msra.gmra.mrb[0].mxu0 %vm362_vm2, %v3162_v54  ;;  %12611 = vmatprep.subr.msk.bf16.mxu1 %vm366_vm1, %v3183_v62 }
 0x16a   : > { %3253 = vmatpush1.bf16.msra.mxu1 %v3197_v63  ;;  %v3384_v0 = vpop.permute.xlu1 %3383  ;;  %v3174_v3 = vpop.permute.xlu0 %3173  ;;  %3325 = vmatprep.mubr.bf16.mxu0 %v14349_v2 }
 0x16b   : > { %v3184_v4 = vsel %vm3179_vm15, %v3172_v57, %v3174_v3  ;;  %v3185_v8 = vsel %vm3179_vm15, %v3174_v3, %v3176_v59  ;;  %13126 = vmatprep.subr.bf16.mxu1 %v14364_v32 }
 0x16c   : > { %4737 = vrot.lane.b32.xlu1 %v15119_v1, %s14382_s19  ;;  %4733 = vrot.lane.b32.xlu0 %v15121_v19, %s14382_s19  ;;  %v3203_v5 = vsel %vm366_vm1, %v3184_v4, 0 }
 0x16d   : > { %12612 = vmatmul.mubr.msk.bf16.vlgmr.msra.gmra.mrb[0].mxu1 %vm362_vm2, %v3162_v54  ;;  %12613 = vmatprep.subr.msk.bf16.mxu0 %vm366_vm1, %v3185_v8 }
 0x16e   : > { %3294 = vmatpush1.bf16.msra.mxu0 %v3203_v5  ;;  %v3388_v10 = vpop.permute.xlu1 %3387  ;;  %v3178_v15 = vpop.permute.xlu0 %3177  ;;  %13128 = vmatprep.mubr.msk.bf16.mxu1 %vm14365_vm3, %v14364_v32 }
 0x16f   : > { %v3186_v16 = vsel %vm3179_vm15, %v3176_v59, %v3178_v15 }
 0x170   : > { %v3209_v17 = vsel %vm366_vm1, %v3186_v16, 0  ;;  %4741 = vrot.lane.b32.xlu1 %v15136_v26, %s14382_s19  ;;  %4735 = vrot.lane.b32.xlu0 %v15138_v27, %s14382_s19 }
 0x171   : > { %12614 = vmatmul.mubr.msk.bf16.vlgmr.msra.gmra.mrb[4].mxu0 %vm362_vm2, %v3162_v54  ;;  %13127 = vmatpush3.bf16.msra.mxu1 %v3209_v17 }
 0x172   : > { %v3390_v11 = vpop.permute.xlu1 %3389  ;;  %v3386_v18 = vpop.permute.xlu0 %3385  ;;  %3463 = vmatprep.mubr.bf16.mxu0 %v14349_v2 }
 0x173   : > { %v3400_v20 = vsel %vm3399_vm4, %v3384_v0, %v3386_v18  ;;  %v3401_v21 = vsel %vm3399_vm4, %v3386_v18, %v3388_v10  ;;  %v3402_v25 = vsel %vm3399_vm4, %v3388_v10, %v3390_v11 }
 0x174   : > { %4949 = vrot.lane.b32.xlu1 %v15104_v14, %s14383_s10  ;;  %4739 = vrot.lane.b32.xlu0 %v15151_v33, %s14382_s19  ;;  %v3411_v22 = vsel %vm366_vm1, %v3400_v20, 0  ;;  %v3417_v31 = vsel %vm366_vm1, %v3402_v25, 0 }
 0x175   : > { %13129 = vmatmul.mubr.msk.bf16.vlgmr.msra.gmra.mrb[4].mxu1 %vm362_vm2, %v3162_v54  ;;  %12616 = vmatprep.subr.msk.bf16.mxu0 %vm366_vm1, %v3401_v21 }
 0x176   : > { %3432 = vmatpush1.bf16.msra.mxu0 %v3411_v22  ;;  %v3394_v23 = vpop.permute.xlu1 %3393  ;;  %v3382_v24 = vpop.permute.xlu0 %3381  ;;  %3504 = vmatprep.mubr.bf16.mxu1 %v14349_v2 }
 0x178   : > { %4953 = vrot.lane.b32.xlu1 %v15121_v19, %s14383_s10  ;;  %4743 = vrot.lane.b32.xlu0 %v15163_v39, %s14382_s19  ;;  %s14386_s19 = smov 36  }
 0x179   : > { %12617 = vmatmul.mubr.msk.bf16.vlgmr.msra.gmra.mrb[0].mxu0 %vm362_vm2, %v3382_v24 }
 0x17a   : > { %v3398_v28 = vpop.permute.xlu1 %3397  ;;  %v3392_v29 = vpop.permute.xlu0 %3391  ;;  %3545 = vmatprep.mubr.bf16.mxu0 %v14349_v2 }
 0x17b   : > { %v3403_v30 = vsel %vm3399_vm4, %v3390_v11, %v3392_v29  ;;  %v3404_v34 = vsel %vm3399_vm4, %v3392_v29, %v3394_v23 }
 0x17c   : > { %4955 = vrot.lane.b32.xlu1 %v15138_v27, %s14383_s10  ;;  %4951 = vrot.lane.b32.xlu0 %v15094_v13, %s14383_s10  ;;  %v3423_v41 = vsel %vm366_vm1, %v3404_v34, 0 }
 0x17d   : > { %12618 = vmatprep.subr.msk.bf16.mxu1 %vm366_vm1, %v3403_v30 }
 0x17e   : > { %3473 = vmatpush1.bf16.msra.mxu1 %v3417_v31  ;;  %v3606_v35 = vpop.permute.xlu1 %3605  ;;  %v3396_v36 = vpop.permute.xlu0 %3395 }
 0x17f   : > { %v3406_v37 = vsel %vm3399_vm4, %v3396_v36, %v3398_v28  ;;  %v3405_v38 = vsel %vm3399_vm4, %v3394_v23, %v3396_v36  ;;  %13132 = vmatprep.subr.bf16.mxu1 %v14364_v32  ;;  %vm4965_vm4 = vcmask 375808  }
 0x180   : > { %4959 = vrot.lane.b32.xlu1 %v15151_v33, %s14383_s10  ;;  %4947 = vrot.lane.b32.xlu0 %v15069_v6, %s14358_s22  ;;  %v3429_v40 = vsel %vm366_vm1, %v3406_v37, 0 }
 0x181   : > { %12619 = vmatmul.mubr.msk.bf16.vlgmr.msra.gmra.mrb[0].mxu1 %vm362_vm2, %v3382_v24  ;;  %12620 = vmatprep.subr.msk.bf16.mxu0 %vm366_vm1, %v3405_v38 }
 0x182   : > { %3514 = vmatpush1.bf16.msra.mxu0 %v3423_v41  ;;  %13133 = vmatpush3.bf16.msra.mxu1 %v3429_v40  ;;  %v3602_v42 = vpop.permute.xlu1 %3601  ;;  %v3604_v43 = vpop.permute.xlu0 %3603 }
 0x183   : > { %13134 = vmatprep.mubr.msk.bf16.mxu1 %vm14365_vm3, %v14364_v32  ;;  %v3620_v44 = vsel %vm362_vm2, %v3604_v43, %v3606_v35 }
 0x184   : > { %4963 = vrot.lane.b32.xlu1 %v15163_v39, %s14383_s10  ;;  %4957 = vrot.lane.b32.xlu0 %v15119_v1, %s14383_s10  ;;  %v3631_v48 = vsel %vm366_vm1, %v3620_v44, 0 }
 0x185   : > { %12621 = vmatmul.mubr.msk.bf16.vlgmr.msra.gmra.mrb[4].mxu0 %vm362_vm2, %v3382_v24 }
 0x186   : > { %v3612_v45 = vpop.permute.xlu1 %3611  ;;  %v3608_v46 = vpop.permute.xlu0 %3607  ;;  %3683 = vmatprep.mubr.bf16.mxu0 %v14349_v2 }
 0x187   : > { %v3621_v47 = vsel %vm362_vm2, %v3606_v35, %v3608_v46 }
 0x188   : > { %5171 = vrot.lane.b32.xlu1 %v15094_v13, %s14384_s21  ;;  %4961 = vrot.lane.b32.xlu0 %v15136_v26, %s14383_s10  ;;  %s14387_s10 = smov 35  }
 0x189   : > { %13135 = vmatmul.mubr.msk.bf16.vlgmr.msra.gmra.mrb[4].mxu1 %vm362_vm2, %v3382_v24  ;;  %12623 = vmatprep.subr.msk.bf16.mxu0 %vm366_vm1, %v3621_v47 }
 0x18a   : > { %3652 = vmatpush1.bf16.msra.mxu0 %v3631_v48  ;;  %v3616_v49 = vpop.permute.xlu1 %3615  ;;  %v3610_v50 = vpop.permute.xlu0 %3609  ;;  %3724 = vmatprep.mubr.bf16.mxu1 %v14349_v2 }
 0x18b   : > { %v3622_v51 = vsel %vm362_vm2, %v3608_v46, %v3610_v50  ;;  %v3623_v52 = vsel %vm362_vm2, %v3610_v50, %v3612_v45 }
 0x18c   : > { %5167 = vrot.lane.b32.xlu1 %v15069_v6, %s14360_s24  ;;  %5169 = vrot.lane.b32.xlu0 %v15104_v14, %s14384_s21  ;;  %v3637_v53 = vsel %vm366_vm1, %v3622_v51, 0 }
 0x18d   : > { %12624 = vmatmul.mubr.msk.bf16.vlgmr.msra.gmra.mrb[0].mxu0 %vm362_vm2, %v3602_v42  ;;  %12625 = vmatprep.subr.msk.bf16.mxu1 %vm366_vm1, %v3623_v52 }
 0x18e   : > { %3693 = vmatpush1.bf16.msra.mxu1 %v3637_v53  ;;  %v3823_v54 = vpop.permute.xlu1 %3822  ;;  %v3614_v55 = vpop.permute.xlu0 %3613  ;;  %3765 = vmatprep.mubr.bf16.mxu0 %v14349_v2 }
 0x18f   : > { %v3624_v56 = vsel %vm362_vm2, %v3612_v45, %v3614_v55  ;;  %v3625_v57 = vsel %vm362_vm2, %v3614_v55, %v3616_v49  ;;  %13138 = vmatprep.subr.bf16.mxu1 %v14364_v32 }
 0x190   : > { %5177 = vrot.lane.b32.xlu1 %v15119_v1, %s14384_s21  ;;  %5173 = vrot.lane.b32.xlu0 %v15121_v19, %s14384_s21  ;;  %v3643_v58 = vsel %vm366_vm1, %v3624_v56, 0 }
 0x191   : > { %12626 = vmatmul.mubr.msk.bf16.vlgmr.msra.gmra.mrb[0].mxu1 %vm362_vm2, %v3602_v42  ;;  %12627 = vmatprep.subr.msk.bf16.mxu0 %vm366_vm1, %v3625_v57 }
 0x192   : > { %3734 = vmatpush1.bf16.msra.mxu0 %v3643_v58  ;;  %v3827_v12 = vpop.permute.xlu1 %3826  ;;  %v3618_v9 = vpop.permute.xlu0 %3617  ;;  %13140 = vmatprep.mubr.msk.bf16.mxu1 %vm14365_vm3, %v14364_v32 }
 0x193   : > { %v3626_v59 = vsel %vm362_vm2, %v3616_v49, %v3618_v9 }
 0x194   : > { %v3649_v60 = vsel %vm366_vm1, %v3626_v59, 0  ;;  %5181 = vrot.lane.b32.xlu1 %v15136_v26, %s14384_s21  ;;  %5175 = vrot.lane.b32.xlu0 %v15138_v27, %s14384_s21 }
 0x195   : > { %12628 = vmatmul.mubr.msk.bf16.vlgmr.msra.gmra.mrb[4].mxu0 %vm362_vm2, %v3602_v42  ;;  %13139 = vmatpush3.bf16.msra.mxu1 %v3649_v60 }
 0x196   : > { %v3831_v61 = vpop.permute.xlu1 %3830  ;;  %v3825_v62 = vpop.permute.xlu0 %3824  ;;  %3902 = vmatprep.mubr.bf16.mxu0 %v14349_v2 }
 0x197   : > { %v3839_v63 = vsel %vm3838_vm7, %v3823_v54, %v3825_v62  ;;  %v3840_v0 = vsel %vm3838_vm7, %v3825_v62, %v3827_v12 }
 0x198   : > { %5389 = vrot.lane.b32.xlu1 %v15104_v14, %s14385_s17  ;;  %5179 = vrot.lane.b32.xlu0 %v15151_v33, %s14384_s21  ;;  %v3850_v3 = vsel %vm366_vm1, %v3839_v63, 0 }
 0x199   : > { %13141 = vmatmul.mubr.msk.bf16.vlgmr.msra.gmra.mrb[4].mxu1 %vm362_vm2, %v3602_v42  ;;  %12630 = vmatprep.subr.msk.bf16.mxu0 %vm366_vm1, %v3840_v0 }
 0x19a   : > { %3871 = vmatpush1.bf16.msra.mxu0 %v3850_v3  ;;  %v3835_v4 = vpop.permute.xlu1 %3834  ;;  %v3829_v8 = vpop.permute.xlu0 %3828  ;;  %3943 = vmatprep.mubr.bf16.mxu1 %v14349_v2 }
 0x19b   : > { %v3841_v5 = vsel %vm3838_vm7, %v3827_v12, %v3829_v8  ;;  %v3842_v10 = vsel %vm3838_vm7, %v3829_v8, %v3831_v61 }
 0x19c   : > { %5393 = vrot.lane.b32.xlu1 %v15121_v19, %s14385_s17  ;;  %5183 = vrot.lane.b32.xlu0 %v15163_v39, %s14384_s21  ;;  %v3856_v15 = vsel %vm366_vm1, %v3841_v5, 0  ;;  %s14388_s21 = smov 34  }
 0x19d   : > { %12631 = vmatmul.mubr.msk.bf16.vlgmr.msra.gmra.mrb[0].mxu0 %vm362_vm2, %v15058_v7  ;;  %12632 = vmatprep.subr.msk.bf16.mxu1 %vm366_vm1, %v3842_v10 }
 0x19e   : > { %3912 = vmatpush1.bf16.msra.mxu1 %v3856_v15  ;;  %v4046_v16 = vpop.permute.xlu1 %4045  ;;  %v3833_v17 = vpop.permute.xlu0 %3832  ;;  %3984 = vmatprep.mubr.bf16.mxu0 %v14349_v2 }
 0x19f   : > { %v3843_v11 = vsel %vm3838_vm7, %v3831_v61, %v3833_v17  ;;  %v3844_v18 = vsel %vm3838_vm7, %v3833_v17, %v3835_v4  ;;  %13144 = vmatprep.subr.bf16.mxu1 %v14364_v32 }
 0x1a0   : > { %5395 = vrot.lane.b32.xlu1 %v15138_v27, %s14385_s17  ;;  %5391 = vrot.lane.b32.xlu0 %v15094_v13, %s14385_s17  ;;  %v3862_v20 = vsel %vm366_vm1, %v3843_v11, 0 }
 0x1a1   : > { %12634 = vmatprep.subr.msk.bf16.mxu0 %vm366_vm1, %v3844_v18  ;;  %12633 = vmatmul.mubr.msk.bf16.vlgmr.msra.gmra.mrb[0].mxu1 %vm362_vm2, %v15058_v7 }
 0x1a2   : > { %3953 = vmatpush1.bf16.msra.mxu0 %v3862_v20  ;;  %v4050_v21 = vpop.permute.xlu1 %4049  ;;  %v3837_v22 = vpop.permute.xlu0 %3836  ;;  %13146 = vmatprep.mubr.msk.bf16.mxu1 %vm14365_vm3, %v14364_v32 }
 0x1a3   : > { %v3845_v23 = vsel %vm3838_vm7, %v3835_v4, %v3837_v22  ;;  %vm5185_vm7 = vcmask 367616  }
 0x1a4   : > { %v3868_v24 = vsel %vm366_vm1, %v3845_v23, 0  ;;  %5399 = vrot.lane.b32.xlu1 %v15151_v33, %s14385_s17  ;;  %5387 = vrot.lane.b32.xlu0 %v15069_v6, %s14362_s26 }
 0x1a5   : > { %12635 = vmatmul.mubr.msk.bf16.vlgmr.msra.gmra.mrb[4].mxu0 %vm362_vm2, %v15058_v7  ;;  %13145 = vmatpush3.bf16.msra.mxu1 %v3868_v24 }
 0x1a6   : > { %v4052_v25 = vpop.permute.xlu1 %4051  ;;  %v4048_v28 = vpop.permute.xlu0 %4047  ;;  %4125 = vmatprep.mubr.bf16.mxu0 %v14349_v2 }
 0x1a7   : > { %v4062_v29 = vsel %vm4061_vm8, %v4046_v16, %v4048_v28  ;;  %v4063_v30 = vsel %vm4061_vm8, %v4048_v28, %v4050_v21  ;;  %v4064_v36 = vsel %vm4061_vm8, %v4050_v21, %v4052_v25 }
 0x1a8   : > { %5403 = vrot.lane.b32.xlu1 %v15163_v39, %s14385_s17  ;;  %5397 = vrot.lane.b32.xlu0 %v15119_v1, %s14385_s17  ;;  %v4073_v31 = vsel %vm366_vm1, %v4062_v29, 0  ;;  %v4079_v40 = vsel %vm366_vm1, %v4064_v36, 0  ;;  %v6267_v36 = vld [vmem:[%s17250_s3] sm:$0xff] }
 0x1a9   : > { %12638 = vmatprep.subr.msk.bf16.mxu0 %vm366_vm1, %v4063_v30  ;;  %13147 = vmatmul.mubr.msk.bf16.vlgmr.msra.gmra.mrb[4].mxu1 %vm362_vm2, %v15058_v7 }
 0x1aa   : > { %4094 = vmatpush1.bf16.msra.mxu0 %v4073_v31  ;;  %v4056_v34 = vpop.permute.xlu1 %4055  ;;  %v4044_v35 = vpop.permute.xlu0 %4043  ;;  %4166 = vmatprep.mubr.bf16.mxu1 %v14349_v2 }
 0x1ac   : > { %5611 = vrot.lane.b32.xlu1 %v15094_v13, %s14386_s19  ;;  %5401 = vrot.lane.b32.xlu0 %v15136_v26, %s14385_s17  ;;  %s14392_s17 = smov 101  }
 0x1ad   : > { %12639 = vmatmul.mubr.msk.bf16.vlgmr.msra.gmra.mrb[0].mxu0 %vm362_vm2, %v4044_v35 }
 0x1ae   : > { %v4060_v37 = vpop.permute.xlu1 %4059  ;;  %v4054_v38 = vpop.permute.xlu0 %4053  ;;  %4207 = vmatprep.mubr.bf16.mxu0 %v14349_v2 }
 0x1af   : > { %v4065_v7 = vsel %vm4061_vm8, %v4052_v25, %v4054_v38  ;;  %v4066_v41 = vsel %vm4061_vm8, %v4054_v38, %v4056_v34 }
 0x1b0   : > { %5607 = vrot.lane.b32.xlu1 %v15069_v6, %s14366_s30  ;;  %5609 = vrot.lane.b32.xlu0 %v15104_v14, %s14386_s19  ;;  %v4085_v47 = vsel %vm366_vm1, %v4066_v41, 0 }
 0x1b1   : > { %12640 = vmatprep.subr.msk.bf16.mxu1 %vm366_vm1, %v4065_v7 }
 0x1b2   : > { %4135 = vmatpush1.bf16.msra.mxu1 %v4079_v40  ;;  %v4292_v42 = vpop.permute.xlu1 %4291  ;;  %v4058_v43 = vpop.permute.xlu0 %4057 }
 0x1b3   : > { %v4068_v44 = vsel %vm4061_vm8, %v4058_v43, %v4060_v37  ;;  %v4067_v45 = vsel %vm4061_vm8, %v4056_v34, %v4058_v43  ;;  %13150 = vmatprep.subr.bf16.mxu1 %v14364_v32  ;;  %vm5405_vm8 = vcmask 359424  }
 0x1b4   : > { %5617 = vrot.lane.b32.xlu1 %v15119_v1, %s14386_s19  ;;  %5613 = vrot.lane.b32.xlu0 %v15121_v19, %s14386_s19  ;;  %v4091_v46 = vsel %vm366_vm1, %v4068_v44, 0 }
 0x1b5   : > { %12641 = vmatmul.mubr.msk.bf16.vlgmr.msra.gmra.mrb[0].mxu1 %vm362_vm2, %v4044_v35  ;;  %12642 = vmatprep.subr.msk.bf16.mxu0 %vm366_vm1, %v4067_v45 }
 0x1b6   : > { %4176 = vmatpush1.bf16.msra.mxu0 %v4085_v47  ;;  %13151 = vmatpush3.bf16.msra.mxu1 %v4091_v46  ;;  %v4268_v48 = vpop.permute.xlu1 %4267  ;;  %v4290_v49 = vpop.permute.xlu0 %4289 }
 0x1b7   : > { %13152 = vmatprep.mubr.msk.bf16.mxu1 %vm14365_vm3, %v14364_v32  ;;  %v4306_v50 = vsel %vm4305_vm9, %v4290_v49, %v4292_v42 }
 0x1b8   : > { %5621 = vrot.lane.b32.xlu1 %v15136_v26, %s14386_s19  ;;  %5615 = vrot.lane.b32.xlu0 %v15138_v27, %s14386_s19  ;;  %v4317_v54 = vsel %vm366_vm1, %v4306_v50, 0 }
 0x1b9   : > { %12643 = vmatmul.mubr.msk.bf16.vlgmr.msra.gmra.mrb[4].mxu0 %vm362_vm2, %v4044_v35 }
 0x1ba   : > { %v4298_v51 = vpop.permute.xlu1 %4297  ;;  %v4294_v52 = vpop.permute.xlu0 %4293  ;;  %4369 = vmatprep.mubr.bf16.mxu0 %v14349_v2 }
 0x1bb   : > { %v4307_v53 = vsel %vm4305_vm9, %v4292_v42, %v4294_v52 }
 0x1bc   : > { %5829 = vrot.lane.b32.xlu1 %v15104_v14, %s14387_s10  ;;  %5619 = vrot.lane.b32.xlu0 %v15151_v33, %s14386_s19 }
 0x1bd   : > { %13153 = vmatmul.mubr.msk.bf16.vlgmr.msra.gmra.mrb[4].mxu1 %vm362_vm2, %v4044_v35  ;;  %12653 = vmatprep.subr.msk.bf16.mxu0 %vm366_vm1, %v4307_v53 }
 0x1be   : > { %4338 = vmatpush1.bf16.msra.mxu0 %v4317_v54  ;;  %v4302_v55 = vpop.permute.xlu1 %4301  ;;  %v4296_v56 = vpop.permute.xlu0 %4295  ;;  %4410 = vmatprep.mubr.bf16.mxu1 %v14349_v2 }
 0x1bf   : > { %v4308_v57 = vsel %vm4305_vm9, %v4294_v52, %v4296_v56  ;;  %v4309_v58 = vsel %vm4305_vm9, %v4296_v56, %v4298_v51 }
 0x1c0   : > { %5833 = vrot.lane.b32.xlu1 %v15121_v19, %s14387_s10  ;;  %5623 = vrot.lane.b32.xlu0 %v15163_v39, %s14386_s19  ;;  %v4323_v12 = vsel %vm366_vm1, %v4308_v57, 0  ;;  %s14390_s19 = smov 111  }
 0x1c1   : > { %12654 = vmatmul.mubr.msk.bf16.vlgmr.msra.gmra.mrb[0].mxu0 %vm362_vm2, %v4268_v48  ;;  %12655 = vmatprep.subr.msk.bf16.mxu1 %vm366_vm1, %v4309_v58 }
 0x1c2   : > { %4379 = vmatpush1.bf16.msra.mxu1 %v4323_v12  ;;  %v4510_v9 = vpop.permute.xlu1 %4509  ;;  %v4300_v59 = vpop.permute.xlu0 %4299  ;;  %4451 = vmatprep.mubr.bf16.mxu0 %v14349_v2 }
 0x1c3   : > { %v4310_v60 = vsel %vm4305_vm9, %v4298_v51, %v4300_v59  ;;  %v4311_v61 = vsel %vm4305_vm9, %v4300_v59, %v4302_v55  ;;  %13156 = vmatprep.subr.bf16.mxu1 %v14364_v32 }
 0x1c4   : > { %5835 = vrot.lane.b32.xlu1 %v15138_v27, %s14387_s10  ;;  %5831 = vrot.lane.b32.xlu0 %v15094_v13, %s14387_s10  ;;  %v4329_v62 = vsel %vm366_vm1, %v4310_v60, 0 }
 0x1c5   : > { %12656 = vmatmul.mubr.msk.bf16.vlgmr.msra.gmra.mrb[0].mxu1 %vm362_vm2, %v4268_v48  ;;  %12657 = vmatprep.subr.msk.bf16.mxu0 %vm366_vm1, %v4311_v61 }
 0x1c6   : > { %4420 = vmatpush1.bf16.msra.mxu0 %v4329_v62  ;;  %v4514_v63 = vpop.permute.xlu1 %4513  ;;  %v4304_v0 = vpop.permute.xlu0 %4303  ;;  %13158 = vmatprep.mubr.msk.bf16.mxu1 %vm14365_vm3, %v14364_v32 }
 0x1c7   : > { %v4312_v3 = vsel %vm4305_vm9, %v4302_v55, %v4304_v0  ;;  %vm5625_vm9 = vcmask 293888  }
 0x1c8   : > { %v4335_v4 = vsel %vm366_vm1, %v4312_v3, 0  ;;  %5827 = vrot.lane.b32.xlu0 %v15069_v6, %s14368_s11  ;;  %5839 = vrot.lane.b32.xlu1 %v15151_v33, %s14387_s10 }
 0x1c9   : > { %12658 = vmatmul.mubr.msk.bf16.vlgmr.msra.gmra.mrb[4].mxu0 %vm362_vm2, %v4268_v48  ;;  %13157 = vmatpush3.bf16.msra.mxu1 %v4335_v4 }
 0x1ca   : > { %v4516_v8 = vpop.permute.xlu1 %4515  ;;  %v4512_v5 = vpop.permute.xlu0 %4511  ;;  %4589 = vmatprep.mubr.bf16.mxu0 %v14349_v2 }
 0x1cb   : > { %v4526_v10 = vsel %vm4525_vm10, %v4510_v9, %v4512_v5  ;;  %v4527_v15 = vsel %vm4525_vm10, %v4512_v5, %v4514_v63  ;;  %v4528_v18 = vsel %vm4525_vm10, %v4514_v63, %v4516_v8 }
 0x1cc   : > { %5837 = vrot.lane.b32.xlu0 %v15119_v1, %s14387_s10  ;;  %12660 = vmatprep.subr.msk.bf16.mxu0 %vm366_vm1, %v4527_v15  ;;  %v4537_v16 = vsel %vm366_vm1, %v4526_v10, 0  ;;  %v4543_v23 = vsel %vm366_vm1, %v4528_v18, 0 }
 0x1cd   : > { %13159 = vmatmul.mubr.msk.bf16.vlgmr.msra.gmra.mrb[4].mxu1 %vm362_vm2, %v4268_v48  ;;  %4558 = vmatpush1.bf16.msra.mxu0 %v4537_v16 }
 0x1ce   : > { %v4520_v17 = vpop.permute.xlu1 %4519  ;;  %v4508_v11 = vpop.permute.xlu0 %4507  ;;  %5843 = vrot.lane.b32.xlu1 %v15163_v39, %s14387_s10  ;;  %4630 = vmatprep.mubr.bf16.mxu1 %v14349_v2 }
 0x1d0   : > { %5841 = vrot.lane.b32.xlu0 %v15136_v26, %s14387_s10  ;;  %s14391_s10 = smov 109  }
 0x1d1   : > { %12661 = vmatmul.mubr.msk.bf16.vlgmr.msra.gmra.mrb[0].mxu0 %vm362_vm2, %v4508_v11 }
 0x1d2   : > { %v4524_v20 = vpop.permute.xlu1 %4523  ;;  %v4518_v21 = vpop.permute.xlu0 %4517  ;;  %6051 = vrot.lane.b32.xlu1 %v15094_v13, %s14388_s21  ;;  %4671 = vmatprep.mubr.bf16.mxu0 %v14349_v2 }
 0x1d3   : > { %v4529_v22 = vsel %vm4525_vm10, %v4516_v8, %v4518_v21  ;;  %v4530_v24 = vsel %vm4525_vm10, %v4518_v21, %v4520_v17 }
 0x1d4   : > { %6049 = vrot.lane.b32.xlu0 %v15104_v14, %s14388_s21  ;;  %12662 = vmatprep.subr.msk.bf16.mxu1 %vm366_vm1, %v4529_v22  ;;  %v4549_v30 = vsel %vm366_vm1, %v4530_v24, 0 }
 0x1d5   : > { %4599 = vmatpush1.bf16.msra.mxu1 %v4543_v23 }
 0x1d6   : > { %v4732_v25 = vpop.permute.xlu1 %4731  ;;  %v4522_v28 = vpop.permute.xlu0 %4521  ;;  %6047 = vrot.lane.b32.xlu1 %v15069_v6, %s14370_s15  ;;  %13162 = vmatprep.subr.bf16.mxu1 %v14364_v32 }
 0x1d7   : > { %v4532_v13 = vsel %vm4525_vm10, %v4522_v28, %v4524_v20  ;;  %v4531_v29 = vsel %vm4525_vm10, %v4520_v17, %v4522_v28  ;;  %vm5845_vm10 = vcmask 285696  }
 0x1d8   : > { %6053 = vrot.lane.b32.xlu0 %v15121_v19, %s14388_s21  ;;  %12663 = vmatmul.mubr.msk.bf16.vlgmr.msra.gmra.mrb[0].mxu1 %vm362_vm2, %v4508_v11  ;;  %v4555_v14 = vsel %vm366_vm1, %v4532_v13, 0 }
 0x1d9   : > { %12664 = vmatprep.subr.msk.bf16.mxu0 %vm366_vm1, %v4531_v29  ;;  %13163 = vmatpush3.bf16.msra.mxu1 %v4555_v14 }
 0x1da   : > { %4640 = vmatpush1.bf16.msra.mxu0 %v4549_v30  ;;  %v4728_v6 = vpop.permute.xlu1 %4727  ;;  %v4730_v31 = vpop.permute.xlu0 %4729  ;;  %6057 = vrot.lane.b32.xlu1 %v15119_v1, %s14388_s21 }
 0x1db   : > { %13164 = vmatprep.mubr.msk.bf16.mxu1 %vm14365_vm3, %v14364_v32  ;;  %v4746_v19 = vsel %vm4745_vm13, %v4730_v31, %v4732_v25 }
 0x1dc   : > { %6055 = vrot.lane.b32.xlu0 %v15138_v27, %s14388_s21  ;;  %v4757_v27 = vsel %vm366_vm1, %v4746_v19, 0 }
 0x1dd   : > { %12665 = vmatmul.mubr.msk.bf16.vlgmr.msra.gmra.mrb[4].mxu0 %vm362_vm2, %v4508_v11 }
 0x1de   : > { %v4738_v34 = vpop.permute.xlu1 %4737  ;;  %v4734_v35 = vpop.permute.xlu0 %4733  ;;  %6061 = vrot.lane.b32.xlu1 %v15136_v26, %s14388_s21  ;;  %4809 = vmatprep.mubr.bf16.mxu0 %v14349_v2 }
 0x1df   : > { %v4747_v1 = vsel %vm4745_vm13, %v4732_v25, %v4734_v35 }
 0x1e0   : > { %6059 = vrot.lane.b32.xlu0 %v15151_v33, %s14388_s21  ;;  %13165 = vmatmul.mubr.msk.bf16.vlgmr.msra.gmra.mrb[4].mxu1 %vm362_vm2, %v4508_v11 }
 0x1e1   : > { %12667 = vmatprep.subr.msk.bf16.mxu0 %vm366_vm1, %v4747_v1  ;;  %4850 = vmatprep.mubr.bf16.mxu1 %v14349_v2 }
 0x1e2   : > { %4778 = vmatpush1.bf16.msra.mxu0 %v4757_v27  ;;  %v4742_v26 = vpop.permute.xlu1 %4741  ;;  %v4736_v37 = vpop.permute.xlu0 %4735  ;;  %6270 = vperm.xlu1 %14274, %v6267_v36  }
 0x1e3   : > { %v4748_v38 = vsel %vm4745_vm13, %v4734_v35, %v4736_v37  ;;  %v4749_v7 = vsel %vm4745_vm13, %v4736_v37, %v4738_v34 }
 0x1e4   : > { %6063 = vrot.lane.b32.xlu0 %v15163_v39, %s14388_s21  ;;  %12669 = vmatprep.subr.msk.bf16.mxu1 %vm366_vm1, %v4749_v7  ;;  %v4763_v33 = vsel %vm366_vm1, %v4748_v38, 0  ;;  %v6280_v39 = vld [vmem:[%s17251_s4] sm:$0xff]  ;;  %s14389_s21 = smov 110  }
 0x1e5   : > { %12668 = vmatmul.mubr.msk.bf16.vlgmr.msra.gmra.mrb[0].mxu0 %vm362_vm2, %v4728_v6  ;;  %4819 = vmatpush1.bf16.msra.mxu1 %v4763_v33 }
 0x1e6   : > { %v4950_v40 = vpop.permute.xlu1 %4949  ;;  %v4740_v41 = vpop.permute.xlu0 %4739  ;;  %4891 = vmatprep.mubr.bf16.mxu0 %v14349_v2  ;;  %13168 = vmatprep.subr.bf16.mxu1 %v14364_v32 }
 0x1e7   : > { %v4750_v42 = vsel %vm4745_vm13, %v4738_v34, %v4740_v41  ;;  %v4751_v43 = vsel %vm4745_vm13, %v4740_v41, %v4742_v26 }
 0x1e8   : > { %12670 = vmatmul.mubr.msk.bf16.vlgmr.msra.gmra.mrb[0].mxu1 %vm362_vm2, %v4728_v6  ;;  %12671 = vmatprep.subr.msk.bf16.mxu0 %vm366_vm1, %v4751_v43  ;;  %v4769_v44 = vsel %vm366_vm1, %v4750_v42, 0 }
 0x1e9   : > { %4860 = vmatpush1.bf16.msra.mxu0 %v4769_v44  ;;  %13170 = vmatprep.mubr.msk.bf16.mxu1 %vm14365_vm3, %v14364_v32 }
 0x1ea   : > { %v4954_v45 = vpop.permute.xlu1 %4953  ;;  %v4744_v46 = vpop.permute.xlu0 %4743  ;;  %6283 = vperm.xlu0 %14275, %v6280_v39  }
 0x1eb   : > { %v4752_v47 = vsel %vm4745_vm13, %v4742_v26, %v4744_v46  ;;  %vm6065_vm13 = vcmask 277504  }
 0x1ec   : > { %v4775_v48 = vsel %vm366_vm1, %v4752_v47, 0 }
 0x1ed   : > { %12672 = vmatmul.mubr.msk.bf16.vlgmr.msra.gmra.mrb[4].mxu0 %vm362_vm2, %v4728_v6  ;;  %13169 = vmatpush3.bf16.msra.mxu1 %v4775_v48 }
 0x1ee   : > { %v4956_v49 = vpop.permute.xlu1 %4955  ;;  %v4952_v50 = vpop.permute.xlu0 %4951  ;;  %5029 = vmatprep.mubr.bf16.mxu0 %v14349_v2 }
 0x1ef   : > { %v4966_v51 = vsel %vm4965_vm4, %v4950_v40, %v4952_v50  ;;  %v4967_v52 = vsel %vm4965_vm4, %v4952_v50, %v4954_v45  ;;  %v4968_v56 = vsel %vm4965_vm4, %v4954_v45, %v4956_v49 }
 0x1f0   : > { %13171 = vmatmul.mubr.msk.bf16.vlgmr.msra.gmra.mrb[4].mxu1 %vm362_vm2, %v4728_v6  ;;  %12674 = vmatprep.subr.msk.bf16.mxu0 %vm366_vm1, %v4967_v52  ;;  %v4977_v53 = vsel %vm366_vm1, %v4966_v51, 0  ;;  %v4983_v9 = vsel %vm366_vm1, %v4968_v56, 0 }
 0x1f1   : > { %4998 = vmatpush1.bf16.msra.mxu0 %v4977_v53  ;;  %5070 = vmatprep.mubr.bf16.mxu1 %v14349_v2 }
 0x1f2   : > { %v4960_v54 = vpop.permute.xlu1 %4959  ;;  %v4948_v55 = vpop.permute.xlu0 %4947 }
 0x1f5   : > { %12675 = vmatmul.mubr.msk.bf16.vlgmr.msra.gmra.mrb[0].mxu0 %vm362_vm2, %v4948_v55 }
 0x1f6   : > { %v4964_v57 = vpop.permute.xlu1 %4963  ;;  %v4958_v58 = vpop.permute.xlu0 %4957  ;;  %5111 = vmatprep.mubr.bf16.mxu0 %v14349_v2 }
 0x1f7   : > { %v4969_v12 = vsel %vm4965_vm4, %v4956_v49, %v4958_v58  ;;  %v4970_v59 = vsel %vm4965_vm4, %v4958_v58, %v4960_v54 }
 0x1f8   : > { %12676 = vmatprep.subr.msk.bf16.mxu1 %vm366_vm1, %v4969_v12  ;;  %v4989_v0 = vsel %vm366_vm1, %v4970_v59, 0 }
 0x1f9   : > { %5039 = vmatpush1.bf16.msra.mxu1 %v4983_v9 }
 0x1fa   : > { %v5172_v60 = vpop.permute.xlu1 %5171  ;;  %v4962_v61 = vpop.permute.xlu0 %4961  ;;  %13174 = vmatprep.subr.bf16.mxu1 %v14364_v32 }
 0x1fb   : > { %v4972_v62 = vsel %vm4965_vm4, %v4962_v61, %v4964_v57  ;;  %v4971_v63 = vsel %vm4965_vm4, %v4960_v54, %v4962_v61  ;;  %vm6425_vm4 = vcmask 900096  }
 0x1fc   : > { %12677 = vmatmul.mubr.msk.bf16.vlgmr.msra.gmra.mrb[0].mxu1 %vm362_vm2, %v4948_v55  ;;  %12678 = vmatprep.subr.msk.bf16.mxu0 %vm366_vm1, %v4971_v63  ;;  %v4995_v3 = vsel %vm366_vm1, %v4972_v62, 0 }
 0x1fd   : > { %5080 = vmatpush1.bf16.msra.mxu0 %v4989_v0  ;;  %13175 = vmatpush3.bf16.msra.mxu1 %v4995_v3 }
 0x1fe   : > { %v5168_v4 = vpop.permute.xlu1 %5167  ;;  %v5170_v8 = vpop.permute.xlu0 %5169  ;;  %13176 = vmatprep.mubr.msk.bf16.mxu1 %vm14365_vm3, %v14364_v32 }
 0x1ff   : > { %v5186_v5 = vsel %vm5185_vm7, %v5170_v8, %v5172_v60 }
 0x200   : > { %12679 = vmatmul.mubr.msk.bf16.vlgmr.msra.gmra.mrb[4].mxu0 %vm362_vm2, %v4948_v55  ;;  %v5197_v17 = vsel %vm366_vm1, %v5186_v5, 0 }
 0x201   : > { %5249 = vmatprep.mubr.bf16.mxu0 %v14349_v2 }
 0x202   : > { %v5178_v10 = vpop.permute.xlu1 %5177  ;;  %v5174_v15 = vpop.permute.xlu0 %5173 }
 0x203   : > { %v5187_v16 = vsel %vm5185_vm7, %v5172_v60, %v5174_v15 }
 0x204   : > { %13177 = vmatmul.mubr.msk.bf16.vlgmr.msra.gmra.mrb[4].mxu1 %vm362_vm2, %v4948_v55  ;;  %12681 = vmatprep.subr.msk.bf16.mxu0 %vm366_vm1, %v5187_v16 }
 0x205   : > { %5218 = vmatpush1.bf16.msra.mxu0 %v5197_v17  ;;  %5290 = vmatprep.mubr.bf16.mxu1 %v14349_v2 }
 0x206   : > { %v5182_v11 = vpop.permute.xlu1 %5181  ;;  %v5176_v18 = vpop.permute.xlu0 %5175 }
 0x207   : > { %v5188_v20 = vsel %vm5185_vm7, %v5174_v15, %v5176_v18  ;;  %v5189_v21 = vsel %vm5185_vm7, %v5176_v18, %v5178_v10 }
 0x208   : > { %12682 = vmatmul.mubr.msk.bf16.vlgmr.msra.gmra.mrb[0].mxu0 %vm362_vm2, %v5168_v4  ;;  %12683 = vmatprep.subr.msk.bf16.mxu1 %vm366_vm1, %v5189_v21  ;;  %v5203_v22 = vsel %vm366_vm1, %v5188_v20, 0 }
 0x209   : > { %5259 = vmatpush1.bf16.msra.mxu1 %v5203_v22  ;;  %5331 = vmatprep.mubr.bf16.mxu0 %v14349_v2 }
 0x20a   : > { %v5390_v23 = vpop.permute.xlu1 %5389  ;;  %v5180_v24 = vpop.permute.xlu0 %5179  ;;  %13180 = vmatprep.subr.bf16.mxu1 %v14364_v32 }
 0x20b   : > { %v5190_v25 = vsel %vm5185_vm7, %v5178_v10, %v5180_v24  ;;  %v5191_v28 = vsel %vm5185_vm7, %v5180_v24, %v5182_v11 }
 0x20c   : > { %12684 = vmatmul.mubr.msk.bf16.vlgmr.msra.gmra.mrb[0].mxu1 %vm362_vm2, %v5168_v4  ;;  %12685 = vmatprep.subr.msk.bf16.mxu0 %vm366_vm1, %v5191_v28  ;;  %v5209_v13 = vsel %vm366_vm1, %v5190_v25, 0 }
 0x20d   : > { %5300 = vmatpush1.bf16.msra.mxu0 %v5209_v13  ;;  %13182 = vmatprep.mubr.msk.bf16.mxu1 %vm14365_vm3, %v14364_v32 }
 0x20e   : > { %v5394_v29 = vpop.permute.xlu1 %5393  ;;  %v5184_v14 = vpop.permute.xlu0 %5183 }
 0x20f   : > { %v5192_v30 = vsel %vm5185_vm7, %v5182_v11, %v5184_v14  ;;  %vm6636_vm7 = vcmask 908288  }
 0x210   : > { %v5215_v6 = vsel %vm366_vm1, %v5192_v30, 0  ;;  %12686 = vmatmul.mubr.msk.bf16.vlgmr.msra.gmra.mrb[4].mxu0 %vm362_vm2, %v5168_v4 }
 0x211   : > { %13181 = vmatpush3.bf16.msra.mxu1 %v5215_v6  ;;  %5469 = vmatprep.mubr.bf16.mxu0 %v14349_v2 }
 0x212   : > { %v5396_v31 = vpop.permute.xlu1 %5395  ;;  %v5392_v19 = vpop.permute.xlu0 %5391 }
 0x213   : > { %v5406_v34 = vsel %vm5405_vm8, %v5390_v23, %v5392_v19  ;;  %v5407_v35 = vsel %vm5405_vm8, %v5392_v19, %v5394_v29  ;;  %v5408_v26 = vsel %vm5405_vm8, %v5394_v29, %v5396_v31 }
 0x214   : > { %13183 = vmatmul.mubr.msk.bf16.vlgmr.msra.gmra.mrb[4].mxu1 %vm362_vm2, %v5168_v4  ;;  %12688 = vmatprep.subr.msk.bf16.mxu0 %vm366_vm1, %v5407_v35  ;;  %v5417_v1 = vsel %vm366_vm1, %v5406_v34, 0  ;;  %v5423_v33 = vsel %vm366_vm1, %v5408_v26, 0 }
 0x215   : > { %5438 = vmatpush1.bf16.msra.mxu0 %v5417_v1  ;;  %5510 = vmatprep.mubr.bf16.mxu1 %v14349_v2 }
 0x216   : > { %v5400_v36 = vpop.permute.xlu1 %5399  ;;  %v5388_v27 = vpop.permute.xlu0 %5387 }
 0x218   : > { %12689 = vmatmul.mubr.msk.bf16.vlgmr.msra.gmra.mrb[0].mxu0 %vm362_vm2, %v5388_v27 }
 0x219   : > { %5551 = vmatprep.mubr.bf16.mxu0 %v14349_v2 }
 0x21a   : > { %v5404_v37 = vpop.permute.xlu1 %5403  ;;  %v5398_v38 = vpop.permute.xlu0 %5397 }
 0x21b   : > { %v5409_v7 = vsel %vm5405_vm8, %v5396_v31, %v5398_v38  ;;  %v5410_v40 = vsel %vm5405_vm8, %v5398_v38, %v5400_v36 }
 0x21c   : > { %12690 = vmatprep.subr.msk.bf16.mxu1 %vm366_vm1, %v5409_v7  ;;  %v5429_v44 = vsel %vm366_vm1, %v5410_v40, 0 }
 0x21d   : > { %5479 = vmatpush1.bf16.msra.mxu1 %v5423_v33 }
 0x21e   : > { %v5612_v41 = vpop.permute.xlu1 %5611  ;;  %v5402_v42 = vpop.permute.xlu0 %5401  ;;  %13186 = vmatprep.subr.bf16.mxu1 %v14364_v32 }
 0x21f   : > { %v5412_v43 = vsel %vm5405_vm8, %v5402_v42, %v5404_v37  ;;  %v5411_v39 = vsel %vm5405_vm8, %v5400_v36, %v5402_v42  ;;  %vm6849_vm8 = vcmask 891904  }
 0x220   : > { %12691 = vmatmul.mubr.msk.bf16.vlgmr.msra.gmra.mrb[0].mxu1 %vm362_vm2, %v5388_v27  ;;  %12692 = vmatprep.subr.msk.bf16.mxu0 %vm366_vm1, %v5411_v39  ;;  %v5435_v45 = vsel %vm366_vm1, %v5412_v43, 0  ;;  %v15682_v39 = vld [vmem:[%s17249_s2] sm:$0xf] }
 0x221   : > { %5520 = vmatpush1.bf16.msra.mxu0 %v5429_v44  ;;  %13187 = vmatpush3.bf16.msra.mxu1 %v5435_v45  ;;  %v15686_v44 = vcombine.low %v15682_v39, %v15682_v39  ;;  %v6304_v45 = vlaneseq }
 0x222   : > { %v5608_v46 = vpop.permute.xlu1 %5607  ;;  %v5610_v47 = vpop.permute.xlu0 %5609  ;;  %13188 = vmatprep.mubr.msk.bf16.mxu1 %vm14365_vm3, %v14364_v32 }
 0x223   : > { %v5626_v48 = vsel %vm5625_vm9, %v5610_v47, %v5612_v41  ;;  %6387 = vrot.lane.b32.xlu1 %v15686_v44, %s14348_s9  ;;  %6831 = vrot.lane.b32.xlu0 %v15686_v44, %s17270_s16  ;;  %s14394_s16 = smov 99  }
 0x224   : > { %12693 = vmatmul.mubr.msk.bf16.vlgmr.msra.gmra.mrb[4].mxu0 %vm362_vm2, %v5388_v27  ;;  %v5637_v52 = vsel %vm366_vm1, %v5626_v48, 0 }
 0x225   : > { %5689 = vmatprep.mubr.bf16.mxu0 %v14349_v2 }
 0x226   : > { %v5618_v49 = vpop.permute.xlu1 %5617  ;;  %v5614_v50 = vpop.permute.xlu0 %5613 }
 0x227   : > { %v5627_v51 = vsel %vm5625_vm9, %v5612_v41, %v5614_v50  ;;  %7051 = vrot.lane.b32.xlu1 %v15686_v44, %s17269_s18  ;;  %s14393_s18 = smov 100  }
 0x228   : > { %13189 = vmatmul.mubr.msk.bf16.vlgmr.msra.gmra.mrb[4].mxu1 %vm362_vm2, %v5388_v27  ;;  %12695 = vmatprep.subr.msk.bf16.mxu0 %vm366_vm1, %v5627_v51  ;;  %v6302_v51 = vld [vmem:[%s17254_s7] sm:$0xff] }
 0x229   : > { %5658 = vmatpush1.bf16.msra.mxu0 %v5637_v52  ;;  %5730 = vmatprep.mubr.bf16.mxu1 %v14349_v2 }
 0x22a   : > { %v5622_v53 = vpop.permute.xlu1 %5621  ;;  %v5616_v54 = vpop.permute.xlu0 %5615 }
 0x22b   : > { %v5628_v55 = vsel %vm5625_vm9, %v5614_v50, %v5616_v54  ;;  %v5629_v56 = vsel %vm5625_vm9, %v5616_v54, %v5618_v49 }
 0x22c   : > { %12696 = vmatmul.mubr.msk.bf16.vlgmr.msra.gmra.mrb[0].mxu0 %vm362_vm2, %v5608_v46  ;;  %12697 = vmatprep.subr.msk.bf16.mxu1 %vm366_vm1, %v5629_v56  ;;  %v5643_v57 = vsel %vm366_vm1, %v5628_v55, 0 }
 0x22d   : > { %5699 = vmatpush1.bf16.msra.mxu1 %v5643_v57  ;;  %5771 = vmatprep.mubr.bf16.mxu0 %v14349_v2 }
 0x22e   : > { %v5830_v58 = vpop.permute.xlu1 %5829  ;;  %v5620_v12 = vpop.permute.xlu0 %5619  ;;  %13192 = vmatprep.subr.bf16.mxu1 %v14364_v32 }
 0x22f   : > { %v5630_v9 = vsel %vm5625_vm9, %v5618_v49, %v5620_v12  ;;  %v5631_v59 = vsel %vm5625_vm9, %v5620_v12, %v5622_v53 }
 0x230   : > { %12698 = vmatmul.mubr.msk.bf16.vlgmr.msra.gmra.mrb[0].mxu1 %vm362_vm2, %v5608_v46  ;;  %12699 = vmatprep.subr.msk.bf16.mxu0 %vm366_vm1, %v5631_v59  ;;  %v5649_v60 = vsel %vm366_vm1, %v5630_v9, 0 }
 0x231   : > { %5740 = vmatpush1.bf16.msra.mxu0 %v5649_v60  ;;  %13194 = vmatprep.mubr.msk.bf16.mxu1 %vm14365_vm3, %v14364_v32 }
 0x232   : > { %v5834_v61 = vpop.permute.xlu1 %5833  ;;  %v5624_v62 = vpop.permute.xlu0 %5623 }
 0x233   : > { %v5632_v63 = vsel %vm5625_vm9, %v5622_v53, %v5624_v62  ;;  %vm7069_vm9 = vcmask 826368  }
 0x234   : > { %v5655_v0 = vsel %vm366_vm1, %v5632_v63, 0  ;;  %12700 = vmatmul.mubr.msk.bf16.vlgmr.msra.gmra.mrb[4].mxu0 %vm362_vm2, %v5608_v46 }
 0x235   : > { %13193 = vmatpush3.bf16.msra.mxu1 %v5655_v0  ;;  %5909 = vmatprep.mubr.bf16.mxu0 %v14349_v2 }
 0x236   : > { %v5836_v3 = vpop.permute.xlu1 %5835  ;;  %v5832_v4 = vpop.permute.xlu0 %5831 }
 0x237   : > { %v5846_v8 = vsel %vm5845_vm10, %v5830_v58, %v5832_v4  ;;  %v5847_v5 = vsel %vm5845_vm10, %v5832_v4, %v5834_v61  ;;  %v5848_v17 = vsel %vm5845_vm10, %v5834_v61, %v5836_v3 }
 0x238   : > { %13195 = vmatmul.mubr.msk.bf16.vlgmr.msra.gmra.mrb[4].mxu1 %vm362_vm2, %v5608_v46  ;;  %12702 = vmatprep.subr.msk.bf16.mxu0 %vm366_vm1, %v5847_v5  ;;  %v5857_v10 = vsel %vm366_vm1, %v5846_v8, 0  ;;  %v5863_v20 = vsel %vm366_vm1, %v5848_v17, 0  ;;  %v6305_v46 = vshrl.u32 %v6304_v45, 7 }
 0x239   : > { %5878 = vmatpush1.bf16.msra.mxu0 %v5857_v10  ;;  %5950 = vmatprep.mubr.bf16.mxu1 %v14349_v2 }
 0x23a   : > { %v5828_v15 = vpop.permute.xlu0 %5827  ;;  %v5840_v16 = vpop.permute.xlu1 %5839  ;;  %v6306_v48 = vsub.s32 0, %v6305_v46  ;;  %v6310_v52 = vsub.s32 1, %v6305_v46  ;;  %v6314_v9 = vsub.s32 2, %v6305_v46  ;;  %v6318_v62 = vsub.s32 3, %v6305_v46 }
 0x23c   : > { %12703 = vmatmul.mubr.msk.bf16.vlgmr.msra.gmra.mrb[0].mxu0 %vm362_vm2, %v5828_v15  ;;  %v6307_v12 = vrot.slane %v6302_v51, %v6306_v48  ;;  %v6311_v61 = vrot.slane %v6302_v51, %v6310_v52 }
 0x23d   : > { %5991 = vmatprep.mubr.bf16.mxu0 %v14349_v2 }
 0x23e   : > { %v5838_v11 = vpop.permute.xlu0 %5837 }
 0x23f   : > { %v5849_v18 = vsel %vm5845_vm10, %v5836_v3, %v5838_v11  ;;  %v5850_v22 = vsel %vm5845_vm10, %v5838_v11, %v5840_v16  ;;  %v6322_v11 = vsub.s32 4, %v6305_v46 }
 0x240   : > { %12704 = vmatprep.subr.msk.bf16.mxu1 %vm366_vm1, %v5849_v18  ;;  %v5844_v21 = vpop.permute.xlu1 %5843  ;;  %v5869_v28 = vsel %vm366_vm1, %v5850_v22, 0 }
 0x241   : > { %5919 = vmatpush1.bf16.msra.mxu1 %v5863_v20 }
 0x242   : > { %v5842_v23 = vpop.permute.xlu0 %5841  ;;  %13198 = vmatprep.subr.bf16.mxu1 %v14364_v32 }
 0x243   : > { %v5852_v24 = vsel %vm5845_vm10, %v5842_v23, %v5844_v21  ;;  %v5851_v25 = vsel %vm5845_vm10, %v5840_v16, %v5842_v23  ;;  %v6319_v21 = vrot.slane %v6302_v51, %v6318_v62  ;;  %v6326_v23 = vsub.s32 5, %v6305_v46 }
 0x244   : > { %12705 = vmatmul.mubr.msk.bf16.vlgmr.msra.gmra.mrb[0].mxu1 %vm362_vm2, %v5828_v15  ;;  %12706 = vmatprep.subr.msk.bf16.mxu0 %vm366_vm1, %v5851_v25  ;;  %v5875_v13 = vsel %vm366_vm1, %v5852_v24, 0  ;;  %v6052_v29 = vpop.permute.xlu1 %6051  ;;  %vm7289_vm10 = vcmask 818176  }
 0x245   : > { %5960 = vmatpush1.bf16.msra.mxu0 %v5869_v28  ;;  %13199 = vmatpush3.bf16.msra.mxu1 %v5875_v13 }
 0x246   : > { %v6050_v14 = vpop.permute.xlu0 %6049  ;;  %13200 = vmatprep.mubr.msk.bf16.mxu1 %vm14365_vm3, %v14364_v32 }
 0x247   : > { %v6066_v6 = vsel %vm6065_vm13, %v6050_v14, %v6052_v29 }
 0x248   : > { %12707 = vmatmul.mubr.msk.bf16.vlgmr.msra.gmra.mrb[4].mxu0 %vm362_vm2, %v5828_v15  ;;  %v6048_v30 = vpop.permute.xlu1 %6047  ;;  %v6077_v34 = vsel %vm366_vm1, %v6066_v6, 0 }
 0x249   : > { %6129 = vmatprep.mubr.bf16.mxu0 %v14349_v2 }
 0x24a   : > { %v6054_v31 = vpop.permute.xlu0 %6053 }
 0x24b   : > { %v6067_v19 = vsel %vm6065_vm13, %v6052_v29, %v6054_v31 }
 0x24c   : > { %13201 = vmatmul.mubr.msk.bf16.vlgmr.msra.gmra.mrb[4].mxu1 %vm362_vm2, %v5828_v15  ;;  %12709 = vmatprep.subr.msk.bf16.mxu0 %vm366_vm1, %v6067_v19  ;;  %v6058_v35 = vpop.permute.xlu1 %6057  ;;  %v6315_v15 = vrot.slane %v6302_v51, %v6314_v9  ;;  %v6323_v19 = vrot.slane %v6302_v51, %v6322_v11 }
 0x24d   : > { %6098 = vmatpush1.bf16.msra.mxu0 %v6077_v34  ;;  %6170 = vmatprep.mubr.bf16.mxu1 %v14349_v2 }
 0x24e   : > { %v6056_v1 = vpop.permute.xlu0 %6055 }
 0x24f   : > { %v6068_v36 = vsel %vm6065_vm13, %v6054_v31, %v6056_v1  ;;  %v6069_v27 = vsel %vm6065_vm13, %v6056_v1, %v6058_v35 }
 0x250   : > { %12710 = vmatmul.mubr.msk.bf16.vlgmr.msra.gmra.mrb[0].mxu0 %vm362_vm2, %v6048_v30  ;;  %12711 = vmatprep.subr.msk.bf16.mxu1 %vm366_vm1, %v6069_v27  ;;  %v6083_v26 = vsel %vm366_vm1, %v6068_v36, 0  ;;  %v6062_v37 = vpop.permute.xlu1 %6061  ;;  %v6327_v27 = vrot.slane %v6302_v51, %v6326_v23 }
 0x251   : > { %6139 = vmatpush1.bf16.msra.mxu1 %v6083_v26  ;;  %6211 = vmatprep.mubr.bf16.mxu0 %v14349_v2 }
 0x252   : > { %v6060_v38 = vpop.permute.xlu0 %6059  ;;  %13204 = vmatprep.subr.bf16.mxu1 %v14364_v32 }
 0x253   : > { %v6070_v7 = vsel %vm6065_vm13, %v6058_v35, %v6060_v38  ;;  %v6071_v33 = vsel %vm6065_vm13, %v6060_v38, %v6062_v37  ;;  %v6330_v35 = vsub.s32 6, %v6305_v46 }
 0x254   : > { %12712 = vmatmul.mubr.msk.bf16.vlgmr.msra.gmra.mrb[0].mxu1 %vm362_vm2, %v6048_v30  ;;  %12713 = vmatprep.subr.msk.bf16.mxu0 %vm366_vm1, %v6071_v33  ;;  %v6089_v40 = vsel %vm366_vm1, %v6070_v7, 0 }
 0x255   : > { %6180 = vmatpush1.bf16.msra.mxu0 %v6089_v40  ;;  %13206 = vmatprep.mubr.msk.bf16.mxu1 %vm14365_vm3, %v14364_v32  ;;  %v6331_v45 = vrot.slane %v6302_v51, %v6330_v35 }
 0x256   : > { %v6064_v41 = vpop.permute.xlu0 %6063 }
 0x257   : > { %v6072_v42 = vsel %vm6065_vm13, %v6062_v37, %v6064_v41  ;;  %vm7509_vm13 = vcmask 809984  }
 0x258   : > { %v6095_v43 = vsel %vm366_vm1, %v6072_v42, 0  ;;  %12714 = vmatmul.mubr.msk.bf16.vlgmr.msra.gmra.mrb[4].mxu0 %vm362_vm2, %v6048_v30 }
 0x259   : > { %13205 = vmatpush3.bf16.msra.mxu1 %v6095_v43  ;;  %6489 = vmatprep.mubr.bf16.mxu0 %v14349_v2 }
 0x25c   : > { %13207 = vmatmul.mubr.msk.bf16.vlgmr.msra.gmra.mrb[4].mxu1 %vm362_vm2, %v6048_v30 }
 0x25d   : > { %6530 = vmatprep.mubr.bf16.mxu1 %v14349_v2 }
 0x261   : > { %v6271_v47 = vpop.permute.xlu1 %6270 }
 0x269   : > { %v6284_v50 = vpop.permute.xlu0 %6283 }
 0x295   : > { %v15833_v62 = vpop.permute.xlu1 %6387 }
 0x323   : > { %v6131_v49 = vpop.f32.mrb[0].mxu0 }
 0x324   : > { %v6273_v53 = vmul.f32 %v6271_v47, %v6131_v49  ;;  %v6133_v54 = vpop.f32.mrb[1].mxu0 }
 0x325   : > { %v6274_v55 = vmul.f32 %v6271_v47, %v6133_v54  ;;  %v6135_v56 = vpop.f32.mrb[2].mxu0 }
 0x326   : > { %v6286_v57 = vadd.f32 %v6284_v50, %v6273_v53  ;;  %v6136_v58 = vpop.f32.mrb[3].mxu0 }
 0x327   : > { %v6287_v59 = vadd.f32 %v6284_v50, %v6274_v55  ;;  %v6172_v60 = vpop.f32.mrb[0].mxu1 }
 0x328   : > { %v6293_v63 = vmax.f32 %v6286_v57, 0.0  ;;  %v6275_v0 = vmul.f32 %v6271_v47, %v6172_v60  ;;  %v6174_v3 = vpop.f32.mrb[1].mxu1 }
 0x329   : > { %v6294_v4 = vmax.f32 %v6287_v59, 0.0  ;;  %v6276_v8 = vmul.f32 %v6271_v47, %v6174_v3  ;;  %v6176_v5 = vpop.f32.mrb[2].mxu1 }
 0x32a   : > { %v6288_v10 = vadd.f32 %v6284_v50, %v6275_v0  ;;  %v15697_v16 = vmul.f32 %v6307_v12, %v6293_v63  ;;  %v6177_v17 = vpop.f32.mrb[3].mxu1  ;;  %v15843_v63 = vpop.permute.xlu1 %7051 }
 0x32b   : > { %v15699_v18 = vmul.f32 %v6311_v61, %v6294_v4  ;;  %v6289_v20 = vadd.f32 %v6284_v50, %v6276_v8  ;;  %v6213_v22 = vpop.f32.mrb[4].mxu0  ;;  %v15849_v0 = vpop.permute.xlu0 %6831 }
 0x32c   : > { %v6295_v24 = vmax.f32 %v6288_v10, 0.0  ;;  %v6277_v25 = vmul.f32 %v6271_v47, %v6213_v22  ;;  %v6215_v28 = vpop.f32.mrb[5].mxu0 }
 0x32d   : > { %v12936_v13 = vpack.c.bf16 %v15699_v18, %v15697_v16  ;;  %v6296_v29 = vmax.f32 %v6289_v20, 0.0  ;;  %v6278_v14 = vmul.f32 %v6271_v47, %v6215_v28  ;;  %v6217_v30 = vpop.f32.mrb[6].mxu0 }
 0x32e   : > { %v15703_v6 = vmul.f32 %v6315_v15, %v6295_v24  ;;  %v6290_v31 = vadd.f32 %v6284_v50, %v6277_v25  ;;  %v6218_v34 = vpop.f32.mrb[7].mxu0 }
 0x32f   : > { %6375 = vst [vmem:[#allocation2 + $0x4] sm:$0xff] %v12936_v13  ;;  %v15705_v1 = vmul.f32 %v6319_v21, %v6296_v29  ;;  %v6291_v36 = vadd.f32 %v6284_v50, %v6278_v14  ;;  %v6254_v26 = vpop.f32.mrb[4].mxu1 }
 0x330   : > { %v6297_v37 = vmax.f32 %v6290_v31, 0.0  ;;  %v6279_v38 = vmul.f32 %v6271_v47, %v6254_v26  ;;  %v13208_v7 = vpop.f32.mrb[5].mxu1 }
 0x331   : > { %v12937_v33 = vpack.c.bf16 %v15705_v1, %v15703_v6  ;;  %v6298_v40 = vmax.f32 %v6291_v36, 0.0  ;;  %v6257_v41 = vpop.f32.mrb[6].mxu1 }
 0x332   : > { %v15709_v42 = vmul.f32 %v6323_v19, %v6297_v37  ;;  %v6292_v43 = vadd.f32 %v6284_v50, %v6279_v38  ;;  %v13209_v48 = vpop.f32.mrb[7].mxu1 }
 0x333   : > { %6376 = vst [vmem:[#allocation2 + $0xc] sm:$0xff] %v12937_v33  ;;  %v15711_v46 = vmul.f32 %v6327_v27, %v6298_v40 }
 0x334   : > { %v6299_v49 = vmax.f32 %v6292_v43, 0.0 }
 0x335   : > { %v12938_v52 = vpack.c.bf16 %v15711_v46, %v15709_v42 }
 0x336   : > { %v6380_v53 = vld [vmem:[#allocation2] sm:$0xff]  ;;  %v6345_v47 = vmul.f32 %v6331_v45, %v6299_v49 }
 0x337   : > { %v15715_v54 = vcombine.low %v6380_v53, %v6380_v53  ;;  %6377 = vst [vmem:[#allocation2 + $0x14] sm:$0xff] %v12938_v52  ;;  %v15719_v51 = vcombine.high %v6380_v53, %v6380_v53 }
 0x338   : > { %v12939_v55 = vpack.c.bf16 %v6345_v47, %v6345_v47 }
 0x339   : > { %6409 = vrot.lane.b32.xlu1 %v15715_v54, %s14389_s21 }
 0x33a   : > { %v6381_v50 = vld [vmem:[#allocation2 + $0x8] sm:$0xff]  ;;  %6378 = vst [vmem:[#allocation2 + $0x1c] sm:$0xf] %v12939_v55 }
 0x33b   : > { %v15721_v56 = vcombine.low %v6381_v50, %v6381_v50  ;;  %v15727_v57 = vcombine.high %v6381_v50, %v6381_v50 }
 0x33d   : > { %6413 = vrot.lane.b32.xlu0 %v15721_v56, %s14389_s21  ;;  %6411 = vrot.lane.b32.xlu1 %v15719_v51, %s14389_s21 }
 0x33e   : > { %v6382_v58 = vld [vmem:[#allocation2 + $0x10] sm:$0xff] }
 0x33f   : > { %v15757_v12 = vcombine.low %v6382_v58, %v6382_v58  ;;  %v15763_v59 = vcombine.high %v6382_v58, %v6382_v58 }
 0x341   : > { %6622 = vrot.lane.b32.xlu0 %v15719_v51, %s14390_s19  ;;  %6415 = vrot.lane.b32.xlu1 %v15727_v57, %s14389_s21  ;;  %v6383_v9 = vld [vmem:[#allocation2 + $0x18] sm:$0xff] }
 0x342   : > { %v15765_v60 = vcombine.low %v6383_v9, %v6383_v9  ;;  %v15771_v61 = vcombine.high %v6383_v9, %v6383_v9 }
 0x345   : > { %6626 = vrot.lane.b32.xlu0 %v15727_v57, %s14390_s19  ;;  %6620 = vrot.lane.b32.xlu1 %v15715_v54, %s14390_s19 }
 0x349   : > { %6835 = vrot.lane.b32.xlu0 %v15719_v51, %s14391_s10  ;;  %6624 = vrot.lane.b32.xlu1 %v15721_v56, %s14390_s19 }
 0x34d   : > { %6839 = vrot.lane.b32.xlu0 %v15727_v57, %s14391_s10  ;;  %6833 = vrot.lane.b32.xlu1 %v15715_v54, %s14391_s10 }
 0x351   : > { %7053 = vrot.lane.b32.xlu0 %v15715_v54, %s14392_s17  ;;  %6837 = vrot.lane.b32.xlu1 %v15721_v56, %s14391_s10 }
 0x355   : > { %7057 = vrot.lane.b32.xlu0 %v15721_v56, %s14392_s17  ;;  %7055 = vrot.lane.b32.xlu1 %v15719_v51, %s14392_s17 }
 0x359   : > { %7275 = vrot.lane.b32.xlu0 %v15719_v51, %s14393_s18  ;;  %7059 = vrot.lane.b32.xlu1 %v15727_v57, %s14392_s17 }
 0x35d   : > { %7273 = vrot.lane.b32.xlu1 %v15715_v54, %s14393_s18  ;;  %6417 = vrot.lane.b32.xlu0 %v15757_v12, %s14389_s21 }
 0x361   : > { %6421 = vrot.lane.b32.xlu1 %v15765_v60, %s14389_s21  ;;  %6419 = vrot.lane.b32.xlu0 %v15763_v59, %s14389_s21 }
 0x365   : > { %7277 = vrot.lane.b32.xlu1 %v15721_v56, %s14393_s18  ;;  %6423 = vrot.lane.b32.xlu0 %v15771_v61, %s14389_s21  ;;  %s14395_s21 = smov 91  }
 0x369   : > { %6628 = vrot.lane.b32.xlu1 %v15757_v12, %s14390_s19  ;;  %7279 = vrot.lane.b32.xlu0 %v15727_v57, %s14393_s18 }
 0x36d   : > { %6632 = vrot.lane.b32.xlu1 %v15765_v60, %s14390_s19  ;;  %7271 = vrot.lane.b32.xlu0 %v15686_v44, %s14356_s20 }
 0x371   : > { %7495 = vrot.lane.b32.xlu1 %v15719_v51, %s14394_s16  ;;  %6630 = vrot.lane.b32.xlu0 %v15763_v59, %s14390_s19 }
 0x375   : > { %7499 = vrot.lane.b32.xlu1 %v15727_v57, %s14394_s16  ;;  %6634 = vrot.lane.b32.xlu0 %v15771_v61, %s14390_s19  ;;  %s14396_s19 = smov 90  }
 0x379   : > { %6841 = vrot.lane.b32.xlu1 %v15757_v12, %s14391_s10  ;;  %7493 = vrot.lane.b32.xlu0 %v15715_v54, %s14394_s16 }
 0x37d   : > { %6843 = vrot.lane.b32.xlu1 %v15763_v59, %s14391_s10  ;;  %7497 = vrot.lane.b32.xlu0 %v15721_v56, %s14394_s16 }
 0x381   : > { %6847 = vrot.lane.b32.xlu1 %v15771_v61, %s14391_s10  ;;  %6845 = vrot.lane.b32.xlu0 %v15765_v60, %s14391_s10  ;;  %s14397_s10 = smov 89  }
 0x385   : > { %7491 = vrot.lane.b32.xlu1 %v15686_v44, %s14358_s22  ;;  %7715 = vrot.lane.b32.xlu0 %v15719_v51, %s14395_s21 }
 0x389   : > { %7713 = vrot.lane.b32.xlu1 %v15715_v54, %s14395_s21  ;;  %7719 = vrot.lane.b32.xlu0 %v15727_v57, %s14395_s21 }
 0x38d   : > { %7717 = vrot.lane.b32.xlu1 %v15721_v56, %s14395_s21  ;;  %7061 = vrot.lane.b32.xlu0 %v15757_v12, %s14392_s17 }
 0x391   : > { %7065 = vrot.lane.b32.xlu1 %v15765_v60, %s14392_s17  ;;  %7063 = vrot.lane.b32.xlu0 %v15763_v59, %s14392_s17 }
 0x395   : > { %7935 = vrot.lane.b32.xlu1 %v15719_v51, %s14396_s19  ;;  %7067 = vrot.lane.b32.xlu0 %v15771_v61, %s14392_s17  ;;  %s14400_s17 = smov 9  }
 0x399   : > { %7281 = vrot.lane.b32.xlu1 %v15757_v12, %s14393_s18  ;;  %7711 = vrot.lane.b32.xlu0 %v15686_v44, %s14360_s24 }
 0x39d   : > { %7283 = vrot.lane.b32.xlu1 %v15763_v59, %s14393_s18  ;;  %7933 = vrot.lane.b32.xlu0 %v15715_v54, %s14396_s19 }
 0x3a1   : > { %7287 = vrot.lane.b32.xlu1 %v15771_v61, %s14393_s18  ;;  %7285 = vrot.lane.b32.xlu0 %v15765_v60, %s14393_s18  ;;  %s14399_s18 = smov 10  }
 0x3a5   : > { %7939 = vrot.lane.b32.xlu1 %v15727_v57, %s14396_s19  ;;  %7937 = vrot.lane.b32.xlu0 %v15721_v56, %s14396_s19 }
 0x3a9   : > { %7931 = vrot.lane.b32.xlu1 %v15686_v44, %s14362_s26  ;;  %8155 = vrot.lane.b32.xlu0 %v15719_v51, %s14397_s10 }
 0x3ab   : > { %v6410_v3 = vpop.permute.xlu1 %6409 }
 0x3ad   : > { %8153 = vrot.lane.b32.xlu1 %v15715_v54, %s14397_s10  ;;  %7501 = vrot.lane.b32.xlu0 %v15757_v12, %s14394_s16 }
 0x3af   : > { %v6414_v4 = vpop.permute.xlu0 %6413  ;;  %v6412_v8 = vpop.permute.xlu1 %6411 }
 0x3b0   : > { %v6426_v5 = vsel %vm6425_vm4, %v6410_v3, %v6412_v8  ;;  %v6427_v10 = vsel %vm6425_vm4, %v6412_v8, %v6414_v4 }
 0x3b1   : > { %12729 = vmatprep.subr.msk.bf16.mxu0 %vm366_vm1, %v6427_v10  ;;  %7505 = vrot.lane.b32.xlu1 %v15765_v60, %s14394_s16  ;;  %v6437_v15 = vsel %vm366_vm1, %v6426_v5, 0 }
 0x3b2   : > { %7503 = vrot.lane.b32.xlu0 %v15763_v59, %s14394_s16  ;;  %6458 = vmatpush1.bf16.msra.mxu0 %v6437_v15 }
 0x3b3   : > { %v6623_v17 = vpop.permute.xlu0 %6622  ;;  %v6416_v11 = vpop.permute.xlu1 %6415 }
 0x3b4   : > { %v6428_v19 = vsel %vm6425_vm4, %v6414_v4, %v6416_v11 }
 0x3b5   : > { %12730 = vmatmul.mubr.msk.bf16.vlgmr.msra.gmra.mrb[8].mxu0 %vm362_vm2, %v15833_v62  ;;  %8157 = vrot.lane.b32.xlu1 %v15721_v56, %s14397_s10  ;;  %v6443_v27 = vsel %vm366_vm1, %v6428_v19, 0 }
 0x3b6   : > { %7507 = vrot.lane.b32.xlu0 %v15771_v61, %s14394_s16  ;;  %6571 = vmatprep.mubr.bf16.mxu0 %v14349_v2  ;;  %s14398_s16 = smov 11  }
 0x3b7   : > { %v15870_v20 = vpop.permute.xlu0 %6626  ;;  %v6621_v21 = vpop.permute.xlu1 %6620 }
 0x3b8   : > { %v6637_v40 = vsel %vm6636_vm7, %v6621_v21, %v6623_v17 }
 0x3b9   : > { %7721 = vrot.lane.b32.xlu1 %v15757_v12, %s14395_s21  ;;  %v6648_v52 = vsel %vm366_vm1, %v6637_v40, 0 }
 0x3ba   : > { %8159 = vrot.lane.b32.xlu0 %v15727_v57, %s14397_s10 }
 0x3bb   : > { %v15876_v22 = vpop.permute.xlu0 %6835  ;;  %v6625_v23 = vpop.permute.xlu1 %6624 }
 0x3bc   : > { %v6638_v43 = vsel %vm6636_vm7, %v6623_v17, %v6625_v23  ;;  %v6639_v53 = vsel %vm6636_vm7, %v6625_v23, %v15870_v20 }
 0x3bd   : > { %7723 = vrot.lane.b32.xlu1 %v15763_v59, %s14395_s21  ;;  %v6654_v58 = vsel %vm366_vm1, %v6639_v53, 0 }
 0x3be   : > { %8151 = vrot.lane.b32.xlu0 %v15686_v44, %s14366_s30 }
 0x3bf   : > { %v15882_v24 = vpop.permute.xlu0 %6839  ;;  %v15884_v25 = vpop.permute.xlu1 %6833 }
 0x3c0   : > { %v6850_v15 = vsel %vm6849_vm8, %v15884_v25, %v15876_v22 }
 0x3c1   : > { %7727 = vrot.lane.b32.xlu1 %v15771_v61, %s14395_s21  ;;  %v6861_v25 = vsel %vm366_vm1, %v6850_v15, 0 }
 0x3c2   : > { %7725 = vrot.lane.b32.xlu0 %v15765_v60, %s14395_s21 }
 0x3c3   : > { %v15890_v28 = vpop.permute.xlu0 %7053  ;;  %v15892_v13 = vpop.permute.xlu1 %6837 }
 0x3c5   : > { %8375 = vrot.lane.b32.xlu1 %v15719_v51, %s14398_s16 }
 0x3c6   : > { %8373 = vrot.lane.b32.xlu0 %v15715_v54, %s14398_s16 }
 0x3c7   : > { %v15898_v29 = vpop.permute.xlu0 %7057  ;;  %v15900_v14 = vpop.permute.xlu1 %7055 }
 0x3c9   : > { %8379 = vrot.lane.b32.xlu1 %v15727_v57, %s14398_s16 }
 0x3ca   : > { %8377 = vrot.lane.b32.xlu0 %v15721_v56, %s14398_s16 }
 0x3cb   : > { %v15906_v30 = vpop.permute.xlu0 %7275  ;;  %v15908_v31 = vpop.permute.xlu1 %7059 }
 0x3cc   : > { %v7072_v53 = vsel %vm7069_vm9, %v15898_v29, %v15908_v31 }
 0x3cd   : > { %8371 = vrot.lane.b32.xlu1 %v15686_v44, %s14368_s11 }
 0x3ce   : > { %7941 = vrot.lane.b32.xlu0 %v15757_v12, %s14396_s19 }
 0x3cf   : > { %v15915_v34 = vpop.permute.xlu1 %7273  ;;  %v6418_v35 = vpop.permute.xlu0 %6417 }
 0x3d0   : > { %v6429_v36 = vsel %vm6425_vm4, %v6416_v11, %v6418_v35  ;;  %v6851_v11 = vsel %vm6849_vm8, %v15876_v22, %v15892_v13  ;;  %v6852_v22 = vsel %vm6849_vm8, %v15892_v13, %v15882_v24 }
 0x3d1   : > { %7945 = vrot.lane.b32.xlu1 %v15765_v60, %s14396_s19  ;;  %12731 = vmatprep.subr.msk.bf16.mxu1 %vm366_vm1, %v6429_v36  ;;  %v6867_v13 = vsel %vm366_vm1, %v6852_v22, 0 }
 0x3d2   : > { %7943 = vrot.lane.b32.xlu0 %v15763_v59, %s14396_s19  ;;  %6499 = vmatpush1.bf16.msra.mxu1 %v6443_v27 }
 0x3d3   : > { %v6422_v26 = vpop.permute.xlu1 %6421  ;;  %v6420_v37 = vpop.permute.xlu0 %6419  ;;  %13210 = vmatprep.subr.bf16.mxu1 %v14364_v32 }
 0x3d4   : > { %v6430_v38 = vsel %vm6425_vm4, %v6418_v35, %v6420_v37  ;;  %v6431_v7 = vsel %vm6425_vm4, %v6420_v37, %v6422_v26 }
 0x3d5   : > { %8593 = vrot.lane.b32.xlu1 %v15715_v54, %s14399_s18  ;;  %12732 = vmatmul.mubr.msk.bf16.vlgmr.msra.gmra.mrb[8].mxu1 %vm362_vm2, %v15833_v62  ;;  %v6449_v33 = vsel %vm366_vm1, %v6430_v38, 0 }
 0x3d6   : > { %7947 = vrot.lane.b32.xlu0 %v15771_v61, %s14396_s19  ;;  %12733 = vmatprep.subr.msk.bf16.mxu0 %vm366_vm1, %v6431_v7 }
 0x3d7   : > { %6540 = vmatpush1.bf16.msra.mxu0 %v6449_v33  ;;  %v15936_v41 = vpop.permute.xlu1 %7277  ;;  %v6424_v45 = vpop.permute.xlu0 %6423  ;;  %13212 = vmatprep.mubr.msk.bf16.mxu1 %vm14365_vm3, %v14364_v32 }
 0x3d8   : > { %12736 = vmatprep.subr.msk.bf16.mxu0 %vm366_vm1, %v6638_v43  ;;  %v6432_v48 = vsel %vm6425_vm4, %v6422_v26, %v6424_v45  ;;  %v7070_v43 = vsel %vm7069_vm9, %v15890_v28, %v15900_v14  ;;  %vm7729_vm4 = vcmask 744448  }
 0x3d9   : > { %v6455_v49 = vsel %vm366_vm1, %v6432_v48, 0  ;;  %8161 = vrot.lane.b32.xlu1 %v15757_v12, %s14397_s10  ;;  %v7071_v48 = vsel %vm7069_vm9, %v15900_v14, %v15898_v29  ;;  %v7081_v28 = vsel %vm366_vm1, %v7070_v43, 0 }
 0x3da   : > { %8595 = vrot.lane.b32.xlu0 %v15719_v51, %s14399_s18  ;;  %12734 = vmatmul.mubr.msk.bf16.vlgmr.msra.gmra.mrb[12].mxu0 %vm362_vm2, %v15833_v62 }
 0x3db   : > { %13211 = vmatpush3.bf16.msra.mxu1 %v6455_v49  ;;  %6669 = vmatpush1.bf16.msra.mxu0 %v6648_v52  ;;  %v6629_v47 = vpop.permute.xlu1 %6628  ;;  %v15953_v55 = vpop.permute.xlu0 %7279 }
 0x3dc   : > { %v6640_v50 = vsel %vm6636_vm7, %v15870_v20, %v6629_v47  ;;  %6700 = vmatprep.mubr.bf16.mxu0 %v14349_v2 }
 0x3dd   : > { %8163 = vrot.lane.b32.xlu1 %v15763_v59, %s14397_s10  ;;  %12738 = vmatprep.subr.msk.bf16.mxu1 %vm366_vm1, %v6640_v50 }
 0x3de   : > { %8165 = vrot.lane.b32.xlu0 %v15765_v60, %s14397_s10  ;;  %13213 = vmatmul.mubr.msk.bf16.vlgmr.msra.gmra.mrb[12].mxu1 %vm362_vm2, %v15833_v62 }
 0x3df   : > { %6710 = vmatpush1.bf16.msra.mxu1 %v6654_v58  ;;  %v6633_v9 = vpop.permute.xlu1 %6632  ;;  %v15966_v3 = vpop.permute.xlu0 %7271  ;;  %6741 = vmatprep.mubr.bf16.mxu1 %v14349_v2 }
 0x3e0   : > { %13216 = vmatprep.subr.bf16.mxu1 %v14364_v32 }
 0x3e1   : > { %8167 = vrot.lane.b32.xlu1 %v15771_v61, %s14397_s10  ;;  %s14403_s10 = smov 39  }
 0x3e2   : > { %8599 = vrot.lane.b32.xlu0 %v15727_v57, %s14399_s18  ;;  %12737 = vmatmul.mubr.msk.bf16.vlgmr.msra.gmra.mrb[8].mxu0 %vm362_vm2, %v15682_v39 }
 0x3e3   : > { %v15976_v62 = vpop.permute.xlu1 %7495  ;;  %v6631_v4 = vpop.permute.xlu0 %6630  ;;  %6782 = vmatprep.mubr.bf16.mxu0 %v14349_v2 }
 0x3e4   : > { %v6641_v8 = vsel %vm6636_vm7, %v6629_v47, %v6631_v4  ;;  %v6642_v5 = vsel %vm6636_vm7, %v6631_v4, %v6633_v9 }
 0x3e5   : > { %8597 = vrot.lane.b32.xlu1 %v15721_v56, %s14399_s18  ;;  %12740 = vmatprep.subr.msk.bf16.mxu0 %vm366_vm1, %v6642_v5  ;;  %v6660_v10 = vsel %vm366_vm1, %v6641_v8, 0  ;;  %v7290_v8 = vsel %vm7289_vm10, %v15915_v34, %v15906_v30 }
 0x3e6   : > { %8591 = vrot.lane.b32.xlu0 %v15686_v44, %s14370_s15  ;;  %12739 = vmatmul.mubr.msk.bf16.vlgmr.msra.gmra.mrb[8].mxu1 %vm362_vm2, %v15682_v39  ;;  %v7301_v34 = vsel %vm366_vm1, %v7290_v8, 0 }
 0x3e7   : > { %6751 = vmatpush1.bf16.msra.mxu0 %v6660_v10  ;;  %v15992_v17 = vpop.permute.xlu1 %7499  ;;  %v6635_v20 = vpop.permute.xlu0 %6634  ;;  %13218 = vmatprep.mubr.msk.bf16.mxu1 %vm14365_vm3, %v14364_v32 }
 0x3e8   : > { %12743 = vmatprep.subr.msk.bf16.mxu0 %vm366_vm1, %v6851_v11  ;;  %v6643_v21 = vsel %vm6636_vm7, %v6633_v9, %v6635_v20  ;;  %vm7949_vm7 = vcmask 736256  }
 0x3e9   : > { %v6666_v23 = vsel %vm366_vm1, %v6643_v21, 0  ;;  %8815 = vrot.lane.b32.xlu1 %v15719_v51, %s14400_s17  ;;  %v16145_v21 = vpack.c.bf16 %v15697_v16, %v15697_v16  ;;  %v16159_v16 = vpack.c.bf16 %v15703_v6, %v15703_v6 }
 0x3ea   : > { %8813 = vrot.lane.b32.xlu0 %v15715_v54, %s14400_s17  ;;  %12741 = vmatmul.mubr.msk.bf16.vlgmr.msra.gmra.mrb[12].mxu0 %vm362_vm2, %v15682_v39 }
 0x3eb   : > { %13217 = vmatpush3.bf16.msra.mxu1 %v6666_v23  ;;  %6882 = vmatpush1.bf16.msra.mxu0 %v6861_v25  ;;  %v6842_v19 = vpop.permute.xlu1 %6841  ;;  %v16012_v35 = vpop.permute.xlu0 %7493 }
 0x3ec   : > { %v6853_v36 = vsel %vm6849_vm8, %v15882_v24, %v6842_v19  ;;  %6913 = vmatprep.mubr.bf16.mxu0 %v14349_v2 }
 0x3ed   : > { %8385 = vrot.lane.b32.xlu1 %v15765_v60, %s14398_s16  ;;  %12745 = vmatprep.subr.msk.bf16.mxu1 %vm366_vm1, %v6853_v36 }
 0x3ee   : > { %8381 = vrot.lane.b32.xlu0 %v15757_v12, %s14398_s16  ;;  %13219 = vmatmul.mubr.msk.bf16.vlgmr.msra.gmra.mrb[12].mxu1 %vm362_vm2, %v15682_v39 }
 0x3ef   : > { %6923 = vmatpush1.bf16.msra.mxu1 %v6867_v13  ;;  %v6844_v27 = vpop.permute.xlu1 %6843  ;;  %v16025_v26 = vpop.permute.xlu0 %7497  ;;  %6954 = vmatprep.mubr.bf16.mxu1 %v14349_v2 }
 0x3f0   : > { %13222 = vmatprep.subr.bf16.mxu1 %v14364_v32  ;;  %v6854_v39 = vsel %vm6849_vm8, %v6842_v19, %v6844_v27 }
 0x3f1   : > { %8819 = vrot.lane.b32.xlu1 %v15727_v57, %s14400_s17  ;;  %v6873_v40 = vsel %vm366_vm1, %v6854_v39, 0 }
 0x3f2   : > { %8383 = vrot.lane.b32.xlu0 %v15763_v59, %s14398_s16  ;;  %12744 = vmatmul.mubr.msk.bf16.vlgmr.msra.gmra.mrb[8].mxu0 %vm362_vm2, %v15849_v0 }
 0x3f3   : > { %v6848_v24 = vpop.permute.xlu1 %6847  ;;  %v6846_v37 = vpop.permute.xlu0 %6845  ;;  %6995 = vmatprep.mubr.bf16.mxu0 %v14349_v2 }
 0x3f4   : > { %v6856_v38 = vsel %vm6849_vm8, %v6846_v37, %v6848_v24  ;;  %v6855_v7 = vsel %vm6849_vm8, %v6844_v27, %v6846_v37  ;;  %v7510_v27 = vsel %vm7509_vm13, %v16012_v35, %v15976_v62  ;;  %v7511_v24 = vsel %vm7509_vm13, %v15976_v62, %v16025_v26 }
 0x3f5   : > { %8811 = vrot.lane.b32.xlu1 %v15686_v44, %s14372_s23  ;;  %12747 = vmatprep.subr.msk.bf16.mxu0 %vm366_vm1, %v6855_v7  ;;  %v6879_v33 = vsel %vm366_vm1, %v6856_v38, 0  ;;  %s14401_s23 = smov 1   ;;  %v7521_v35 = vsel %vm366_vm1, %v7510_v27, 0  ;;  %v16201_v7 = vpack.c.bf16 %v15699_v18, %v15699_v18  ;;  %v9472_v18 = vld [vmem:[#allocation2 + $0x1c] sm:$0xff]  ;;  %vm8169_vm8 = vcmask 728064  }
 0x3f6   : > { %8387 = vrot.lane.b32.xlu0 %v15771_v61, %s14398_s16  ;;  %12746 = vmatmul.mubr.msk.bf16.vlgmr.msra.gmra.mrb[8].mxu1 %vm362_vm2, %v15849_v0  ;;  %s14404_s16 = smov 38  }
 0x3f7   : > { %6964 = vmatpush1.bf16.msra.mxu0 %v6873_v40  ;;  %13223 = vmatpush3.bf16.msra.mxu1 %v6879_v33  ;;  %v16051_v45 = vpop.permute.xlu1 %7491  ;;  %v16056_v49 = vpop.permute.xlu0 %7715 }
 0x3f8   : > { %12750 = vmatprep.subr.msk.bf16.mxu0 %vm366_vm1, %v7071_v48  ;;  %13224 = vmatprep.mubr.msk.bf16.mxu1 %vm14365_vm3, %v14364_v32 }
 0x3f9   : > { %8601 = vrot.lane.b32.xlu1 %v15757_v12, %s14399_s18 }
 0x3fa   : > { %8817 = vrot.lane.b32.xlu0 %v15721_v56, %s14400_s17  ;;  %12748 = vmatmul.mubr.msk.bf16.vlgmr.msra.gmra.mrb[12].mxu0 %vm362_vm2, %v15849_v0 }
 0x3fb   : > { %7102 = vmatpush1.bf16.msra.mxu0 %v7081_v28  ;;  %v16068_v14 = vpop.permute.xlu1 %7713  ;;  %v16070_v52 = vpop.permute.xlu0 %7719  ;;  %7133 = vmatprep.mubr.bf16.mxu0 %v14349_v2 }
 0x3fd   : > { %8603 = vrot.lane.b32.xlu1 %v15763_v59, %s14399_s18 }
 0x3fe   : > { %8605 = vrot.lane.b32.xlu0 %v15765_v60, %s14399_s18  ;;  %13225 = vmatmul.mubr.msk.bf16.vlgmr.msra.gmra.mrb[12].mxu1 %vm362_vm2, %v15849_v0  ;;  %v7087_v0 = vsel %vm366_vm1, %v7072_v53, 0  ;;  %v7730_v53 = vsel %vm7729_vm4, %v16068_v14, %v16056_v49 }
 0x3ff   : > { %v16082_v47 = vpop.permute.xlu1 %7717  ;;  %v7062_v50 = vpop.permute.xlu0 %7061  ;;  %7174 = vmatprep.mubr.bf16.mxu1 %v14349_v2  ;;  %v7741_v14 = vsel %vm366_vm1, %v7730_v53, 0 }
 0x400   : > { %v7073_v58 = vsel %vm7069_vm9, %v15908_v31, %v7062_v50 }
 0x401   : > { %8607 = vrot.lane.b32.xlu1 %v15771_v61, %s14399_s18  ;;  %12752 = vmatprep.subr.msk.bf16.mxu1 %vm366_vm1, %v7073_v58  ;;  %s17275_s18 = smov 104  }
 0x402   : > { %9035 = vrot.lane.b32.xlu0 %v15719_v51, %s14401_s23  ;;  %12751 = vmatmul.mubr.msk.bf16.vlgmr.msra.gmra.mrb[8].mxu0 %vm362_vm2, %v15843_v63 }
 0x403   : > { %7143 = vmatpush1.bf16.msra.mxu1 %v7087_v0  ;;  %v7066_v29 = vpop.permute.xlu1 %7065  ;;  %v7064_v9 = vpop.permute.xlu0 %7063  ;;  %7215 = vmatprep.mubr.bf16.mxu0 %v14349_v2 }
 0x404   : > { %v7074_v31 = vsel %vm7069_vm9, %v7062_v50, %v7064_v9  ;;  %v7075_v4 = vsel %vm7069_vm9, %v7064_v9, %v7066_v29  ;;  %13228 = vmatprep.subr.bf16.mxu1 %v14364_v32  ;;  %v7731_v50 = vsel %vm7729_vm4, %v16056_v49, %v16082_v47  ;;  %v7732_v49 = vsel %vm7729_vm4, %v16082_v47, %v16070_v52 }
 0x405   : > { %9033 = vrot.lane.b32.xlu1 %v15715_v54, %s14401_s23  ;;  %12754 = vmatprep.subr.msk.bf16.mxu0 %vm366_vm1, %v7075_v4  ;;  %v7093_v51 = vsel %vm366_vm1, %v7074_v31, 0  ;;  %v7291_v54 = vsel %vm7289_vm10, %v15906_v30, %v15936_v41  ;;  %v7292_v30 = vsel %vm7289_vm10, %v15936_v41, %v15953_v55  ;;  %v16266_v31 = vcombine.low %v9472_v18, %v9472_v18 }
 0x406   : > { %9039 = vrot.lane.b32.xlu0 %v15727_v57, %s14401_s23  ;;  %12753 = vmatmul.mubr.msk.bf16.vlgmr.msra.gmra.mrb[8].mxu1 %vm362_vm2, %v15843_v63  ;;  %v7307_v41 = vsel %vm366_vm1, %v7292_v30, 0  ;;  %v7747_v47 = vsel %vm366_vm1, %v7732_v49, 0 }
 0x407   : > { %7184 = vmatpush1.bf16.msra.mxu0 %v7093_v51  ;;  %v16110_v5 = vpop.permute.xlu1 %7935  ;;  %v7068_v10 = vpop.permute.xlu0 %7067  ;;  %13230 = vmatprep.mubr.msk.bf16.mxu1 %vm14365_vm3, %v14364_v32 }
 0x408   : > { %12757 = vmatprep.subr.msk.bf16.mxu0 %vm366_vm1, %v7291_v54  ;;  %v7076_v57 = vsel %vm7069_vm9, %v7066_v29, %v7068_v10  ;;  %vm8389_vm9 = vcmask 89088  }
 0x409   : > { %v7099_v15 = vsel %vm366_vm1, %v7076_v57, 0  ;;  %9037 = vrot.lane.b32.xlu1 %v15721_v56, %s14401_s23 }
 0x40a   : > { %9031 = vrot.lane.b32.xlu0 %v15686_v44, %s14374_s29  ;;  %12755 = vmatmul.mubr.msk.bf16.vlgmr.msra.gmra.mrb[12].mxu0 %vm362_vm2, %v15843_v63  ;;  %s17272_s29 = smov 118  }
 0x40b   : > { %13229 = vmatpush3.bf16.msra.mxu1 %v7099_v15  ;;  %7322 = vmatpush1.bf16.msra.mxu0 %v7301_v34  ;;  %v7282_v11 = vpop.permute.xlu1 %7281  ;;  %v16130_v20 = vpop.permute.xlu0 %7711  ;;  %v16304_v34 = vpack.c.bf16 %v15709_v42, %v15709_v42 }
 0x40c   : > { %v7293_v56 = vsel %vm7289_vm10, %v15953_v55, %v7282_v11  ;;  %7353 = vmatprep.mubr.bf16.mxu0 %v14349_v2 }
 0x40d   : > { %8825 = vrot.lane.b32.xlu1 %v15765_v60, %s14400_s17  ;;  %12759 = vmatprep.subr.msk.bf16.mxu1 %vm366_vm1, %v7293_v56 }
 0x40e   : > { %8821 = vrot.lane.b32.xlu0 %v15757_v12, %s14400_s17  ;;  %13231 = vmatmul.mubr.msk.bf16.vlgmr.msra.gmra.mrb[12].mxu1 %vm362_vm2, %v15843_v63 }
 0x40f   : > { %7363 = vmatpush1.bf16.msra.mxu1 %v7307_v41  ;;  %v7284_v55 = vpop.permute.xlu1 %7283  ;;  %v16147_v23 = vpop.permute.xlu0 %7933  ;;  %7394 = vmatprep.mubr.bf16.mxu1 %v14349_v2 }
 0x410   : > { %13234 = vmatprep.subr.bf16.mxu1 %v14364_v32  ;;  %v7294_v63 = vsel %vm7289_vm10, %v7282_v11, %v7284_v55  ;;  %v7950_v56 = vsel %vm7949_vm7, %v16147_v23, %v16110_v5 }
 0x411   : > { %9495 = vrot.lane.b32.xlu1 %v16145_v21, %s14350_s14  ;;  %v7313_v6 = vsel %vm366_vm1, %v7294_v63, 0  ;;  %v7961_v42 = vsel %vm366_vm1, %v7950_v56, 0  ;;  %v16341_v63 = vpack.c.bf16 %v15711_v46, %v15711_v46 }
 0x412   : > { %8823 = vrot.lane.b32.xlu0 %v15763_v59, %s14400_s17  ;;  %12758 = vmatmul.mubr.msk.bf16.vlgmr.msra.gmra.mrb[8].mxu0 %vm362_vm2, %v15966_v3 }
 0x413   : > { %v7288_v25 = vpop.permute.xlu1 %7287  ;;  %v7286_v22 = vpop.permute.xlu0 %7285  ;;  %7435 = vmatprep.mubr.bf16.mxu0 %v14349_v2 }
 0x414   : > { %v7296_v19 = vsel %vm7289_vm10, %v7286_v22, %v7288_v25  ;;  %v7295_v36 = vsel %vm7289_vm10, %v7284_v55, %v7286_v22  ;;  %vm8609_vm10 = vcmask 80896  }
 0x415   : > { %9499 = vrot.lane.b32.xlu1 %v16159_v16, %s14350_s14  ;;  %12761 = vmatprep.subr.msk.bf16.mxu0 %vm366_vm1, %v7295_v36  ;;  %v7319_v13 = vsel %vm366_vm1, %v7296_v19, 0 }
 0x416   : > { %8827 = vrot.lane.b32.xlu0 %v15771_v61, %s14400_s17  ;;  %12760 = vmatmul.mubr.msk.bf16.vlgmr.msra.gmra.mrb[8].mxu1 %vm362_vm2, %v15966_v3  ;;  %s14405_s17 = smov 37  }
 0x417   : > { %7404 = vmatpush1.bf16.msra.mxu0 %v7313_v6  ;;  %13235 = vmatpush3.bf16.msra.mxu1 %v7319_v13  ;;  %v16177_v39 = vpop.permute.xlu1 %7939  ;;  %v16182_v37 = vpop.permute.xlu0 %7937 }
 0x418   : > { %12764 = vmatprep.subr.msk.bf16.mxu0 %vm366_vm1, %v7511_v24  ;;  %13236 = vmatprep.mubr.msk.bf16.mxu1 %vm14365_vm3, %v14364_v32  ;;  %v7951_v41 = vsel %vm7949_vm7, %v16110_v5, %v16182_v37  ;;  %v7952_v25 = vsel %vm7949_vm7, %v16182_v37, %v16177_v39 }
 0x419   : > { %9041 = vrot.lane.b32.xlu1 %v15757_v12, %s14401_s23  ;;  %v7512_v12 = vsel %vm7509_vm13, %v16025_v26, %v15992_v17  ;;  %v7967_v46 = vsel %vm366_vm1, %v7952_v25, 0 }
 0x41a   : > { %9255 = vrot.lane.b32.xlu0 %v15686_v44, %s14376_s12  ;;  %12762 = vmatmul.mubr.msk.bf16.vlgmr.msra.gmra.mrb[12].mxu0 %vm362_vm2, %v15966_v3  ;;  %s14402_s12 = smov 119  }
 0x41b   : > { %7542 = vmatpush1.bf16.msra.mxu0 %v7521_v35  ;;  %v16194_v62 = vpop.permute.xlu1 %7931  ;;  %v16196_v38 = vpop.permute.xlu0 %8155  ;;  %7573 = vmatprep.mubr.bf16.mxu0 %v14349_v2 }
 0x41d   : > { %9043 = vrot.lane.b32.xlu1 %v15763_v59, %s14401_s23  ;;  %v7527_v59 = vsel %vm366_vm1, %v7512_v12, 0 }
 0x41e   : > { %9497 = vrot.lane.b32.xlu0 %v16201_v7, %s14350_s14  ;;  %13237 = vmatmul.mubr.msk.bf16.vlgmr.msra.gmra.mrb[12].mxu1 %vm362_vm2, %v15966_v3  ;;  %v16225_v3 = vcombine.high %v9472_v18, %v9472_v18 }
 0x41f   : > { %v16212_v33 = vpop.permute.xlu1 %8153  ;;  %v7502_v40 = vpop.permute.xlu0 %7501  ;;  %7614 = vmatprep.mubr.bf16.mxu1 %v14349_v2 }
 0x420   : > { %v7513_v43 = vsel %vm7509_vm13, %v15992_v17, %v7502_v40  ;;  %v16230_v17 = vpack.c.bf16 %v15705_v1, %v15705_v1  ;;  %v8170_v37 = vsel %vm8169_vm8, %v16212_v33, %v16196_v38 }
 0x421   : > { %9047 = vrot.lane.b32.xlu1 %v15771_v61, %s14401_s23  ;;  %12766 = vmatprep.subr.msk.bf16.mxu1 %vm366_vm1, %v7513_v43  ;;  %v8181_v33 = vsel %vm366_vm1, %v8170_v37, 0 }
 0x422   : > { %9045 = vrot.lane.b32.xlu0 %v15765_v60, %s14401_s23  ;;  %12765 = vmatmul.mubr.msk.bf16.vlgmr.msra.gmra.mrb[8].mxu0 %vm362_vm2, %v16051_v45 }
 0x423   : > { %7583 = vmatpush1.bf16.msra.mxu1 %v7527_v59  ;;  %v7506_v26 = vpop.permute.xlu1 %7505  ;;  %7655 = vmatprep.mubr.bf16.mxu0 %v14349_v2 }
 0x424   : > { %v7504_v61 = vpop.permute.xlu0 %7503  ;;  %13240 = vmatprep.subr.bf16.mxu1 %v14364_v32 }
 0x425   : > { %v7514_v60 = vsel %vm7509_vm13, %v7502_v40, %v7504_v61  ;;  %9509 = vrot.lane.b32.xlu1 %v16225_v3, %s14350_s14  ;;  %v7515_v48 = vsel %vm7509_vm13, %v7504_v61, %v7506_v26 }
 0x426   : > { %9501 = vrot.lane.b32.xlu0 %v16230_v17, %s14350_s14  ;;  %12767 = vmatmul.mubr.msk.bf16.vlgmr.msra.gmra.mrb[8].mxu1 %vm362_vm2, %v16051_v45  ;;  %v7533_v1 = vsel %vm366_vm1, %v7514_v60, 0 }
 0x427   : > { %12768 = vmatprep.subr.msk.bf16.mxu0 %vm366_vm1, %v7515_v48  ;;  %v16243_v28 = vpop.permute.xlu1 %8157  ;;  %13242 = vmatprep.mubr.msk.bf16.mxu1 %vm14365_vm3, %v14364_v32 }
 0x428   : > { %7624 = vmatpush1.bf16.msra.mxu0 %v7533_v1  ;;  %v7508_v58 = vpop.permute.xlu0 %7507  ;;  %v8171_v35 = vsel %vm8169_vm8, %v16196_v38, %v16243_v28 }
 0x429   : > { %12771 = vmatprep.subr.msk.bf16.mxu0 %vm366_vm1, %v7731_v50  ;;  %v7516_v0 = vsel %vm7509_vm13, %v7506_v26, %v7508_v58  ;;  %9716 = vrot.lane.b32.xlu1 %v16201_v7, %s14402_s12  ;;  %v16422_v50 = vld [vmem:[%s17249_s2 + $0x4] sm:$0xf]  ;;  %vm8829_vm13 = vcmask 72704  }
 0x42a   : > { %v7539_v29 = vsel %vm366_vm1, %v7516_v0, 0  ;;  %9473 = vrot.lane.b32.xlu0 %v15686_v44, %s14377_s25  ;;  %s17271_s25 = smov 8   ;;  %v16441_v49 = vcombine.low %v16422_v50, %v16422_v50 }
 0x42b   : > { %12769 = vmatmul.mubr.msk.bf16.vlgmr.msra.gmra.mrb[12].mxu0 %vm362_vm2, %v16051_v45  ;;  %13241 = vmatpush3.bf16.msra.mxu1 %v7539_v29  ;;  %v7722_v9 = vpop.permute.xlu1 %7721 }
 0x42c   : > { %7762 = vmatpush1.bf16.msra.mxu0 %v7741_v14  ;;  %v16268_v4 = vpop.permute.xlu0 %8159  ;;  %v7733_v51 = vsel %vm7729_vm4, %v16070_v52, %v7722_v9  ;;  %7793 = vmatprep.mubr.bf16.mxu0 %v14349_v2 }
 0x42d   : > { %9720 = vrot.lane.b32.xlu1 %v16230_v17, %s14402_s12  ;;  %12773 = vmatprep.subr.msk.bf16.mxu1 %vm366_vm1, %v7733_v51  ;;  %v8172_v43 = vsel %vm8169_vm8, %v16243_v28, %v16268_v4 }
 0x42e   : > { %9507 = vrot.lane.b32.xlu0 %v16266_v31, %s14350_s14  ;;  %13243 = vmatmul.mubr.msk.bf16.vlgmr.msra.gmra.mrb[12].mxu1 %vm362_vm2, %v16051_v45  ;;  %v8187_v61 = vsel %vm366_vm1, %v8172_v43, 0 }
 0x42f   : > { %7803 = vmatpush1.bf16.msra.mxu1 %v7747_v47  ;;  %v7724_v8 = vpop.permute.xlu1 %7723  ;;  %7834 = vmatprep.mubr.bf16.mxu1 %v14349_v2 }
 0x430   : > { %v16282_v52 = vpop.permute.xlu0 %8151  ;;  %13246 = vmatprep.subr.bf16.mxu1 %v14364_v32  ;;  %v7734_v54 = vsel %vm7729_vm4, %v7722_v9, %v7724_v8 }
 0x431   : > { %9712 = vrot.lane.b32.xlu1 %v15686_v44, %s17271_s25  ;;  %v7753_v30 = vsel %vm366_vm1, %v7734_v54, 0 }
 0x432   : > { %9714 = vrot.lane.b32.xlu0 %v16145_v21, %s14402_s12 }
 0x433   : > { %12772 = vmatmul.mubr.msk.bf16.vlgmr.msra.gmra.mrb[8].mxu0 %vm362_vm2, %v16130_v20  ;;  %v7728_v45 = vpop.permute.xlu1 %7727 }
 0x434   : > { %v7726_v10 = vpop.permute.xlu0 %7725  ;;  %7875 = vmatprep.mubr.bf16.mxu0 %v14349_v2 }
 0x435   : > { %v7736_v57 = vsel %vm7729_vm4, %v7726_v10, %v7728_v45  ;;  %9726 = vrot.lane.b32.xlu1 %v16266_v31, %s14402_s12  ;;  %v7735_v44 = vsel %vm7729_vm4, %v7724_v8, %v7726_v10  ;;  %vm9049_vm4 = vcmask 7168  }
 0x436   : > { %9718 = vrot.lane.b32.xlu0 %v16159_v16, %s14402_s12  ;;  %12774 = vmatmul.mubr.msk.bf16.vlgmr.msra.gmra.mrb[8].mxu1 %vm362_vm2, %v16130_v20  ;;  %v7759_v15 = vsel %vm366_vm1, %v7736_v57, 0 }
 0x437   : > { %12775 = vmatprep.subr.msk.bf16.mxu0 %vm366_vm1, %v7735_v44  ;;  %13247 = vmatpush3.bf16.msra.mxu1 %v7759_v15  ;;  %v16308_v11 = vpop.permute.xlu1 %8375 }
 0x438   : > { %7844 = vmatpush1.bf16.msra.mxu0 %v7753_v30  ;;  %v16316_v55 = vpop.permute.xlu0 %8373  ;;  %13248 = vmatprep.mubr.msk.bf16.mxu1 %vm14365_vm3, %v14364_v32 }
 0x439   : > { %12778 = vmatprep.subr.msk.bf16.mxu0 %vm366_vm1, %v7951_v41  ;;  %9503 = vrot.lane.b32.xlu1 %v16304_v34, %s14350_s14 }
 0x43a   : > { %9728 = vrot.lane.b32.xlu0 %v16225_v3, %s14402_s12 }
 0x43b   : > { %12776 = vmatmul.mubr.msk.bf16.vlgmr.msra.gmra.mrb[12].mxu0 %vm362_vm2, %v16130_v20  ;;  %v16328_v23 = vpop.permute.xlu1 %8379 }
 0x43c   : > { %7982 = vmatpush1.bf16.msra.mxu0 %v7961_v42  ;;  %v16330_v5 = vpop.permute.xlu0 %8377  ;;  %8013 = vmatprep.mubr.bf16.mxu0 %v14349_v2 }
 0x43d   : > { %9933 = vrot.lane.b32.xlu1 %v16145_v21, %s17272_s29  ;;  %v8391_v0 = vsel %vm8389_vm9, %v16308_v11, %v16330_v5  ;;  %v8392_v54 = vsel %vm8389_vm9, %v16330_v5, %v16328_v23 }
 0x43e   : > { %9935 = vrot.lane.b32.xlu0 %v16201_v7, %s17272_s29  ;;  %13249 = vmatmul.mubr.msk.bf16.vlgmr.msra.gmra.mrb[12].mxu1 %vm362_vm2, %v16130_v20 }
 0x43f   : > { %v16346_v22 = vpop.permute.xlu1 %8371  ;;  %8054 = vmatprep.mubr.bf16.mxu1 %v14349_v2 }
 0x440   : > { %v7942_v19 = vpop.permute.xlu0 %7941 }
 0x441   : > { %9505 = vrot.lane.b32.xlu1 %v16341_v63, %s14350_s14  ;;  %v7953_v36 = vsel %vm7949_vm7, %v16177_v39, %v7942_v19  ;;  %s17273_s14 = smov 117  }
 0x442   : > { %9939 = vrot.lane.b32.xlu0 %v16230_v17, %s17272_s29  ;;  %12780 = vmatprep.subr.msk.bf16.mxu1 %vm366_vm1, %v7953_v36 }
 0x443   : > { %12779 = vmatmul.mubr.msk.bf16.vlgmr.msra.gmra.mrb[8].mxu0 %vm362_vm2, %v16194_v62  ;;  %8023 = vmatpush1.bf16.msra.mxu1 %v7967_v46  ;;  %v7946_v20 = vpop.permute.xlu1 %7945 }
 0x444   : > { %v7944_v13 = vpop.permute.xlu0 %7943  ;;  %8095 = vmatprep.mubr.bf16.mxu0 %v14349_v2  ;;  %13252 = vmatprep.subr.bf16.mxu1 %v14364_v32 }
 0x445   : > { %v7954_v6 = vsel %vm7949_vm7, %v7942_v19, %v7944_v13  ;;  %9937 = vrot.lane.b32.xlu1 %v16159_v16, %s17272_s29  ;;  %v7955_v27 = vsel %vm7949_vm7, %v7944_v13, %v7946_v20 }
 0x446   : > { %9947 = vrot.lane.b32.xlu0 %v16225_v3, %s17272_s29  ;;  %12781 = vmatmul.mubr.msk.bf16.vlgmr.msra.gmra.mrb[8].mxu1 %vm362_vm2, %v16194_v62  ;;  %v7973_v39 = vsel %vm366_vm1, %v7954_v6, 0 }
 0x447   : > { %12782 = vmatprep.subr.msk.bf16.mxu0 %vm366_vm1, %v7955_v27  ;;  %v16371_v24 = vpop.permute.xlu1 %8593  ;;  %13254 = vmatprep.mubr.msk.bf16.mxu1 %vm14365_vm3, %v14364_v32 }
 0x448   : > { %8064 = vmatpush1.bf16.msra.mxu0 %v7973_v39  ;;  %v7948_v12 = vpop.permute.xlu0 %7947 }
 0x449   : > { %12785 = vmatprep.subr.msk.bf16.mxu0 %vm366_vm1, %v8171_v35  ;;  %v7956_v40 = vsel %vm7949_vm7, %v7946_v20, %v7948_v12  ;;  %9945 = vrot.lane.b32.xlu1 %v16266_v31, %s17272_s29  ;;  %vm9730_vm7 = vcmask 973824  }
 0x44a   : > { %v7979_v18 = vsel %vm366_vm1, %v7956_v40, 0  ;;  %10157 = vrot.lane.b32.xlu0 %v16201_v7, %s17273_s14 }
 0x44b   : > { %12783 = vmatmul.mubr.msk.bf16.vlgmr.msra.gmra.mrb[12].mxu0 %vm362_vm2, %v16194_v62  ;;  %13253 = vmatpush3.bf16.msra.mxu1 %v7979_v18  ;;  %v8162_v38 = vpop.permute.xlu1 %8161 }
 0x44c   : > { %8202 = vmatpush1.bf16.msra.mxu0 %v8181_v33  ;;  %v16394_v59 = vpop.permute.xlu0 %8595  ;;  %v8173_v26 = vsel %vm8169_vm8, %v16268_v4, %v8162_v38  ;;  %8233 = vmatprep.mubr.bf16.mxu0 %v14349_v2  ;;  %v8390_v4 = vsel %vm8389_vm9, %v16316_v55, %v16308_v11 }
 0x44d   : > { %10155 = vrot.lane.b32.xlu1 %v16145_v21, %s17273_s14  ;;  %12787 = vmatprep.subr.msk.bf16.mxu1 %vm366_vm1, %v8173_v26  ;;  %v8401_v47 = vsel %vm366_vm1, %v8390_v4, 0  ;;  %v8610_v42 = vsel %vm8609_vm10, %v16371_v24, %v16394_v59 }
 0x44e   : > { %9722 = vrot.lane.b32.xlu0 %v16304_v34, %s14402_s12  ;;  %13255 = vmatmul.mubr.msk.bf16.vlgmr.msra.gmra.mrb[12].mxu1 %vm362_vm2, %v16194_v62  ;;  %v8621_v46 = vsel %vm366_vm1, %v8610_v42, 0  ;;  %v9252_v42 = vld [vmem:[#allocation2 + $0xc] sm:$0xff] }
 0x44f   : > { %8243 = vmatpush1.bf16.msra.mxu1 %v8187_v61  ;;  %v8164_v60 = vpop.permute.xlu1 %8163  ;;  %8274 = vmatprep.mubr.bf16.mxu1 %v14349_v2 }
 0x450   : > { %v8174_v48 = vsel %vm8169_vm8, %v8162_v38, %v8164_v60  ;;  %v8166_v1 = vpop.permute.xlu0 %8165  ;;  %13258 = vmatprep.subr.bf16.mxu1 %v14364_v32 }
 0x451   : > { %10159 = vrot.lane.b32.xlu1 %v16159_v16, %s17273_s14  ;;  %v8175_v28 = vsel %vm8169_vm8, %v8164_v60, %v8166_v1  ;;  %v8193_v53 = vsel %vm366_vm1, %v8174_v48, 0 }
 0x452   : > { %9724 = vrot.lane.b32.xlu0 %v16341_v63, %s14402_s12  ;;  %12789 = vmatprep.subr.msk.bf16.mxu0 %vm366_vm1, %v8175_v28 }
 0x453   : > { %12786 = vmatmul.mubr.msk.bf16.vlgmr.msra.gmra.mrb[8].mxu0 %vm362_vm2, %v16282_v52  ;;  %v8168_v62 = vpop.permute.xlu1 %8167 }
 0x454   : > { %8284 = vmatpush1.bf16.msra.mxu0 %v8193_v53  ;;  %v8176_v58 = vsel %vm8169_vm8, %v8166_v1, %v8168_v62  ;;  %v16428_v29 = vpop.permute.xlu0 %8599  ;;  %8315 = vmatprep.mubr.bf16.mxu0 %v14349_v2  ;;  %vm11050_vm8 = vcmask 236544  }
 0x455   : > { %v8199_v14 = vsel %vm366_vm1, %v8176_v58, 0  ;;  %12792 = vmatprep.subr.msk.bf16.mxu0 %vm366_vm1, %v8391_v0  ;;  %10169 = vrot.lane.b32.xlu1 %v16225_v3, %s17273_s14 }
 0x456   : > { %10161 = vrot.lane.b32.xlu0 %v16230_v17, %s17273_s14  ;;  %12788 = vmatmul.mubr.msk.bf16.vlgmr.msra.gmra.mrb[8].mxu1 %vm362_vm2, %v16282_v52 }
 0x457   : > { %13259 = vmatpush3.bf16.msra.mxu1 %v8199_v14  ;;  %v8598_v9 = vpop.permute.xlu1 %8597  ;;  %13260 = vmatprep.mubr.msk.bf16.mxu1 %vm14365_vm3, %v14364_v32 }
 0x458   : > { %v16448_v51 = vpop.permute.xlu0 %8591  ;;  %v8612_v36 = vsel %vm8609_vm10, %v8598_v9, %v16428_v29 }
 0x459   : > { %9941 = vrot.lane.b32.xlu1 %v16304_v34, %s17272_s29  ;;  %v8627_v27 = vsel %vm366_vm1, %v8612_v36, 0 }
 0x45a   : > { %10153 = vrot.lane.b32.xlu0 %v16441_v49, %s14348_s9  ;;  %s17274_s9 = smov 112  }
 0x45b   : > { %12790 = vmatmul.mubr.msk.bf16.vlgmr.msra.gmra.mrb[12].mxu0 %vm362_vm2, %v16282_v52  ;;  %v16457_v8 = vpop.permute.xlu1 %8815 }
 0x45c   : > { %8422 = vmatpush1.bf16.msra.mxu0 %v8401_v47  ;;  %v16459_v45 = vpop.permute.xlu0 %8813  ;;  %8453 = vmatprep.mubr.bf16.mxu0 %v14349_v2 }
 0x45d   : > { %10376 = vrot.lane.b32.xlu1 %v16201_v7, %s14403_s10 }
 0x45e   : > { %10167 = vrot.lane.b32.xlu0 %v16266_v31, %s17273_s14  ;;  %13261 = vmatmul.mubr.msk.bf16.vlgmr.msra.gmra.mrb[12].mxu1 %vm362_vm2, %v16282_v52  ;;  %v8407_v52 = vsel %vm366_vm1, %v8392_v54, 0 }
 0x45f   : > { %v8386_v10 = vpop.permute.xlu1 %8385  ;;  %8494 = vmatprep.mubr.bf16.mxu1 %v14349_v2 }
 0x460   : > { %v8382_v57 = vpop.permute.xlu0 %8381 }
 0x461   : > { %10380 = vrot.lane.b32.xlu1 %v16230_v17, %s14403_s10  ;;  %v8393_v44 = vsel %vm8389_vm9, %v16328_v23, %v8382_v57  ;;  %v8611_v23 = vsel %vm8609_vm10, %v16394_v59, %v8598_v9  ;;  %v8830_v59 = vsel %vm8829_vm13, %v16459_v45, %v16457_v8 }
 0x462   : > { %9943 = vrot.lane.b32.xlu0 %v16341_v63, %s17272_s29  ;;  %12794 = vmatprep.subr.msk.bf16.mxu1 %vm366_vm1, %v8393_v44  ;;  %v8841_v61 = vsel %vm366_vm1, %v8830_v59, 0 }
 0x463   : > { %12793 = vmatmul.mubr.msk.bf16.vlgmr.msra.gmra.mrb[8].mxu0 %vm362_vm2, %v16346_v22  ;;  %8463 = vmatpush1.bf16.msra.mxu1 %v8407_v52  ;;  %v16482_v15 = vpop.permute.xlu1 %8819 }
 0x464   : > { %v8384_v30 = vpop.permute.xlu0 %8383  ;;  %8535 = vmatprep.mubr.bf16.mxu0 %v14349_v2  ;;  %13264 = vmatprep.subr.bf16.mxu1 %v14364_v32 }
 0x465   : > { %v8394_v11 = vsel %vm8389_vm9, %v8382_v57, %v8384_v30  ;;  %10372 = vrot.lane.b32.xlu1 %v16441_v49, %s17274_s9  ;;  %v8395_v56 = vsel %vm8389_vm9, %v8384_v30, %v8386_v10 }
 0x466   : > { %10374 = vrot.lane.b32.xlu0 %v16145_v21, %s14403_s10  ;;  %12795 = vmatmul.mubr.msk.bf16.vlgmr.msra.gmra.mrb[8].mxu1 %vm362_vm2, %v16346_v22  ;;  %v8413_v41 = vsel %vm366_vm1, %v8394_v11, 0 }
 0x467   : > { %12796 = vmatprep.subr.msk.bf16.mxu0 %vm366_vm1, %v8395_v56  ;;  %v16496_v55 = vpop.permute.xlu1 %8811  ;;  %13266 = vmatprep.mubr.msk.bf16.mxu1 %vm14365_vm3, %v14364_v32 }
 0x468   : > { %8504 = vmatpush1.bf16.msra.mxu0 %v8413_v41  ;;  %v8388_v5 = vpop.permute.xlu0 %8387 }
 0x469   : > { %12799 = vmatprep.subr.msk.bf16.mxu0 %vm366_vm1, %v8611_v23  ;;  %v8396_v25 = vsel %vm8389_vm9, %v8386_v10, %v8388_v5  ;;  %10163 = vrot.lane.b32.xlu1 %v16304_v34, %s17273_s14 }
 0x46a   : > { %v8419_v19 = vsel %vm366_vm1, %v8396_v25, 0  ;;  %10378 = vrot.lane.b32.xlu0 %v16159_v16, %s14403_s10  ;;  %v9251_v25 = vld [vmem:[#allocation2 + $0x4] sm:$0xff] }
 0x46b   : > { %12797 = vmatmul.mubr.msk.bf16.vlgmr.msra.gmra.mrb[12].mxu0 %vm362_vm2, %v16346_v22  ;;  %13265 = vmatpush3.bf16.msra.mxu1 %v8419_v19  ;;  %v8602_v20 = vpop.permute.xlu1 %8601 }
 0x46c   : > { %8642 = vmatpush1.bf16.msra.mxu0 %v8621_v46  ;;  %v8818_v13 = vpop.permute.xlu0 %8817  ;;  %v8613_v6 = vsel %vm8609_vm10, %v16428_v29, %v8602_v20  ;;  %8673 = vmatprep.mubr.bf16.mxu0 %v14349_v2 }
 0x46d   : > { %10165 = vrot.lane.b32.xlu1 %v16341_v63, %s17273_s14  ;;  %12801 = vmatprep.subr.msk.bf16.mxu1 %vm366_vm1, %v8613_v6  ;;  %v8831_v18 = vsel %vm8829_vm13, %v16457_v8, %v8818_v13  ;;  %v8832_v1 = vsel %vm8829_vm13, %v8818_v13, %v16482_v15 }
 0x46e   : > { %10382 = vrot.lane.b32.xlu0 %v16304_v34, %s14403_s10  ;;  %13267 = vmatmul.mubr.msk.bf16.vlgmr.msra.gmra.mrb[12].mxu1 %vm362_vm2, %v16346_v22  ;;  %v8847_v58 = vsel %vm366_vm1, %v8832_v1, 0 }
 0x46f   : > { %8683 = vmatpush1.bf16.msra.mxu1 %v8627_v27  ;;  %v8604_v39 = vpop.permute.xlu1 %8603  ;;  %8714 = vmatprep.mubr.bf16.mxu1 %v14349_v2  ;;  %v12821_v27 = vcombine.high %v9251_v25, %v9251_v25 }
 0x470   : > { %v8614_v24 = vsel %vm8609_vm10, %v8602_v20, %v8604_v39  ;;  %v8606_v37 = vpop.permute.xlu0 %8605  ;;  %13270 = vmatprep.subr.bf16.mxu1 %v14364_v32  ;;  %v12823_v20 = vcombine.high %v9252_v42, %v9252_v42 }
 0x471   : > { %10386 = vrot.lane.b32.xlu1 %v16266_v31, %s14403_s10  ;;  %v8615_v35 = vsel %vm8609_vm10, %v8604_v39, %v8606_v37  ;;  %v8633_v12 = vsel %vm366_vm1, %v8614_v24, 0  ;;  %v12820_v39 = vcombine.low %v9251_v25, %v9251_v25 }
 0x472   : > { %10384 = vrot.lane.b32.xlu0 %v16341_v63, %s14403_s10  ;;  %12803 = vmatprep.subr.msk.bf16.mxu0 %vm366_vm1, %v8615_v35  ;;  %v12822_v35 = vcombine.low %v9252_v42, %v9252_v42 }
 0x473   : > { %12800 = vmatmul.mubr.msk.bf16.vlgmr.msra.gmra.mrb[8].mxu0 %vm362_vm2, %v16448_v51  ;;  %v8608_v22 = vpop.permute.xlu1 %8607 }
 0x474   : > { %8724 = vmatpush1.bf16.msra.mxu0 %v8633_v12  ;;  %v8616_v40 = vsel %vm8609_vm10, %v8606_v37, %v8608_v22  ;;  %v9036_v33 = vpop.permute.xlu0 %9035  ;;  %8755 = vmatprep.mubr.bf16.mxu0 %v14349_v2  ;;  %v9253_v37 = vld [vmem:[#allocation2 + $0x14] sm:$0xff]  ;;  %v9279_v12 = vsel %vm366_vm1, %v12820_v39, 0 }
 0x475   : > { %v8639_v43 = vsel %vm366_vm1, %v8616_v40, 0  ;;  %12806 = vmatprep.subr.msk.bf16.mxu0 %vm366_vm1, %v8831_v18  ;;  %10594 = vrot.lane.b32.xlu1 %v16145_v21, %s14404_s16  ;;  %v12825_v40 = vcombine.high %v9253_v37, %v9253_v37 }
 0x476   : > { %10388 = vrot.lane.b32.xlu0 %v16225_v3, %s14403_s10  ;;  %12802 = vmatmul.mubr.msk.bf16.vlgmr.msra.gmra.mrb[8].mxu1 %vm362_vm2, %v16448_v51 }
 0x477   : > { %13271 = vmatpush3.bf16.msra.mxu1 %v8639_v43  ;;  %v9034_v38 = vpop.permute.xlu1 %9033  ;;  %13272 = vmatprep.mubr.msk.bf16.mxu1 %vm14365_vm3, %v14364_v32 }
 0x478   : > { %v9040_v26 = vpop.permute.xlu0 %9039  ;;  %v9050_v47 = vsel %vm9049_vm4, %v9034_v38, %v9036_v33  ;;  %v12824_v38 = vcombine.low %v9253_v37, %v9253_v37 }
 0x479   : > { %10598 = vrot.lane.b32.xlu1 %v16159_v16, %s14404_s16  ;;  %v9061_v57 = vsel %vm366_vm1, %v9050_v47, 0 }
 0x47a   : > { %10596 = vrot.lane.b32.xlu0 %v16201_v7, %s14404_s16 }
 0x47b   : > { %12804 = vmatmul.mubr.msk.bf16.vlgmr.msra.gmra.mrb[12].mxu0 %vm362_vm2, %v16448_v51  ;;  %v9038_v60 = vpop.permute.xlu1 %9037 }
 0x47c   : > { %8862 = vmatpush1.bf16.msra.mxu0 %v8841_v61  ;;  %v16564_v48 = vpop.permute.xlu0 %9031  ;;  %8893 = vmatprep.mubr.bf16.mxu0 %v14349_v2  ;;  %v9051_v8 = vsel %vm9049_vm4, %v9036_v33, %v9038_v60  ;;  %v9052_v44 = vsel %vm9049_vm4, %v9038_v60, %v9040_v26  ;;  %v9285_v33 = vsel %vm366_vm1, %v12822_v35, 0  ;;  %v9291_v61 = vsel %vm366_vm1, %v12824_v38, 0 }
 0x47d   : > { %10602 = vrot.lane.b32.xlu1 %v16304_v34, %s14404_s16  ;;  %v9067_v11 = vsel %vm366_vm1, %v9052_v44, 0 }
 0x47e   : > { %10600 = vrot.lane.b32.xlu0 %v16230_v17, %s14404_s16  ;;  %13273 = vmatmul.mubr.msk.bf16.vlgmr.msra.gmra.mrb[12].mxu1 %vm362_vm2, %v16448_v51 }
 0x47f   : > { %v8826_v28 = vpop.permute.xlu1 %8825  ;;  %8934 = vmatprep.mubr.bf16.mxu1 %v14349_v2 }
 0x480   : > { %v8822_v53 = vpop.permute.xlu0 %8821 }
 0x481   : > { %10604 = vrot.lane.b32.xlu1 %v16341_v63, %s14404_s16  ;;  %v8833_v62 = vsel %vm8829_vm13, %v16482_v15, %v8822_v53 }
 0x482   : > { %10592 = vrot.lane.b32.xlu0 %v16441_v49, %s17275_s18  ;;  %12808 = vmatprep.subr.msk.bf16.mxu1 %vm366_vm1, %v8833_v62 }
 0x483   : > { %12807 = vmatmul.mubr.msk.bf16.vlgmr.msra.gmra.mrb[8].mxu0 %vm362_vm2, %v16496_v55  ;;  %8903 = vmatpush1.bf16.msra.mxu1 %v8847_v58  ;;  %v16586_v0 = vpop.permute.xlu1 %9495 }
 0x484   : > { %v8824_v29 = vpop.permute.xlu0 %8823  ;;  %8975 = vmatprep.mubr.bf16.mxu0 %v14349_v2  ;;  %13276 = vmatprep.subr.bf16.mxu1 %v14364_v32 }
 0x485   : > { %v8834_v14 = vsel %vm8829_vm13, %v8822_v53, %v8824_v29  ;;  %10608 = vrot.lane.b32.xlu1 %v16225_v3, %s14404_s16  ;;  %v8835_v9 = vsel %vm8829_vm13, %v8824_v29, %v8826_v28 }
 0x486   : > { %10606 = vrot.lane.b32.xlu0 %v16266_v31, %s14404_s16  ;;  %12809 = vmatmul.mubr.msk.bf16.vlgmr.msra.gmra.mrb[8].mxu1 %vm362_vm2, %v16496_v55  ;;  %v8853_v4 = vsel %vm366_vm1, %v8834_v14, 0 }
 0x487   : > { %12810 = vmatprep.subr.msk.bf16.mxu0 %vm366_vm1, %v8835_v9  ;;  %v16600_v51 = vpop.permute.xlu1 %9499  ;;  %13278 = vmatprep.mubr.msk.bf16.mxu1 %vm14365_vm3, %v14364_v32 }
 0x488   : > { %8944 = vmatpush1.bf16.msra.mxu0 %v8853_v4  ;;  %v8828_v45 = vpop.permute.xlu0 %8827 }
 0x489   : > { %12813 = vmatprep.subr.msk.bf16.mxu0 %vm366_vm1, %v9051_v8  ;;  %v8836_v54 = vsel %vm8829_vm13, %v8826_v28, %v8828_v45  ;;  %10816 = vrot.lane.b32.xlu1 %v16201_v7, %s14405_s17 }
 0x48a   : > { %v8859_v10 = vsel %vm366_vm1, %v8836_v54, 0  ;;  %10814 = vrot.lane.b32.xlu0 %v16145_v21, %s14405_s17 }
 0x48b   : > { %12811 = vmatmul.mubr.msk.bf16.vlgmr.msra.gmra.mrb[12].mxu0 %vm362_vm2, %v16496_v55  ;;  %13277 = vmatpush3.bf16.msra.mxu1 %v8859_v10  ;;  %v9042_v52 = vpop.permute.xlu1 %9041 }
 0x48c   : > { %9082 = vmatpush1.bf16.msra.mxu0 %v9061_v57  ;;  %v16617_v15 = vpop.permute.xlu0 %9255  ;;  %v9053_v30 = vsel %vm9049_vm4, %v9040_v26, %v9042_v52  ;;  %9113 = vmatprep.mubr.bf16.mxu0 %v14349_v2  ;;  %v14333_v26 = vld [vmem:[#allocation2 + $0x1c] ss:$0 sps:$4 sm:$0xff]  }
 0x48d   : > { %10820 = vrot.lane.b32.xlu1 %v16230_v17, %s14405_s17  ;;  %12815 = vmatprep.subr.msk.bf16.mxu1 %vm366_vm1, %v9053_v30  ;;  %v9297_v28 = vsel %vm366_vm1, %v14333_v26, 0 }
 0x48e   : > { %10818 = vrot.lane.b32.xlu0 %v16159_v16, %s14405_s17  ;;  %13279 = vmatmul.mubr.msk.bf16.vlgmr.msra.gmra.mrb[12].mxu1 %vm362_vm2, %v16496_v55 }
 0x48f   : > { %9123 = vmatpush1.bf16.msra.mxu1 %v9067_v11  ;;  %v9044_v56 = vpop.permute.xlu1 %9043  ;;  %9154 = vmatprep.mubr.bf16.mxu1 %v14349_v2 }
 0x490   : > { %v16630_v41 = vpop.permute.xlu0 %9497  ;;  %13282 = vmatprep.subr.bf16.mxu1 %v14364_v32  ;;  %v9054_v23 = vsel %vm9049_vm4, %v9042_v52, %v9044_v56 }
 0x491   : > { %10812 = vrot.lane.b32.xlu1 %v16441_v49, %s14356_s20  ;;  %v9073_v13 = vsel %vm366_vm1, %v9054_v23, 0  ;;  %s14406_s20 = smov 29   ;;  %v9511_v62 = vsel %vm354_vm0, %v16586_v0, %v16630_v41 }
 0x492   : > { %10822 = vrot.lane.b32.xlu0 %v16304_v34, %s14405_s17  ;;  %v9522_v14 = vsel %vm366_vm1, %v9511_v62, 0 }
 0x493   : > { %12814 = vmatmul.mubr.msk.bf16.vlgmr.msra.gmra.mrb[8].mxu0 %vm362_vm2, %v16564_v48  ;;  %v9048_v55 = vpop.permute.xlu1 %9047 }
 0x494   : > { %v9046_v5 = vpop.permute.xlu0 %9045  ;;  %9195 = vmatprep.mubr.bf16.mxu0 %v14349_v2 }
 0x495   : > { %v9056_v19 = vsel %vm9049_vm4, %v9046_v5, %v9048_v55  ;;  %10826 = vrot.lane.b32.xlu1 %v16266_v31, %s14405_s17  ;;  %v9055_v36 = vsel %vm9049_vm4, %v9044_v56, %v9046_v5 }
 0x496   : > { %10824 = vrot.lane.b32.xlu0 %v16341_v63, %s14405_s17  ;;  %12816 = vmatmul.mubr.msk.bf16.vlgmr.msra.gmra.mrb[8].mxu1 %vm362_vm2, %v16564_v48  ;;  %v9079_v46 = vsel %vm366_vm1, %v9056_v19, 0 }
 0x497   : > { %12817 = vmatprep.subr.msk.bf16.mxu0 %vm366_vm1, %v9055_v36  ;;  %13283 = vmatpush3.bf16.msra.mxu1 %v9079_v46  ;;  %v16652_v6 = vpop.permute.xlu1 %9509 }
 0x498   : > { %9164 = vmatpush1.bf16.msra.mxu0 %v9073_v13  ;;  %12829 = vmatprep.subr.msk.bf16.mxu1 %vm366_vm1, %v12823_v20  ;;  %v9502_v24 = vpop.permute.xlu0 %9501 }
 0x499   : > { %12827 = vmatprep.subr.msk.bf16.mxu0 %vm366_vm1, %v12821_v27  ;;  %11034 = vrot.lane.b32.xlu1 %v16145_v21, %s14406_s20  ;;  %v9513_v29 = vsel %vm354_vm0, %v16600_v51, %v9502_v24 }
 0x49a   : > { %10828 = vrot.lane.b32.xlu0 %v16225_v3, %s14405_s17  ;;  %13284 = vmatprep.mubr.msk.bf16.mxu1 %vm14365_vm3, %v14364_v32 }
 0x49b   : > { %12818 = vmatmul.mubr.msk.bf16.vlgmr.msra.gmra.mrb[12].mxu0 %vm362_vm2, %v16564_v48  ;;  %v16665_v22 = vpop.permute.xlu1 %9716 }
 0x49c   : > { %9300 = vmatpush1.bf16.msra.mxu0 %v9279_v12  ;;  %v16667_v18 = vpop.permute.xlu0 %9473  ;;  %9331 = vmatprep.mubr.bf16.mxu0 %v14349_v2 }
 0x49d   : > { %12831 = vmatprep.subr.msk.bf16.mxu0 %vm366_vm1, %v12825_v40  ;;  %11038 = vrot.lane.b32.xlu1 %v16159_v16, %s14406_s20 }
 0x49e   : > { %11036 = vrot.lane.b32.xlu0 %v16201_v7, %s14406_s20  ;;  %13285 = vmatmul.mubr.msk.bf16.vlgmr.msra.gmra.mrb[12].mxu1 %vm362_vm2, %v16564_v48  ;;  %v9512_v48 = vsel %vm354_vm0, %v16630_v41, %v16600_v51  ;;  %v9528_v51 = vsel %vm366_vm1, %v9513_v29, 0 }
 0x49f   : > { %9341 = vmatpush1.bf16.msra.mxu1 %v9285_v33  ;;  %v16678_v43 = vpop.permute.xlu1 %9720  ;;  %9372 = vmatprep.mubr.bf16.mxu1 %v14349_v2 }
 0x4a0   : > { %v9508_v59 = vpop.permute.xlu0 %9507  ;;  %13288 = vmatprep.subr.bf16.mxu1 %v14364_v32 }
 0x4a1   : > { %11042 = vrot.lane.b32.xlu1 %v16304_v34, %s14406_s20  ;;  %v9517_v45 = vsel %vm354_vm0, %v9508_v59, %v16652_v6 }
 0x4a2   : > { %11040 = vrot.lane.b32.xlu0 %v16230_v17, %s14406_s20 }
 0x4a3   : > { %12828 = vmatmul.mubr.msk.bf16.vlgmr.msra.gmra.mrb[8].mxu0 %vm362_vm2, %v16617_v15  ;;  %v16689_v60 = vpop.permute.xlu1 %9712 }
 0x4a4   : > { %9382 = vmatpush1.bf16.msra.mxu0 %v9291_v61  ;;  %v9715_v1 = vpop.permute.xlu0 %9714  ;;  %9413 = vmatprep.mubr.bf16.mxu0 %v14349_v2 }
 0x4a5   : > { %12842 = vmatprep.subr.msk.bf16.mxu0 %vm366_vm1, %v9512_v48  ;;  %11044 = vrot.lane.b32.xlu1 %v16341_v63, %s14406_s20  ;;  %v9731_v56 = vsel %vm9730_vm7, %v9715_v1, %v16665_v22 }
 0x4a6   : > { %11032 = vrot.lane.b32.xlu0 %v16441_v49, %s14358_s22  ;;  %12830 = vmatmul.mubr.msk.bf16.vlgmr.msra.gmra.mrb[8].mxu1 %vm362_vm2, %v16617_v15  ;;  %s17276_s22 = smov 28   ;;  %v9742_v55 = vsel %vm366_vm1, %v9731_v56, 0 }
 0x4a7   : > { %13289 = vmatpush3.bf16.msra.mxu1 %v9297_v28  ;;  %v16703_v53 = vpop.permute.xlu1 %9726  ;;  %13290 = vmatprep.mubr.msk.bf16.mxu1 %vm14365_vm3, %v14364_v32 }
 0x4a8   : > { %v9719_v58 = vpop.permute.xlu0 %9718 }
 0x4a9   : > { %11048 = vrot.lane.b32.xlu1 %v16225_v3, %s14406_s20  ;;  %v9732_v11 = vsel %vm9730_vm7, %v16665_v22, %v9719_v58  ;;  %v9733_v5 = vsel %vm9730_vm7, %v9719_v58, %v16678_v43 }
 0x4aa   : > { %11046 = vrot.lane.b32.xlu0 %v16266_v31, %s14406_s20  ;;  %v9748_v46 = vsel %vm366_vm1, %v9733_v5, 0 }
 0x4ab   : > { %12832 = vmatmul.mubr.msk.bf16.vlgmr.msra.gmra.mrb[12].mxu0 %vm362_vm2, %v16617_v15  ;;  %v9504_v9 = vpop.permute.xlu1 %9503 }
 0x4ac   : > { %9543 = vmatpush1.bf16.msra.mxu0 %v9522_v14  ;;  %v9729_v4 = vpop.permute.xlu0 %9728  ;;  %v9514_v0 = vsel %vm354_vm0, %v9502_v24, %v9504_v9  ;;  %9574 = vmatprep.mubr.bf16.mxu0 %v14349_v2 }
 0x4ad   : > { %11256 = vrot.lane.b32.xlu1 %v16201_v7, %s17276_s22  ;;  %12844 = vmatprep.subr.msk.bf16.mxu1 %vm366_vm1, %v9514_v0  ;;  %v9737_v20 = vsel %vm9730_vm7, %v16703_v53, %v9729_v4 }
 0x4ae   : > { %11254 = vrot.lane.b32.xlu0 %v16145_v21, %s17276_s22  ;;  %13291 = vmatmul.mubr.msk.bf16.vlgmr.msra.gmra.mrb[12].mxu1 %vm362_vm2, %v16617_v15  ;;  %v9540_v15 = vsel %vm366_vm1, %v9517_v45, 0  ;;  %v9760_v24 = vsel %vm366_vm1, %v9737_v20, 0 }
 0x4af   : > { %9584 = vmatpush1.bf16.msra.mxu1 %v9528_v51  ;;  %v16729_v47 = vpop.permute.xlu1 %9933  ;;  %9615 = vmatprep.mubr.bf16.mxu1 %v14349_v2 }
 0x4b0   : > { %v16732_v8 = vpop.permute.xlu0 %9935  ;;  %13294 = vmatprep.subr.bf16.mxu1 %v14364_v32 }
 0x4b1   : > { %11260 = vrot.lane.b32.xlu1 %v16230_v17, %s17276_s22  ;;  %v9949_v12 = vsel %vm979_vm5, %v16729_v47, %v16732_v8 }
 0x4b2   : > { %11258 = vrot.lane.b32.xlu0 %v16159_v16, %s17276_s22  ;;  %v9960_v33 = vsel %vm366_vm1, %v9949_v12, 0 }
 0x4b3   : > { %12843 = vmatmul.mubr.msk.bf16.vlgmr.msra.gmra.mrb[8].mxu0 %vm362_vm2, %v16667_v18  ;;  %v9506_v54 = vpop.permute.xlu1 %9505 }
 0x4b4   : > { %v9515_v10 = vsel %vm354_vm0, %v9504_v9, %v9506_v54  ;;  %v16744_v57 = vpop.permute.xlu0 %9939  ;;  %v9516_v44 = vsel %vm354_vm0, %v9506_v54, %v9508_v59  ;;  %9656 = vmatprep.mubr.bf16.mxu0 %v14349_v2  ;;  %vm10390_vm0 = vcmask 318464  }
 0x4b5   : > { %11252 = vrot.lane.b32.xlu1 %v16441_v49, %s14360_s24  ;;  %12846 = vmatprep.subr.msk.bf16.mxu0 %vm366_vm1, %v9516_v44  ;;  %v9534_v52 = vsel %vm366_vm1, %v9515_v10, 0  ;;  %s17277_s24 = smov 27  }
 0x4b6   : > { %11262 = vrot.lane.b32.xlu0 %v16304_v34, %s17276_s22  ;;  %12845 = vmatmul.mubr.msk.bf16.vlgmr.msra.gmra.mrb[8].mxu1 %vm362_vm2, %v16667_v18 }
 0x4b7   : > { %13295 = vmatpush3.bf16.msra.mxu1 %v9540_v15  ;;  %9625 = vmatpush1.bf16.msra.mxu0 %v9534_v52  ;;  %v9938_v30 = vpop.permute.xlu1 %9937 }
 0x4b8   : > { %12849 = vmatprep.subr.msk.bf16.mxu0 %vm366_vm1, %v9732_v11  ;;  %v16762_v41 = vpop.permute.xlu0 %9947  ;;  %13296 = vmatprep.mubr.msk.bf16.mxu1 %vm14365_vm3, %v14364_v32  ;;  %v9950_v22 = vsel %vm979_vm5, %v16732_v8, %v9938_v30 }
 0x4b9   : > { %11266 = vrot.lane.b32.xlu1 %v16266_v31, %s17276_s22 }
 0x4ba   : > { %11264 = vrot.lane.b32.xlu0 %v16341_v63, %s17276_s22 }
 0x4bb   : > { %12847 = vmatmul.mubr.msk.bf16.vlgmr.msra.gmra.mrb[12].mxu0 %vm362_vm2, %v16667_v18  ;;  %v16773_v42 = vpop.permute.xlu1 %9945 }
 0x4bc   : > { %9763 = vmatpush1.bf16.msra.mxu0 %v9742_v55  ;;  %v16775_v23 = vpop.permute.xlu0 %10157  ;;  %9794 = vmatprep.mubr.bf16.mxu0 %v14349_v2 }
 0x4bd   : > { %11473 = vrot.lane.b32.xlu1 %v16145_v21, %s17277_s24 }
 0x4be   : > { %11268 = vrot.lane.b32.xlu0 %v16225_v3, %s17276_s22  ;;  %13297 = vmatmul.mubr.msk.bf16.vlgmr.msra.gmra.mrb[12].mxu1 %vm362_vm2, %v16667_v18  ;;  %v9951_v18 = vsel %vm979_vm5, %v9938_v30, %v16744_v57 }
 0x4bf   : > { %v16786_v25 = vpop.permute.xlu1 %10155  ;;  %9835 = vmatprep.mubr.bf16.mxu1 %v14349_v2  ;;  %v9966_v26 = vsel %vm366_vm1, %v9951_v18, 0 }
 0x4c0   : > { %v9723_v19 = vpop.permute.xlu0 %9722  ;;  %v10171_v9 = vsel %vm1199_vm6, %v16786_v25, %v16775_v23 }
 0x4c1   : > { %11477 = vrot.lane.b32.xlu1 %v16159_v16, %s17277_s24  ;;  %v9734_v36 = vsel %vm9730_vm7, %v16678_v43, %v9723_v19  ;;  %v10182_v51 = vsel %vm366_vm1, %v10171_v9, 0  ;;  %v12361_v9 = vld [vmem:[%s17253_s6] sm:$0xff] }
 0x4c2   : > { %11475 = vrot.lane.b32.xlu0 %v16201_v7, %s17277_s24  ;;  %12851 = vmatprep.subr.msk.bf16.mxu1 %vm366_vm1, %v9734_v36 }
 0x4c3   : > { %12850 = vmatmul.mubr.msk.bf16.vlgmr.msra.gmra.mrb[8].mxu0 %vm362_vm2, %v16689_v60  ;;  %9804 = vmatpush1.bf16.msra.mxu1 %v9748_v46  ;;  %v16801_v13 = vpop.permute.xlu1 %10159 }
 0x4c4   : > { %v9725_v6 = vpop.permute.xlu0 %9724  ;;  %13300 = vmatprep.subr.bf16.mxu1 %v14364_v32  ;;  %9876 = vmatprep.mubr.bf16.mxu0 %v14349_v2  ;;  %v10172_v4 = vsel %vm1199_vm6, %v16775_v23, %v16801_v13 }
 0x4c5   : > { %v9735_v27 = vsel %vm9730_vm7, %v9723_v19, %v9725_v6  ;;  %v9736_v39 = vsel %vm9730_vm7, %v9725_v6, %v16703_v53  ;;  %11481 = vrot.lane.b32.xlu1 %v16304_v34, %s17277_s24 }
 0x4c6   : > { %v9754_v37 = vsel %vm366_vm1, %v9735_v27, 0  ;;  %11479 = vrot.lane.b32.xlu0 %v16230_v17, %s17277_s24  ;;  %12852 = vmatmul.mubr.msk.bf16.vlgmr.msra.gmra.mrb[8].mxu1 %vm362_vm2, %v16689_v60 }
 0x4c7   : > { %12853 = vmatprep.subr.msk.bf16.mxu0 %vm366_vm1, %v9736_v39  ;;  %13301 = vmatpush3.bf16.msra.mxu1 %v9760_v24  ;;  %v16817_v35 = vpop.permute.xlu1 %10169 }
 0x4c8   : > { %9845 = vmatpush1.bf16.msra.mxu0 %v9754_v37  ;;  %v10162_v40 = vpop.permute.xlu0 %10161  ;;  %13302 = vmatprep.mubr.msk.bf16.mxu1 %vm14365_vm3, %v14364_v32 }
 0x4c9   : > { %12856 = vmatprep.subr.msk.bf16.mxu0 %vm366_vm1, %v9950_v22  ;;  %11483 = vrot.lane.b32.xlu1 %v16341_v63, %s17277_s24  ;;  %v10173_v47 = vsel %vm1199_vm6, %v16801_v13, %v10162_v40 }
 0x4ca   : > { %11471 = vrot.lane.b32.xlu0 %v16441_v49, %s14362_s26  ;;  %s14407_s26 = smov 19   ;;  %v10188_v10 = vsel %vm366_vm1, %v10173_v47, 0  ;;  %v12376_v47 = vld [vmem:[%s14482_s13 + $0x10] sm:$0xff] }
 0x4cb   : > { %12854 = vmatmul.mubr.msk.bf16.vlgmr.msra.gmra.mrb[12].mxu0 %vm362_vm2, %v16689_v60  ;;  %v9942_v43 = vpop.permute.xlu1 %9941 }
 0x4cc   : > { %9981 = vmatpush1.bf16.msra.mxu0 %v9960_v33  ;;  %v9952_v38 = vsel %vm979_vm5, %v16744_v57, %v9942_v43  ;;  %v16838_v59 = vpop.permute.xlu0 %10153  ;;  %10012 = vmatprep.mubr.bf16.mxu0 %v14349_v2 }
 0x4cd   : > { %11487 = vrot.lane.b32.xlu1 %v16225_v3, %s17277_s24  ;;  %12858 = vmatprep.subr.msk.bf16.mxu1 %vm366_vm1, %v9952_v38 }
 0x4ce   : > { %11485 = vrot.lane.b32.xlu0 %v16266_v31, %s17277_s24  ;;  %13303 = vmatmul.mubr.msk.bf16.vlgmr.msra.gmra.mrb[12].mxu1 %vm362_vm2, %v16689_v60  ;;  %v9955_v60 = vsel %vm979_vm5, %v16773_v42, %v16762_v41 }
 0x4cf   : > { %10022 = vmatpush1.bf16.msra.mxu1 %v9966_v26  ;;  %v16849_v61 = vpop.permute.xlu1 %10376  ;;  %10053 = vmatprep.mubr.bf16.mxu1 %v14349_v2  ;;  %v9978_v29 = vsel %vm366_vm1, %v9955_v60, 0 }
 0x4d0   : > { %v10168_v48 = vpop.permute.xlu0 %10167  ;;  %13306 = vmatprep.subr.bf16.mxu1 %v14364_v32 }
 0x4d1   : > { %11694 = vrot.lane.b32.xlu1 %v16201_v7, %s14407_s26 }
 0x4d2   : > { %11692 = vrot.lane.b32.xlu0 %v16145_v21, %s14407_s26 }
 0x4d3   : > { %12857 = vmatmul.mubr.msk.bf16.vlgmr.msra.gmra.mrb[8].mxu0 %vm362_vm2, %v16422_v50  ;;  %v16862_v1 = vpop.permute.xlu1 %10380 }
 0x4d4   : > { %v9944_v28 = vpop.permute.xlu0 %9943  ;;  %10094 = vmatprep.mubr.bf16.mxu0 %v14349_v2 }
 0x4d5   : > { %v9953_v53 = vsel %vm979_vm5, %v9942_v43, %v9944_v28  ;;  %v9954_v62 = vsel %vm979_vm5, %v9944_v28, %v16773_v42  ;;  %11698 = vrot.lane.b32.xlu1 %v16230_v17, %s14407_s26  ;;  %vm10610_vm5 = vcmask 310272  }
 0x4d6   : > { %v9972_v58 = vsel %vm366_vm1, %v9953_v53, 0  ;;  %11696 = vrot.lane.b32.xlu0 %v16159_v16, %s14407_s26  ;;  %12859 = vmatmul.mubr.msk.bf16.vlgmr.msra.gmra.mrb[8].mxu1 %vm362_vm2, %v16422_v50 }
 0x4d7   : > { %12860 = vmatprep.subr.msk.bf16.mxu0 %vm366_vm1, %v9954_v62  ;;  %13307 = vmatpush3.bf16.msra.mxu1 %v9978_v29  ;;  %v16877_v14 = vpop.permute.xlu1 %10372 }
 0x4d8   : > { %10063 = vmatpush1.bf16.msra.mxu0 %v9972_v58  ;;  %v10375_v0 = vpop.permute.xlu0 %10374  ;;  %13308 = vmatprep.mubr.msk.bf16.mxu1 %vm14365_vm3, %v14364_v32 }
 0x4d9   : > { %12864 = vmatprep.subr.msk.bf16.mxu0 %vm366_vm1, %v10172_v4  ;;  %11690 = vrot.lane.b32.xlu1 %v16441_v49, %s14366_s30  ;;  %s17278_s30 = smov 18   ;;  %v10391_v5 = vsel %vm10390_vm0, %v10375_v0, %v16849_v61 }
 0x4da   : > { %11700 = vrot.lane.b32.xlu0 %v16304_v34, %s14407_s26  ;;  %v10402_v19 = vsel %vm366_vm1, %v10391_v5, 0 }
 0x4db   : > { %12861 = vmatmul.mubr.msk.bf16.vlgmr.msra.gmra.mrb[12].mxu0 %vm362_vm2, %v16422_v50  ;;  %v10164_v8 = vpop.permute.xlu1 %10163 }
 0x4dc   : > { %10203 = vmatpush1.bf16.msra.mxu0 %v10182_v51  ;;  %v10174_v45 = vsel %vm1199_vm6, %v10162_v40, %v10164_v8  ;;  %v10379_v54 = vpop.permute.xlu0 %10378  ;;  %10234 = vmatprep.mubr.bf16.mxu0 %v14349_v2  ;;  %v12374_v51 = vld [vmem:[%s14482_s13] sm:$0xff] }
 0x4dd   : > { %11704 = vrot.lane.b32.xlu1 %v16266_v31, %s14407_s26  ;;  %12866 = vmatprep.subr.msk.bf16.mxu1 %vm366_vm1, %v10174_v45  ;;  %v10392_v56 = vsel %vm10390_vm0, %v16849_v61, %v10379_v54  ;;  %v10393_v36 = vsel %vm10390_vm0, %v10379_v54, %v16862_v1  ;;  %v12378_v45 = vunpack.c.l.bf16 %v12374_v51  ;;  %v12379_v54 = vunpack.c.h.bf16 %v12374_v51 }
 0x4de   : > { %11702 = vrot.lane.b32.xlu0 %v16341_v63, %s14407_s26  ;;  %13309 = vmatmul.mubr.msk.bf16.vlgmr.msra.gmra.mrb[12].mxu1 %vm362_vm2, %v16422_v50  ;;  %v10177_v50 = vsel %vm1199_vm6, %v10168_v48, %v16817_v35  ;;  %v10408_v6 = vsel %vm366_vm1, %v10393_v36, 0 }
 0x4df   : > { %10244 = vmatpush1.bf16.msra.mxu1 %v10188_v10  ;;  %v10166_v57 = vpop.permute.xlu1 %10165  ;;  %10275 = vmatprep.mubr.bf16.mxu1 %v14349_v2  ;;  %v10200_v55 = vsel %vm366_vm1, %v10177_v50, 0  ;;  %v12383_v50 = vunpack.c.h.bf16 %v12376_v47 }
 0x4e0   : > { %v10175_v44 = vsel %vm1199_vm6, %v10164_v8, %v10166_v57  ;;  %v10176_v52 = vsel %vm1199_vm6, %v10166_v57, %v10168_v48  ;;  %v10383_v15 = vpop.permute.xlu0 %10382  ;;  %13312 = vmatprep.subr.bf16.mxu1 %v14364_v32  ;;  %vm10830_vm6 = vcmask 302080   ;;  %v12377_v57 = vld [vmem:[%s14482_s13 + $0x18] sm:$0xff] }
 0x4e1   : > { %v10194_v30 = vsel %vm366_vm1, %v10175_v44, 0  ;;  %11912 = vrot.lane.b32.xlu1 %v16145_v21, %s17278_s30  ;;  %12868 = vmatprep.subr.msk.bf16.mxu0 %vm366_vm1, %v10176_v52  ;;  %v10394_v42 = vsel %vm10390_vm0, %v16862_v1, %v10383_v15 }
 0x4e2   : > { %11706 = vrot.lane.b32.xlu0 %v16225_v3, %s14407_s26 }
 0x4e3   : > { %12865 = vmatmul.mubr.msk.bf16.vlgmr.msra.gmra.mrb[8].mxu0 %vm362_vm2, %v16838_v59  ;;  %v10387_v11 = vpop.permute.xlu1 %10386 }
 0x4e4   : > { %10285 = vmatpush1.bf16.msra.mxu0 %v10194_v30  ;;  %v10385_v41 = vpop.permute.xlu0 %10384  ;;  %10316 = vmatprep.mubr.bf16.mxu0 %v14349_v2  ;;  %v12382_v30 = vunpack.c.l.bf16 %v12376_v47 }
 0x4e5   : > { %12871 = vmatprep.subr.msk.bf16.mxu0 %vm366_vm1, %v10392_v56  ;;  %11916 = vrot.lane.b32.xlu1 %v16159_v16, %s17278_s30  ;;  %v10396_v20 = vsel %vm10390_vm0, %v10385_v41, %v10387_v11  ;;  %v10395_v39 = vsel %vm10390_vm0, %v10383_v15, %v10385_v41  ;;  %v14276_v56 = vpack.i.bf16 %v12379_v54, %v12378_v45 }
 0x4e6   : > { %11914 = vrot.lane.b32.xlu0 %v16201_v7, %s17278_s30  ;;  %12867 = vmatmul.mubr.msk.bf16.vlgmr.msra.gmra.mrb[8].mxu1 %vm362_vm2, %v16838_v59  ;;  %v10414_v37 = vsel %vm366_vm1, %v10395_v39, 0  ;;  %v14286_v5 = vpack.i.bf16 %v12383_v50, %v12382_v30 }
 0x4e7   : > { %13313 = vmatpush3.bf16.msra.mxu1 %v10200_v55  ;;  %v10595_v23 = vpop.permute.xlu1 %10594  ;;  %13314 = vmatprep.mubr.msk.bf16.mxu1 %vm14365_vm3, %v14364_v32  ;;  %v12384_v55 = vunpack.c.l.bf16 %v12377_v57 }
 0x4e8   : > { %12873 = vmatprep.subr.msk.bf16.mxu1 %vm366_vm1, %v10394_v42  ;;  %v10389_v25 = vpop.permute.xlu0 %10388  ;;  %v12385_v42 = vunpack.c.h.bf16 %v12377_v57 }
 0x4e9   : > { %11920 = vrot.lane.b32.xlu1 %v16304_v34, %s17278_s30  ;;  %v10397_v35 = vsel %vm10390_vm0, %v10387_v11, %v10389_v25 }
 0x4ea   : > { %11918 = vrot.lane.b32.xlu0 %v16230_v17, %s17278_s30  ;;  %v10420_v18 = vsel %vm366_vm1, %v10397_v35, 0 }
 0x4eb   : > { %12869 = vmatmul.mubr.msk.bf16.vlgmr.msra.gmra.mrb[12].mxu0 %vm362_vm2, %v16838_v59  ;;  %v10599_v46 = vpop.permute.xlu1 %10598 }
 0x4ec   : > { %10423 = vmatpush1.bf16.msra.mxu0 %v10402_v19  ;;  %v10597_v13 = vpop.permute.xlu0 %10596  ;;  %10454 = vmatprep.mubr.bf16.mxu0 %v14349_v2 }
 0x4ed   : > { %12875 = vmatprep.subr.msk.bf16.mxu0 %vm366_vm1, %v10396_v20  ;;  %11922 = vrot.lane.b32.xlu1 %v16341_v63, %s17278_s30  ;;  %v10612_v22 = vsel %vm10610_vm5, %v10597_v13, %v10599_v46  ;;  %v10611_v38 = vsel %vm10610_vm5, %v10595_v23, %v10597_v13 }
 0x4ee   : > { %11910 = vrot.lane.b32.xlu0 %v16441_v49, %s14368_s11  ;;  %13315 = vmatmul.mubr.msk.bf16.vlgmr.msra.gmra.mrb[12].mxu1 %vm362_vm2, %v16838_v59  ;;  %s17279_s11 = smov 17   ;;  %v10622_v59 = vsel %vm366_vm1, %v10611_v38, 0 }
 0x4ef   : > { %10464 = vmatpush1.bf16.msra.mxu1 %v10408_v6  ;;  %v10603_v27 = vpop.permute.xlu1 %10602  ;;  %10495 = vmatprep.mubr.bf16.mxu1 %v14349_v2 }
 0x4f0   : > { %v10601_v24 = vpop.permute.xlu0 %10600  ;;  %13318 = vmatprep.subr.bf16.mxu1 %v14364_v32 }
 0x4f1   : > { %11926 = vrot.lane.b32.xlu1 %v16225_v3, %s17278_s30  ;;  %v10614_v33 = vsel %vm10610_vm5, %v10601_v24, %v10603_v27  ;;  %v10613_v26 = vsel %vm10610_vm5, %v10599_v46, %v10601_v24  ;;  %v14291_v46 = vpack.i.bf16 %v12385_v42, %v12384_v55 }
 0x4f2   : > { %11924 = vrot.lane.b32.xlu0 %v16266_v31, %s17278_s30 }
 0x4f3   : > { %12872 = vmatmul.mubr.msk.bf16.vlgmr.msra.gmra.mrb[8].mxu0 %vm362_vm2, %v16877_v14  ;;  %v10605_v12 = vpop.permute.xlu1 %10604 }
 0x4f4   : > { %10505 = vmatpush1.bf16.msra.mxu0 %v10414_v37  ;;  %v16970_v40 = vpop.permute.xlu0 %10592  ;;  %10536 = vmatprep.mubr.bf16.mxu0 %v14349_v2  ;;  %v10615_v60 = vsel %vm10610_vm5, %v10603_v27, %v10605_v12 }
 0x4f5   : > { %12878 = vmatprep.subr.msk.bf16.mxu0 %vm366_vm1, %v10612_v22  ;;  %12133 = vrot.lane.b32.xlu1 %v16201_v7, %s17279_s11  ;;  %v10634_v28 = vsel %vm366_vm1, %v10615_v60, 0 }
 0x4f6   : > { %12131 = vrot.lane.b32.xlu0 %v16145_v21, %s17279_s11  ;;  %12874 = vmatmul.mubr.msk.bf16.vlgmr.msra.gmra.mrb[8].mxu1 %vm362_vm2, %v16877_v14 }
 0x4f7   : > { %13319 = vmatpush3.bf16.msra.mxu1 %v10420_v18  ;;  %v10609_v43 = vpop.permute.xlu1 %10608  ;;  %13320 = vmatprep.mubr.msk.bf16.mxu1 %vm14365_vm3, %v14364_v32 }
 0x4f8   : > { %12880 = vmatprep.subr.msk.bf16.mxu1 %vm366_vm1, %v10614_v33  ;;  %v10607_v7 = vpop.permute.xlu0 %10606 }
 0x4f9   : > { %12137 = vrot.lane.b32.xlu1 %v16230_v17, %s17279_s11  ;;  %v10616_v21 = vsel %vm10610_vm5, %v10605_v12, %v10607_v7  ;;  %v10628_v17 = vsel %vm366_vm1, %v10613_v26, 0  ;;  %v10617_v53 = vsel %vm10610_vm5, %v10607_v7, %v10609_v43 }
 0x4fa   : > { %12135 = vrot.lane.b32.xlu0 %v16159_v16, %s17279_s11  ;;  %v10640_v58 = vsel %vm366_vm1, %v10617_v53, 0 }
 0x4fb   : > { %12876 = vmatmul.mubr.msk.bf16.vlgmr.msra.gmra.mrb[12].mxu0 %vm362_vm2, %v16877_v14  ;;  %v10817_v61 = vpop.permute.xlu1 %10816 }
 0x4fc   : > { %10643 = vmatpush1.bf16.msra.mxu0 %v10622_v59  ;;  %v10815_v48 = vpop.permute.xlu0 %10814  ;;  %10674 = vmatprep.mubr.bf16.mxu0 %v14349_v2 }
 0x4fd   : > { %12882 = vmatprep.subr.msk.bf16.mxu0 %vm366_vm1, %v10616_v21  ;;  %12129 = vrot.lane.b32.xlu1 %v16441_v49, %s14370_s15  ;;  %v10831_v29 = vsel %vm10830_vm6, %v10815_v48, %v10817_v61 }
 0x4fe   : > { %12139 = vrot.lane.b32.xlu0 %v16304_v34, %s17279_s11  ;;  %13321 = vmatmul.mubr.msk.bf16.vlgmr.msra.gmra.mrb[12].mxu1 %vm362_vm2, %v16877_v14  ;;  %v12348_v34 = vld [vmem:[%s17252_s5] sm:$0xff]  ;;  %v10842_v0 = vsel %vm366_vm1, %v10831_v29, 0 }
 0x4ff   : > { %10684 = vmatpush1.bf16.msra.mxu1 %v10628_v17  ;;  %v10821_v16 = vpop.permute.xlu1 %10820  ;;  %10715 = vmatprep.mubr.bf16.mxu1 %v14349_v2 }
 0x500   : > { %v10819_v1 = vpop.permute.xlu0 %10818  ;;  %13324 = vmatprep.subr.bf16.mxu1 %v14364_v32 }
 0x501   : > { %12143 = vrot.lane.b32.xlu1 %v16266_v31, %s17279_s11  ;;  %v10832_v49 = vsel %vm10830_vm6, %v10817_v61, %v10819_v1  ;;  %v10833_v44 = vsel %vm10830_vm6, %v10819_v1, %v10821_v16 }
 0x502   : > { %12141 = vrot.lane.b32.xlu0 %v16341_v63, %s17279_s11  ;;  %v10848_v23 = vsel %vm366_vm1, %v10833_v44, 0 }
 0x503   : > { %12879 = vmatmul.mubr.msk.bf16.vlgmr.msra.gmra.mrb[8].mxu0 %vm362_vm2, %v16970_v40  ;;  %v17019_v62 = vpop.permute.xlu1 %10812 }
 0x504   : > { %10725 = vmatpush1.bf16.msra.mxu0 %v10634_v28  ;;  %v10823_v31 = vpop.permute.xlu0 %10822  ;;  %10756 = vmatprep.mubr.bf16.mxu0 %v14349_v2 }
 0x505   : > { %12885 = vmatprep.subr.msk.bf16.mxu0 %vm366_vm1, %v10832_v49  ;;  %v10834_v63 = vsel %vm10830_vm6, %v10821_v16, %v10823_v31  ;;  %12351 = vperm.xlu1 %14274, %v12348_v34  }
 0x506   : > { %12145 = vrot.lane.b32.xlu0 %v16225_v3, %s17279_s11  ;;  %12881 = vmatmul.mubr.msk.bf16.vlgmr.msra.gmra.mrb[8].mxu1 %vm362_vm2, %v16970_v40  ;;  %v12375_v3 = vld [vmem:[%s14482_s13 + $0x8] sm:$0xff]  ;;  %s14205_s13 = smul.u32 56, %s17281_s28 }
 0x507   : > { %13325 = vmatpush3.bf16.msra.mxu1 %v10640_v58  ;;  %v10827_v14 = vpop.permute.xlu1 %10826  ;;  %13326 = vmatprep.mubr.msk.bf16.mxu1 %vm14365_vm3, %v14364_v32  ;;  %v12380_v10 = vunpack.c.l.bf16 %v12375_v3  ;;  %v12381_v15 = vunpack.c.h.bf16 %v12375_v3 }
 0x508   : > { %12887 = vmatprep.subr.msk.bf16.mxu1 %vm366_vm1, %v10834_v63  ;;  %v10825_v4 = vpop.permute.xlu0 %10824  ;;  %s17226_s14 = scalar_lea.vmem %s17255_s8, %s14205_s13 }
 0x509   : > { %v10836_v8 = vsel %vm10830_vm6, %v10825_v4, %v10827_v14  ;;  %v14281_v41 = vpack.i.bf16 %v12381_v15, %v12380_v10  ;;  %14277 = vrot.lane.b32.xlu1 %v14276_v56, %s17279_s11  ;;  %v10835_v19 = vsel %vm10830_vm6, %v10823_v31, %v10825_v4 }
 0x50a   : > { %12364 = vperm.xlu0 %14275, %v12361_v9   ;;  %v10854_v13 = vsel %vm366_vm1, %v10835_v19, 0 }
 0x50b   : > { %12883 = vmatmul.mubr.msk.bf16.vlgmr.msra.gmra.mrb[12].mxu0 %vm362_vm2, %v16970_v40  ;;  %v11035_v52 = vpop.permute.xlu1 %11034 }
 0x50c   : > { %10863 = vmatpush1.bf16.msra.mxu0 %v10842_v0  ;;  %v10829_v11 = vpop.permute.xlu0 %10828  ;;  %10894 = vmatprep.mubr.bf16.mxu0 %v14349_v2 }
 0x50d   : > { %12889 = vmatprep.subr.msk.bf16.mxu0 %vm366_vm1, %v10836_v8  ;;  %14287 = vrot.lane.b32.xlu1 %v14286_v5, %s17279_s11  ;;  %v10837_v6 = vsel %vm10830_vm6, %v10827_v14, %v10829_v11 }
 0x50e   : > { %13327 = vmatmul.mubr.msk.bf16.vlgmr.msra.gmra.mrb[12].mxu1 %vm362_vm2, %v16970_v40  ;;  %14282 = vrot.lane.b32.xlu0 %v14281_v41, %s17279_s11  ;;  %v10860_v37 = vsel %vm366_vm1, %v10837_v6, 0 }
 0x50f   : > { %10904 = vmatpush1.bf16.msra.mxu1 %v10848_v23  ;;  %v11039_v25 = vpop.permute.xlu1 %11038  ;;  %10935 = vmatprep.mubr.bf16.mxu1 %v14349_v2 }
 0x510   : > { %v11037_v36 = vpop.permute.xlu0 %11036  ;;  %13330 = vmatprep.subr.bf16.mxu1 %v14364_v32 }
 0x511   : > { %v11052_v20 = vsel %vm11050_vm8, %v11037_v36, %v11039_v25  ;;  %v11051_v12 = vsel %vm11050_vm8, %v11035_v52, %v11037_v36 }
 0x512   : > { %14292 = vrot.lane.b32.xlu0 %v14291_v46, %s17279_s11  ;;  %v11062_v40 = vsel %vm366_vm1, %v11051_v12, 0 }
 0x513   : > { %12886 = vmatmul.mubr.msk.bf16.vlgmr.msra.gmra.mrb[8].mxu0 %vm362_vm2, %v17019_v62  ;;  %v11043_v27 = vpop.permute.xlu1 %11042 }
 0x514   : > { %10945 = vmatpush1.bf16.msra.mxu0 %v10854_v13  ;;  %v11041_v39 = vpop.permute.xlu0 %11040  ;;  %10976 = vmatprep.mubr.bf16.mxu0 %v14349_v2 }
 0x515   : > { %12892 = vmatprep.subr.msk.bf16.mxu0 %vm366_vm1, %v11052_v20  ;;  %v11054_v24 = vsel %vm11050_vm8, %v11041_v39, %v11043_v27  ;;  %v11053_v18 = vsel %vm11050_vm8, %v11039_v25, %v11041_v39 }
 0x516   : > { %12888 = vmatmul.mubr.msk.bf16.vlgmr.msra.gmra.mrb[8].mxu1 %vm362_vm2, %v17019_v62  ;;  %v11068_v7 = vsel %vm366_vm1, %v11053_v18, 0 }
 0x517   : > { %13331 = vmatpush3.bf16.msra.mxu1 %v10860_v37  ;;  %v11045_v35 = vpop.permute.xlu1 %11044  ;;  %13332 = vmatprep.mubr.msk.bf16.mxu1 %vm14365_vm3, %v14364_v32 }
 0x518   : > { %12894 = vmatprep.subr.msk.bf16.mxu1 %vm366_vm1, %v11054_v24  ;;  %v11033_v22 = vpop.permute.xlu0 %11032  ;;  %v11055_v59 = vsel %vm11050_vm8, %v11043_v27, %v11045_v35 }
 0x519   : > { %v11074_v61 = vsel %vm366_vm1, %v11055_v59, 0 }
 0x51b   : > { %12890 = vmatmul.mubr.msk.bf16.vlgmr.msra.gmra.mrb[12].mxu0 %vm362_vm2, %v17019_v62  ;;  %v11049_v33 = vpop.permute.xlu1 %11048 }
 0x51c   : > { %11083 = vmatpush1.bf16.msra.mxu0 %v11062_v40  ;;  %v11047_v43 = vpop.permute.xlu0 %11046  ;;  %11114 = vmatprep.mubr.bf16.mxu0 %v14349_v2 }
 0x51d   : > { %v11056_v38 = vsel %vm11050_vm8, %v11045_v35, %v11047_v43  ;;  %v11057_v48 = vsel %vm11050_vm8, %v11047_v43, %v11049_v33 }
 0x51e   : > { %13333 = vmatmul.mubr.msk.bf16.vlgmr.msra.gmra.mrb[12].mxu1 %vm362_vm2, %v17019_v62  ;;  %12896 = vmatprep.subr.msk.bf16.mxu0 %vm366_vm1, %v11056_v38  ;;  %v11080_v1 = vsel %vm366_vm1, %v11057_v48, 0 }
 0x51f   : > { %11124 = vmatpush1.bf16.msra.mxu1 %v11068_v7  ;;  %v11257_v21 = vpop.permute.xlu1 %11256  ;;  %11155 = vmatprep.mubr.bf16.mxu1 %v14349_v2 }
 0x520   : > { %v11255_v26 = vpop.permute.xlu0 %11254  ;;  %13336 = vmatprep.subr.bf16.mxu1 %v14364_v32 }
 0x521   : > { %v11270_v34 = vsel %vm2299_vm11, %v11255_v26, %v11257_v21 }
 0x522   : > { %v11281_v62 = vsel %vm366_vm1, %v11270_v34, 0 }
 0x523   : > { %12893 = vmatmul.mubr.msk.bf16.vlgmr.msra.gmra.mrb[8].mxu0 %vm362_vm2, %v11033_v22  ;;  %v11261_v17 = vpop.permute.xlu1 %11260 }
 0x524   : > { %11165 = vmatpush1.bf16.msra.mxu0 %v11074_v61  ;;  %v11259_v16 = vpop.permute.xlu0 %11258  ;;  %11196 = vmatprep.mubr.bf16.mxu0 %v14349_v2 }
 0x525   : > { %v11271_v60 = vsel %vm2299_vm11, %v11257_v21, %v11259_v16  ;;  %v11272_v31 = vsel %vm2299_vm11, %v11259_v16, %v11261_v17 }
 0x526   : > { %12895 = vmatmul.mubr.msk.bf16.vlgmr.msra.gmra.mrb[8].mxu1 %vm362_vm2, %v11033_v22  ;;  %12899 = vmatprep.subr.msk.bf16.mxu0 %vm366_vm1, %v11271_v60  ;;  %v11287_v14 = vsel %vm366_vm1, %v11272_v31, 0 }
 0x527   : > { %13337 = vmatpush3.bf16.msra.mxu1 %v11080_v1  ;;  %v11253_v49 = vpop.permute.xlu1 %11252  ;;  %13338 = vmatprep.mubr.msk.bf16.mxu1 %vm14365_vm3, %v14364_v32 }
 0x528   : > { %v11263_v28 = vpop.permute.xlu0 %11262 }
 0x529   : > { %v11273_v53 = vsel %vm2299_vm11, %v11261_v17, %v11263_v28 }
 0x52a   : > { %12901 = vmatprep.subr.msk.bf16.mxu1 %vm366_vm1, %v11273_v53 }
 0x52b   : > { %12897 = vmatmul.mubr.msk.bf16.vlgmr.msra.gmra.mrb[12].mxu0 %vm362_vm2, %v11033_v22  ;;  %v11267_v63 = vpop.permute.xlu1 %11266 }
 0x52c   : > { %11302 = vmatpush1.bf16.msra.mxu0 %v11281_v62  ;;  %v11265_v58 = vpop.permute.xlu0 %11264  ;;  %11333 = vmatprep.mubr.bf16.mxu0 %v14349_v2 }
 0x52d   : > { %v11275_v29 = vsel %vm2299_vm11, %v11265_v58, %v11267_v63  ;;  %v11274_v4 = vsel %vm2299_vm11, %v11263_v28, %v11265_v58 }
 0x52e   : > { %13339 = vmatmul.mubr.msk.bf16.vlgmr.msra.gmra.mrb[12].mxu1 %vm362_vm2, %v11033_v22  ;;  %12903 = vmatprep.subr.msk.bf16.mxu0 %vm366_vm1, %v11275_v29  ;;  %v11293_v51 = vsel %vm366_vm1, %v11274_v4, 0 }
 0x52f   : > { %11343 = vmatpush1.bf16.msra.mxu1 %v11287_v14  ;;  %v11474_v9 = vpop.permute.xlu1 %11473  ;;  %11374 = vmatprep.mubr.bf16.mxu1 %v14349_v2 }
 0x530   : > { %v11269_v0 = vpop.permute.xlu0 %11268  ;;  %13342 = vmatprep.subr.bf16.mxu1 %v14364_v32 }
 0x531   : > { %v11276_v3 = vsel %vm2299_vm11, %v11267_v63, %v11269_v0  ;;  %vm11708_vm11 = vcmask 154624  }
 0x532   : > { %v11299_v54 = vsel %vm366_vm1, %v11276_v3, 0 }
 0x533   : > { %12900 = vmatmul.mubr.msk.bf16.vlgmr.msra.gmra.mrb[8].mxu0 %vm362_vm2, %v11253_v49  ;;  %v11478_v47 = vpop.permute.xlu1 %11477 }
 0x534   : > { %11384 = vmatpush1.bf16.msra.mxu0 %v11293_v51  ;;  %v11476_v8 = vpop.permute.xlu0 %11475  ;;  %11415 = vmatprep.mubr.bf16.mxu0 %v14349_v2 }
 0x535   : > { %v11490_v45 = vsel %vm2519_vm12, %v11476_v8, %v11478_v47  ;;  %v11489_v57 = vsel %vm2519_vm12, %v11474_v9, %v11476_v8 }
 0x536   : > { %12902 = vmatmul.mubr.msk.bf16.vlgmr.msra.gmra.mrb[8].mxu1 %vm362_vm2, %v11253_v49  ;;  %12906 = vmatprep.subr.msk.bf16.mxu0 %vm366_vm1, %v11490_v45  ;;  %v11500_v15 = vsel %vm366_vm1, %v11489_v57, 0 }
 0x537   : > { %13343 = vmatpush3.bf16.msra.mxu1 %v11299_v54  ;;  %v11482_v10 = vpop.permute.xlu1 %11481  ;;  %13344 = vmatprep.mubr.msk.bf16.mxu1 %vm14365_vm3, %v14364_v32 }
 0x538   : > { %v11480_v44 = vpop.permute.xlu0 %11479 }
 0x539   : > { %v11492_v52 = vsel %vm2519_vm12, %v11480_v44, %v11482_v10  ;;  %v11491_v30 = vsel %vm2519_vm12, %v11478_v47, %v11480_v44 }
 0x53a   : > { %12908 = vmatprep.subr.msk.bf16.mxu1 %vm366_vm1, %v11492_v52  ;;  %v11506_v56 = vsel %vm366_vm1, %v11491_v30, 0 }
 0x53b   : > { %12904 = vmatmul.mubr.msk.bf16.vlgmr.msra.gmra.mrb[12].mxu0 %vm362_vm2, %v11253_v49  ;;  %v11484_v50 = vpop.permute.xlu1 %11483 }
 0x53c   : > { %11521 = vmatpush1.bf16.msra.mxu0 %v11500_v15  ;;  %v11472_v11 = vpop.permute.xlu0 %11471  ;;  %11552 = vmatprep.mubr.bf16.mxu0 %v14349_v2  ;;  %v11493_v55 = vsel %vm2519_vm12, %v11482_v10, %v11484_v50 }
 0x53d   : > { %v11512_v5 = vsel %vm366_vm1, %v11493_v55, 0 }
 0x53e   : > { %13345 = vmatmul.mubr.msk.bf16.vlgmr.msra.gmra.mrb[12].mxu1 %vm362_vm2, %v11253_v49 }
 0x53f   : > { %11562 = vmatpush1.bf16.msra.mxu1 %v11506_v56  ;;  %v11488_v41 = vpop.permute.xlu1 %11487  ;;  %11593 = vmatprep.mubr.bf16.mxu1 %v14349_v2 }
 0x540   : > { %v11486_v42 = vpop.permute.xlu0 %11485  ;;  %13348 = vmatprep.subr.bf16.mxu1 %v14364_v32 }
 0x541   : > { %v11494_v23 = vsel %vm2519_vm12, %v11484_v50, %v11486_v42  ;;  %v11495_v25 = vsel %vm2519_vm12, %v11486_v42, %v11488_v41 }
 0x542   : > { %12910 = vmatprep.subr.msk.bf16.mxu0 %vm366_vm1, %v11494_v23  ;;  %v11518_v46 = vsel %vm366_vm1, %v11495_v25, 0 }
 0x543   : > { %12907 = vmatmul.mubr.msk.bf16.vlgmr.msra.gmra.mrb[8].mxu0 %vm362_vm2, %v11472_v11  ;;  %v11695_v19 = vpop.permute.xlu1 %11694 }
 0x544   : > { %11603 = vmatpush1.bf16.msra.mxu0 %v11512_v5  ;;  %v11693_v36 = vpop.permute.xlu0 %11692  ;;  %11634 = vmatprep.mubr.bf16.mxu0 %v14349_v2 }
 0x545   : > { %v11709_v13 = vsel %vm11708_vm11, %v11693_v36, %v11695_v19 }
 0x546   : > { %12909 = vmatmul.mubr.msk.bf16.vlgmr.msra.gmra.mrb[8].mxu1 %vm362_vm2, %v11472_v11  ;;  %v11720_v39 = vsel %vm366_vm1, %v11709_v13, 0 }
 0x547   : > { %13349 = vmatpush3.bf16.msra.mxu1 %v11518_v46  ;;  %v11699_v20 = vpop.permute.xlu1 %11698  ;;  %13350 = vmatprep.mubr.msk.bf16.mxu1 %vm14365_vm3, %v14364_v32 }
 0x548   : > { %v11697_v6 = vpop.permute.xlu0 %11696 }
 0x549   : > { %v11710_v27 = vsel %vm11708_vm11, %v11695_v19, %v11697_v6  ;;  %v11711_v24 = vsel %vm11708_vm11, %v11697_v6, %v11699_v20 }
 0x54a   : > { %12913 = vmatprep.subr.msk.bf16.mxu0 %vm366_vm1, %v11710_v27  ;;  %v11726_v22 = vsel %vm366_vm1, %v11711_v24, 0 }
 0x54b   : > { %12911 = vmatmul.mubr.msk.bf16.vlgmr.msra.gmra.mrb[12].mxu0 %vm362_vm2, %v11472_v11  ;;  %v11691_v37 = vpop.permute.xlu1 %11690 }
 0x54c   : > { %11741 = vmatpush1.bf16.msra.mxu0 %v11720_v39  ;;  %v11701_v35 = vpop.permute.xlu0 %11700  ;;  %11772 = vmatprep.mubr.bf16.mxu0 %v14349_v2 }
 0x54d   : > { %v11712_v12 = vsel %vm11708_vm11, %v11699_v20, %v11701_v35 }
 0x54e   : > { %13351 = vmatmul.mubr.msk.bf16.vlgmr.msra.gmra.mrb[12].mxu1 %vm362_vm2, %v11472_v11  ;;  %12915 = vmatprep.subr.msk.bf16.mxu1 %vm366_vm1, %v11712_v12 }
 0x54f   : > { %11782 = vmatpush1.bf16.msra.mxu1 %v11726_v22  ;;  %v11705_v40 = vpop.permute.xlu1 %11704  ;;  %11813 = vmatprep.mubr.bf16.mxu1 %v14349_v2 }
 0x550   : > { %v11703_v18 = vpop.permute.xlu0 %11702  ;;  %13354 = vmatprep.subr.bf16.mxu1 %v14364_v32 }
 0x551   : > { %v11713_v33 = vsel %vm11708_vm11, %v11701_v35, %v11703_v18  ;;  %v11714_v43 = vsel %vm11708_vm11, %v11703_v18, %v11705_v40 }
 0x552   : > { %v11732_v38 = vsel %vm366_vm1, %v11713_v33, 0  ;;  %12917 = vmatprep.subr.msk.bf16.mxu0 %vm366_vm1, %v11714_v43 }
 0x553   : > { %12914 = vmatmul.mubr.msk.bf16.vlgmr.msra.gmra.mrb[8].mxu0 %vm362_vm2, %v11691_v37  ;;  %v11913_v7 = vpop.permute.xlu1 %11912 }
 0x554   : > { %11823 = vmatpush1.bf16.msra.mxu0 %v11732_v38  ;;  %v11707_v21 = vpop.permute.xlu0 %11706  ;;  %11854 = vmatprep.mubr.bf16.mxu0 %v14349_v2 }
 0x555   : > { %v11715_v59 = vsel %vm11708_vm11, %v11705_v40, %v11707_v21 }
 0x556   : > { %v11738_v26 = vsel %vm366_vm1, %v11715_v59, 0  ;;  %12916 = vmatmul.mubr.msk.bf16.vlgmr.msra.gmra.mrb[8].mxu1 %vm362_vm2, %v11691_v37 }
 0x557   : > { %13355 = vmatpush3.bf16.msra.mxu1 %v11738_v26  ;;  %v11917_v61 = vpop.permute.xlu1 %11916  ;;  %13356 = vmatprep.mubr.msk.bf16.mxu1 %vm14365_vm3, %v14364_v32 }
 0x558   : > { %v11915_v48 = vpop.permute.xlu0 %11914 }
 0x559   : > { %v11928_v17 = vsel %vm2959_vm14, %v11913_v7, %v11915_v48  ;;  %v11929_v16 = vsel %vm2959_vm14, %v11915_v48, %v11917_v61 }
 0x55a   : > { %v11939_v60 = vsel %vm366_vm1, %v11928_v17, 0  ;;  %12920 = vmatprep.subr.msk.bf16.mxu0 %vm366_vm1, %v11929_v16 }
 0x55b   : > { %12918 = vmatmul.mubr.msk.bf16.vlgmr.msra.gmra.mrb[12].mxu0 %vm362_vm2, %v11691_v37  ;;  %v11921_v1 = vpop.permute.xlu1 %11920 }
 0x55c   : > { %11960 = vmatpush1.bf16.msra.mxu0 %v11939_v60  ;;  %v11919_v49 = vpop.permute.xlu0 %11918  ;;  %11991 = vmatprep.mubr.bf16.mxu0 %v14349_v2 }
 0x55d   : > { %v11930_v34 = vsel %vm2959_vm14, %v11917_v61, %v11919_v49  ;;  %v11931_v28 = vsel %vm2959_vm14, %v11919_v49, %v11921_v1 }
 0x55e   : > { %v11945_v53 = vsel %vm366_vm1, %v11930_v34, 0  ;;  %13357 = vmatmul.mubr.msk.bf16.vlgmr.msra.gmra.mrb[12].mxu1 %vm362_vm2, %v11691_v37  ;;  %12922 = vmatprep.subr.msk.bf16.mxu1 %vm366_vm1, %v11931_v28 }
 0x55f   : > { %12001 = vmatpush1.bf16.msra.mxu1 %v11945_v53  ;;  %v11923_v62 = vpop.permute.xlu1 %11922  ;;  %12032 = vmatprep.mubr.bf16.mxu1 %v14349_v2 }
 0x560   : > { %v11911_v31 = vpop.permute.xlu0 %11910  ;;  %13360 = vmatprep.subr.bf16.mxu1 %v14364_v32  ;;  %v11932_v63 = vsel %vm2959_vm14, %v11921_v1, %v11923_v62 }
 0x561   : > { %v11951_v4 = vsel %vm366_vm1, %v11932_v63, 0 }
 0x563   : > { %12921 = vmatmul.mubr.msk.bf16.vlgmr.msra.gmra.mrb[8].mxu0 %vm362_vm2, %v11911_v31  ;;  %v11927_v58 = vpop.permute.xlu1 %11926 }
 0x564   : > { %v11925_v29 = vpop.permute.xlu0 %11924  ;;  %12073 = vmatprep.mubr.bf16.mxu0 %v14349_v2 }
 0x565   : > { %v11933_v14 = vsel %vm2959_vm14, %v11923_v62, %v11925_v29  ;;  %v11934_v9 = vsel %vm2959_vm14, %v11925_v29, %v11927_v58 }
 0x566   : > { %v11957_v0 = vsel %vm366_vm1, %v11934_v9, 0  ;;  %12923 = vmatmul.mubr.msk.bf16.vlgmr.msra.gmra.mrb[8].mxu1 %vm362_vm2, %v11911_v31  ;;  %12924 = vmatprep.subr.msk.bf16.mxu0 %vm366_vm1, %v11933_v14 }
 0x567   : > { %12042 = vmatpush1.bf16.msra.mxu0 %v11951_v4  ;;  %13361 = vmatpush3.bf16.msra.mxu1 %v11957_v0  ;;  %v12134_v51 = vpop.permute.xlu1 %12133 }
 0x568   : > { %v12132_v3 = vpop.permute.xlu0 %12131  ;;  %13362 = vmatprep.mubr.msk.bf16.mxu1 %vm14365_vm3, %v14364_v32 }
 0x569   : > { %v12147_v47 = vsel %vm3179_vm15, %v12132_v3, %v12134_v51 }
 0x56a   : > { %v12158_v10 = vsel %vm366_vm1, %v12147_v47, 0 }
 0x56b   : > { %12925 = vmatmul.mubr.msk.bf16.vlgmr.msra.gmra.mrb[12].mxu0 %vm362_vm2, %v11911_v31  ;;  %v12138_v8 = vpop.permute.xlu1 %12137 }
 0x56c   : > { %v12136_v45 = vpop.permute.xlu0 %12135  ;;  %12210 = vmatprep.mubr.bf16.mxu0 %v14349_v2 }
 0x56d   : > { %v12148_v54 = vsel %vm3179_vm15, %v12134_v51, %v12136_v45  ;;  %v12149_v57 = vsel %vm3179_vm15, %v12136_v45, %v12138_v8 }
 0x56e   : > { %13363 = vmatmul.mubr.msk.bf16.vlgmr.msra.gmra.mrb[12].mxu1 %vm362_vm2, %v11911_v31  ;;  %12927 = vmatprep.subr.msk.bf16.mxu0 %vm366_vm1, %v12148_v54  ;;  %v12164_v30 = vsel %vm366_vm1, %v12149_v57, 0 }
 0x56f   : > { %12179 = vmatpush1.bf16.msra.mxu0 %v12158_v10  ;;  %v12130_v44 = vpop.permute.xlu1 %12129  ;;  %12251 = vmatprep.mubr.bf16.mxu1 %v14349_v2 }
 0x570   : > { %v12140_v52 = vpop.permute.xlu0 %12139 }
 0x571   : > { %v12150_v15 = vsel %vm3179_vm15, %v12138_v8, %v12140_v52 }
 0x572   : > { %12929 = vmatprep.subr.msk.bf16.mxu1 %vm366_vm1, %v12150_v15 }
 0x573   : > { %12928 = vmatmul.mubr.msk.bf16.vlgmr.msra.gmra.mrb[8].mxu0 %vm362_vm2, %v12130_v44  ;;  %12220 = vmatpush1.bf16.msra.mxu1 %v12164_v30  ;;  %v12144_v50 = vpop.permute.xlu1 %12143 }
 0x574   : > { %v12142_v11 = vpop.permute.xlu0 %12141  ;;  %12292 = vmatprep.mubr.bf16.mxu0 %v14349_v2  ;;  %13366 = vmatprep.subr.bf16.mxu1 %v14364_v32 }
 0x575   : > { %v12151_v56 = vsel %vm3179_vm15, %v12140_v52, %v12142_v11  ;;  %v12152_v41 = vsel %vm3179_vm15, %v12142_v11, %v12144_v50 }
 0x576   : > { %v12170_v55 = vsel %vm366_vm1, %v12151_v56, 0  ;;  %12930 = vmatmul.mubr.msk.bf16.vlgmr.msra.gmra.mrb[8].mxu1 %vm362_vm2, %v12130_v44  ;;  %12931 = vmatprep.subr.msk.bf16.mxu0 %vm366_vm1, %v12152_v41 }
 0x577   : > { %12261 = vmatpush1.bf16.msra.mxu0 %v12170_v55  ;;  %13368 = vmatprep.mubr.msk.bf16.mxu1 %vm14365_vm3, %v14364_v32 }
 0x578   : > { %v12146_v42 = vpop.permute.xlu0 %12145 }
 0x579   : > { %v12153_v23 = vsel %vm3179_vm15, %v12144_v50, %v12146_v42 }
 0x57a   : > { %v12176_v2 = vsel %vm366_vm1, %v12153_v23, 0 }
 0x57b   : > { %12932 = vmatmul.mubr.msk.bf16.vlgmr.msra.gmra.mrb[12].mxu0 %vm362_vm2, %v12130_v44  ;;  %13367 = vmatpush3.bf16.msra.mxu1 %v12176_v2 }
 0x57e   : > { %13369 = vmatmul.mubr.msk.bf16.vlgmr.msra.gmra.mrb[12].mxu1 %vm362_vm2, %v12130_v44 }
 0x584   : > { %v12352_v5 = vpop.permute.xlu1 %12351 }
 0x588   : > { %v14278_v19 = vpop.permute.xlu1 %14277 }
 0x589   : > { %v17215_v25 = vpop.permute.xlu0 %12364  ;;  %v14280_v46 = vunpack.i.h.bf16 %v14278_v19  ;;  %v14279_v20 = vunpack.i.l.bf16 %v14278_v19 }
 0x58b   : > { %v12411_v37 = vsel %vm3179_vm15, %v14279_v20, %v14280_v46 }
 0x58c   : > { %v14288_v32 = vpop.permute.xlu1 %14287 }
 0x58d   : > { %v14283_v36 = vpop.permute.xlu0 %14282  ;;  %v14289_v22 = vunpack.i.l.bf16 %v14288_v32  ;;  %v14290_v1 = vunpack.i.h.bf16 %v14288_v32 }
 0x58e   : > { %v14284_v13 = vunpack.i.l.bf16 %v14283_v36  ;;  %v14285_v24 = vunpack.i.h.bf16 %v14283_v36 }
 0x58f   : > { %v12415_v51 = vsel %vm3179_vm15, %v14289_v22, %v14290_v1 }
 0x590   : > { %v12412_v18 = vsel %vm3179_vm15, %v14280_v46, %v14284_v13  ;;  %v12413_v61 = vsel %vm3179_vm15, %v14284_v13, %v14285_v24  ;;  %v12414_v49 = vsel %vm3179_vm15, %v14285_v24, %v14289_v22 }
 0x591   : > { %v14293_v59 = vpop.permute.xlu0 %14292 }
 0x592   : > { %v14294_v62 = vunpack.i.l.bf16 %v14293_v59  ;;  %v14295_v4 = vunpack.i.h.bf16 %v14293_v59 }
 0x594   : > { %v12416_v54 = vsel %vm3179_vm15, %v14290_v1, %v14294_v62  ;;  %v12417_v50 = vsel %vm3179_vm15, %v14294_v62, %v14295_v4 }
 0x646   : > { %v12212_v6 = vpop.f32.mrb[8].mxu0 }
 0x647   : > { %v12354_v27 = vmul.f32 %v12352_v5, %v12212_v6  ;;  %v12214_v39 = vpop.f32.mrb[9].mxu0 }
 0x648   : > { %v12355_v35 = vmul.f32 %v12352_v5, %v12214_v39  ;;  %v12216_v12 = vpop.f32.mrb[10].mxu0 }
 0x649   : > { %v12367_v40 = vadd.f32 %v17215_v25, %v12354_v27  ;;  %v12217_v33 = vpop.f32.mrb[11].mxu0  ;;  %v12253_v43 = vpop.f32.mrb[8].mxu1 }
 0x64a   : > { %v12368_v38 = vadd.f32 %v17215_v25, %v12355_v35  ;;  %v12356_v7 = vmul.f32 %v12352_v5, %v12253_v43  ;;  %v12255_v21 = vpop.f32.mrb[9].mxu1 }
 0x64b   : > { %v12425_v26 = vadd.f32 %v12411_v37, %v12367_v40  ;;  %v12357_v48 = vmul.f32 %v12352_v5, %v12255_v21  ;;  %v12257_v17 = vpop.f32.mrb[10].mxu1 }
 0x64c   : > { %v12426_v16 = vadd.f32 %v12412_v18, %v12368_v38  ;;  %v12369_v60 = vadd.f32 %v17215_v25, %v12356_v7  ;;  %v12258_v34 = vpop.f32.mrb[11].mxu1 }
 0x64d   : > { %v12432_v28 = vmax.f32 %v12425_v26, 0.0  ;;  %v12370_v53 = vadd.f32 %v17215_v25, %v12357_v48 }
 0x64e   : > { %v12433_v31 = vmax.f32 %v12426_v16, 0.0  ;;  %v12427_v63 = vadd.f32 %v12413_v61, %v12369_v60  ;;  %v12294_v58 = vpop.f32.mrb[12].mxu0 }
 0x64f   : > { %12439 = vst [vmem:[%s17226_s14] sm:$0xff] %v12432_v28  ;;  %v12428_v29 = vadd.f32 %v12414_v49, %v12370_v53  ;;  %v12358_v14 = vmul.f32 %v12352_v5, %v12294_v58  ;;  %v12296_v9 = vpop.f32.mrb[13].mxu0 }
 0x650   : > { %12440 = vst [vmem:[%s17226_s14 + $0x8] sm:$0xff] %v12433_v31  ;;  %v12434_v0 = vmax.f32 %v12427_v63, 0.0  ;;  %v12359_v3 = vmul.f32 %v12352_v5, %v12296_v9  ;;  %v12298_v47 = vpop.f32.mrb[14].mxu0 }
 0x651   : > { %v12435_v8 = vmax.f32 %v12428_v29, 0.0  ;;  %v12371_v45 = vadd.f32 %v17215_v25, %v12358_v14  ;;  %v12299_v10 = vpop.f32.mrb[15].mxu0  ;;  %v12335_v57 = vpop.f32.mrb[12].mxu1 }
 0x652   : > { %12441 = vst [vmem:[%s17226_s14 + $0x10] sm:$0xff] %v12434_v0  ;;  %v12372_v44 = vadd.f32 %v17215_v25, %v12359_v3  ;;  %v12360_v52 = vmul.f32 %v12352_v5, %v12335_v57  ;;  %v13370_v15 = vpop.f32.mrb[13].mxu1 }
 0x653   : > { %12442 = vst [vmem:[%s17226_s14 + $0x18] sm:$0xff] %v12435_v8  ;;  %v12429_v30 = vadd.f32 %v12415_v51, %v12371_v45  ;;  %v12338_v11 = vpop.f32.mrb[14].mxu1 }
 0x654   : > { %v12430_v56 = vadd.f32 %v12416_v54, %v12372_v44  ;;  %v12373_v41 = vadd.f32 %v17215_v25, %v12360_v52  ;;  %v13371_v55 = vpop.f32.mrb[15].mxu1 }
 0x655   : > { %v12436_v42 = vmax.f32 %v12429_v30, 0.0 }
 0x656   : > { %v12437_v23 = vmax.f32 %v12430_v56, 0.0  ;;  %v12431_v2 = vadd.f32 %v12417_v50, %v12373_v41 }
 0x657   : > { %12443 = vst [vmem:[%s17226_s14 + $0x20] sm:$0xff] %v12436_v42 }
 0x658   : > { %12444 = vst [vmem:[%s17226_s14 + $0x28] sm:$0xff] %v12437_v23  ;;  %v12438_v19 = vmax.f32 %v12431_v2, 0.0 }
 0x65a   : > { %12445 = vst [vmem:[%s17226_s14 + $0x30] sm:$0xff] %v12438_v19 }
 0x65b PF: > { %s18_s27 = sadd.s32 1, %s14346_s27  }
 0x65c   : > { %p15_p4 = scmp.ge.s32.totalorder %s18_s27, 4  }
 0x65e   :  { %17 = sbr.rel (!%p15_p4) target bundleno = 1 (0x1), region = 82 }

</bundles_post_ra>
